<compile_context>
chip_gen: v7x
topology: tpu7x:2x2x1
jax: 0.10.0
libtpu: 0.0.40
codegen_flags: <defaults>
</compile_context>

<pallas_src>
import functools
import math

import jax
import jax.numpy as jnp
import numpy as np
from jax.experimental import pallas as pl
from jax.experimental.pallas import tpu as pltpu

EPS = 1e-5
LANE = 128                       # pad channel dims to a multiple of the lane width


def _default_vmem_limit():
    """Generation-aware VMEM cap (~3/4 of physical), safe fallback otherwise."""
    try:
        cap = int(pltpu.get_tpu_info().vmem_capacity_bytes)
        return max(32 * 1024 * 1024, min(96 * 1024 * 1024, (cap * 3) // 4))
    except Exception:
        return 32 * 1024 * 1024


VMEM_LIMIT = _default_vmem_limit()
TM_TARGET = 1024 if VMEM_LIMIT >= 64 * 1024 * 1024 else 512
CONV_ROW_TARGET = 512            # target flattened output rows per conv grid step


def _round_up(x, m):
    return ((x + m - 1) // m) * m


def _pad_rows(a, rows):
    return jnp.pad(a, ((0, rows - a.shape[0]), (0, 0)))


def _pick_divisor_tile(m, target):
    """Largest row tile <= target that divides m (multiple of 8), else None."""
    if m <= target:
        return m
    t = min(target, m)
    t -= t % 8
    for cand in range(t, 7, -8):
        if m % cand == 0:
            return cand
    return None


def _pick_conv_row_tile(oh, ow, target_rows=CONV_ROW_TARGET):
    """Largest divisor of oh whose flattened tile (th*ow) stays near target."""
    best = 1
    for th in range(1, oh + 1):
        if oh % th == 0 and th * ow <= target_rows:
            best = th
    return best


# tap = (phase_index, row_offset, col_offset); weight rows are (dy, dx, c_in).
_TAPS_S1 = tuple((0, dy, dx) for dy in range(3) for dx in range(3))
_TAPS_S2 = tuple(((dy % 2) * 2 + (dx % 2), dy // 2, dx // 2)
                 for dy in range(3) for dx in range(3))


# ----------------------------- Pallas kernels -----------------------------

def _conv_taps_kernel(x_ref, w_ref, y_ref, sum_ref, ssq_ref, *,
                      taps, th, ow, oy_max, hs):
    """3x3 conv as one K=9*Ci MXU dot per output-row tile + BN-stat partials.

    x_ref:   (1, P*hs, Ws, Ci) bf16 phase slabs (P=1 stride-1, P=4 stride-2);
             resident in VMEM per image (index_map ignores the row-tile axis).
    w_ref:   (9*Ci, Co)        bf16 weights, tap-major rows (dy, dx, c_in).
    y_ref:   (1, th, ow, Co)   bf16 raw conv output tile.
    sum_ref: (1, 1, 8, Co)     f32 per-(image, tile) partial channel sum.
    ssq_ref: (1, 1, 8, Co)     f32 per-(image, tile) partial channel sum-of-sq.
    """
    r = pl.program_id(1)
    row0 = pl.multiple_of(r * th, th)
    nrow = th + oy_max

    # Hoisted loads: one row slab per distinct phase, one sublane-shifted column
    # slab per distinct (phase, ox) -- not one slice+cast+reshape copy per tap.
    phase_rows = {}
    col_slabs = {}
    cols = []
    for (p, oy, ox) in taps:
        if p not in phase_rows:
            phase_rows[p] = x_ref[0, pl.ds(p * hs + row0, nrow), :, :]
        if (p, ox) not in col_slabs:
            col_slabs[(p, ox)] = phase_rows[p][:, ox:ox + ow, :]
        win = col_slabs[(p, ox)][oy:oy + th]                 # (th, ow, Ci) bf16
        cols.append(win.reshape(th * ow, -1))

    # Per-tile in-VMEM im2col -> a single K = 9*Ci dot: no repeated f32
    # accumulator RMW, high MXU K-occupancy on the 256-deep v6e/v7x MXUs.
    lhs = jnp.concatenate(cols, axis=-1)                     # (th*ow, 9*Ci)
    y = jnp.dot(lhs, w_ref[...], preferred_element_type=jnp.float32)

    co = w_ref.shape[-1]
    y_ref[0] = y.reshape(th, ow, co).astype(y_ref.dtype)
    sum_ref[0, 0] = jnp.broadcast_to(jnp.sum(y, axis=0)[None, :], (8, co))
    ssq_ref[0, 0] = jnp.broadcast_to(jnp.sum(y * y, axis=0)[None, :], (8, co))


def _matmul_stats_kernel(p_ref, w_ref, y_ref, sum_ref, ssq_ref):
    """(tm, K) @ (K, C) with per-tile BN-stat partials (fully parallel grid)."""
    y = jnp.dot(p_ref[...], w_ref[...], preferred_element_type=jnp.float32)
    co = w_ref.shape[-1]
    y_ref[...] = y.astype(y_ref.dtype)
    sum_ref[0] = jnp.broadcast_to(jnp.sum(y, axis=0)[None, :], (8, co))
    ssq_ref[0] = jnp.broadcast_to(jnp.sum(y * y, axis=0)[None, :], (8, co))


def _bn_relu_pad_kernel(y_ref, sc_ref, sh_ref, o_ref, *, oh, ow):
    """h = relu(y*scale + shift) written into a halo-padded bf16 block; the
    zero halo is written as 4 thin strips (no full-block double store)."""
    co = o_ref.shape[-1]
    h = jnp.maximum(y_ref[0].astype(jnp.float32) * sc_ref[0] + sh_ref[0], 0.0)
    zrow = jnp.zeros((1, ow + 2, co), o_ref.dtype)
    zcol = jnp.zeros((oh, 1, co), o_ref.dtype)
    o_ref[0, 0:1] = zrow
    o_ref[0, oh + 1:oh + 2] = zrow
    o_ref[0, 1:1 + oh, 0:1] = zcol
    o_ref[0, 1:1 + oh, ow + 1:ow + 2] = zcol
    o_ref[0, 1:1 + oh, 1:1 + ow] = h.astype(o_ref.dtype)


def _bn_add_relu_kernel(y_ref, r_ref, sc2_ref, sh2_ref, scr_ref, shr_ref, o_ref):
    """out = relu( (y*sc2 + sh2) + (r*scr + shr) ); row-tiled, lane-dense."""
    left = y_ref[...].astype(jnp.float32) * sc2_ref[...] + sh2_ref[...]
    right = r_ref[...].astype(jnp.float32) * scr_ref[...] + shr_ref[...]
    o_ref[...] = jnp.maximum(left + right, 0.0)


# --------------------------- pallas_call wrappers --------------------------

def conv3x3_stats(xph, w, oh, ow, taps, oy_max, hs):
    """3x3 conv (stride 1, or phase-decomposed stride 2) + BN stats.

    Grid = (batch, output-row tiles); the activation slab is VMEM-resident per
    image, the BN statistics are per-(image, tile) partials reduced in JAX so
    both grid axes can be 'parallel' (megacore / v7x 2 TensorCores)."""
    B, PH, Ws, ci = xph.shape
    co = w.shape[-1]
    th = _pick_conv_row_tile(oh, ow)
    nt = oh // th
    kernel = functools.partial(_conv_taps_kernel, taps=taps, th=th, ow=ow,
                               oy_max=oy_max, hs=hs)
    y, s, q = pl.pallas_call(
        kernel,
        out_shape=(jax.ShapeDtypeStruct((B, oh, ow, co), jnp.bfloat16),
                   jax.ShapeDtypeStruct((B, nt, 8, co), jnp.float32),
                   jax.ShapeDtypeStruct((B, nt, 8, co), jnp.float32)),
        grid=(B, nt),
        in_specs=[pl.BlockSpec((1, PH, Ws, ci), lambda b, r: (b, 0, 0, 0)),
                  # TODO(synk): pipeline_mode=pl.Buffered(1) on this constant
                  # weight block would save VMEM for 512-channel layers on v7x.
                  pl.BlockSpec((9 * ci, co), lambda b, r: (0, 0))],
        out_specs=(pl.BlockSpec((1, th, ow, co), lambda b, r: (b, r, 0, 0)),
                   pl.BlockSpec((1, 1, 8, co), lambda b, r: (b, r, 0, 0)),
                   pl.BlockSpec((1, 1, 8, co), lambda b, r: (b, r, 0, 0))),
        compiler_params=pltpu.CompilerParams(
            dimension_semantics=("parallel", "parallel"),
            vmem_limit_bytes=VMEM_LIMIT),
    )(xph, w)
    return (y,
            jnp.sum(s[:, :, 0, :], axis=(0, 1)),
            jnp.sum(q[:, :, 0, :], axis=(0, 1)))


def matmul_stats(p, w):
    """(M, K) @ (K, C) + BN stats; the row tile divides M when possible so no
    pad / trailing-slice HBM passes are emitted."""
    M, K = p.shape
    C = w.shape[1]
    tm = _pick_divisor_tile(M, TM_TARGET)
    padded = tm is None
    if padded:
        tm = min(TM_TARGET, _round_up(M, 8))
        mp = _round_up(M, tm)
        p = _pad_rows(p, mp)
    else:
        mp = M
    nt = mp // tm
    y, s, q = pl.pallas_call(
        _matmul_stats_kernel,
        out_shape=(jax.ShapeDtypeStruct((mp, C), jnp.bfloat16),
                   jax.ShapeDtypeStruct((nt, 8, C), jnp.float32),
                   jax.ShapeDtypeStruct((nt, 8, C), jnp.float32)),
        grid=(nt,),
        in_specs=[pl.BlockSpec((tm, K), lambda i: (i, 0)),
                  pl.BlockSpec((K, C), lambda i: (0, 0))],
        out_specs=(pl.BlockSpec((tm, C), lambda i: (i, 0)),
                   pl.BlockSpec((1, 8, C), lambda i: (i, 0, 0)),
                   pl.BlockSpec((1, 8, C), lambda i: (i, 0, 0))),
        compiler_params=pltpu.CompilerParams(
            dimension_semantics=("parallel",),
            vmem_limit_bytes=VMEM_LIMIT),
    )(p, w)
    if padded:
        y = y[:M]
    return y, jnp.sum(s[:, 0, :], axis=0), jnp.sum(q[:, 0, :], axis=0)


def bn_relu_pad(y, scale, shift):
    """relu(y*scale+shift), fused with conv2's zero halo pad, bf16 output."""
    B, oh, ow, C = y.shape
    kernel = functools.partial(_bn_relu_pad_kernel, oh=oh, ow=ow)
    return pl.pallas_call(
        kernel,
        out_shape=jax.ShapeDtypeStruct((B, oh + 2, ow + 2, C), jnp.bfloat16),
        grid=(B,),
        in_specs=[pl.BlockSpec((1, oh, ow, C), lambda b: (b, 0, 0, 0)),
                  pl.BlockSpec((1, C), lambda b: (0, 0)),
                  pl.BlockSpec((1, C), lambda b: (0, 0))],
        out_specs=pl.BlockSpec((1, oh + 2, ow + 2, C), lambda b: (b, 0, 0, 0)),
        compiler_params=pltpu.CompilerParams(
            dimension_semantics=("parallel",),
            vmem_limit_bytes=VMEM_LIMIT),
    )(y, scale, shift)


def bn_add_relu(y, r, sc2, sh2, scr, shr):
    """relu(BN2(conv2_raw) + BN_r(residual_raw)); lane-dense row-tiled pass."""
    M, C = y.shape
    tm = _pick_divisor_tile(M, TM_TARGET)
    padded = tm is None
    if padded:
        tm = min(TM_TARGET, _round_up(M, 8))
        mp = _round_up(M, tm)
        y = _pad_rows(y, mp)
        r = _pad_rows(r, mp)
    else:
        mp = M
    out = pl.pallas_call(
        _bn_add_relu_kernel,
        out_shape=jax.ShapeDtypeStruct((mp, C), jnp.float32),
        grid=(mp // tm,),
        in_specs=[pl.BlockSpec((tm, C), lambda i: (i, 0)),
                  pl.BlockSpec((tm, C), lambda i: (i, 0)),
                  pl.BlockSpec((1, C), lambda i: (0, 0)),
                  pl.BlockSpec((1, C), lambda i: (0, 0)),
                  pl.BlockSpec((1, C), lambda i: (0, 0)),
                  pl.BlockSpec((1, C), lambda i: (0, 0))],
        out_specs=pl.BlockSpec((tm, C), lambda i: (i, 0)),
        compiler_params=pltpu.CompilerParams(
            dimension_semantics=("parallel",),
            vmem_limit_bytes=VMEM_LIMIT),
    )(y, r, sc2, sh2, scr, shr)
    return out[:M] if padded else out


# ------------------------------ JAX glue ----------------------------------

def _prep_w3x3(w_oihw, cpi, cpo):
    """(O, I, 3, 3) -> (9*cpi, cpo) bf16, tap-major rows (dy, dx, c_in)."""
    O, I, KH, KW = w_oihw.shape
    wt = jnp.transpose(w_oihw, (2, 3, 1, 0))                  # (3, 3, I, O)
    wt = jnp.pad(wt, ((0, 0), (0, 0), (0, cpi - I), (0, cpo - O)))
    return wt.reshape(KH * KW * cpi, cpo).astype(jnp.bfloat16)


def _prep_w1x1(w_oihw, cpi, cpo):
    """(O, I, 1, 1) -> (cpi, cpo) bf16."""
    O, I = w_oihw.shape[0], w_oihw.shape[1]
    wt = jnp.transpose(w_oihw[:, :, 0, 0], (1, 0))            # (I, O)
    wt = jnp.pad(wt, ((0, cpi - I), (0, cpo - O)))
    return wt.astype(jnp.bfloat16)


def _prep_gb(gamma, beta, cpo):
    C = gamma.shape[0]
    g = jnp.pad(gamma.astype(jnp.float32), (0, cpo - C), constant_values=1.0)
    b = jnp.pad(beta.astype(jnp.float32), (0, cpo - C))
    return g, b


def _scale_shift(s, q, count, gamma, beta):
    """Per-channel BN scale/shift from f32 sum / sum-of-squares (batch stats).

    NOTE: var = E[x^2]-E[x]^2 in f32 (clamped at 0); a shifted/Welford
    accumulation would be safer for very large |mean|/std ratios."""
    mean = s / count
    var = jnp.maximum(q / count - mean * mean, 0.0)
    scale = gamma * jax.lax.rsqrt(var + EPS)
    shift = beta - mean * scale
    return scale, shift


def _make_phases(x, oh, ow):
    """Pad + even/odd phase split so the stride-2 3x3 conv becomes 9 unstrided
    shifted-window taps: (B, H, W, C) f32 -> (B, 4*(oh+1), ow+1, C) bf16."""
    hs, ws = oh + 1, ow + 1
    xp = jnp.pad(x, ((0, 0), (1, 1), (1, 1), (0, 0)))
    phases = []
    for p in range(2):
        for q in range(2):
            ph = xp[:, p::2, q::2, :][:, :hs, :ws, :]
            ph = jnp.pad(ph, ((0, 0), (0, hs - ph.shape[1]),
                              (0, ws - ph.shape[2]), (0, 0)))
            phases.append(ph)
    return jnp.concatenate(phases, axis=1).astype(jnp.bfloat16)


def residual_block_forward(x_nchw, params, first_stride):
    """Pallas implementation of ResidualBlock.forward (training-mode BN)."""
    B, Cin, H, W = x_nchw.shape
    Cout = params["w1"].shape[0]
    OH = 1 + (H - 1) // first_stride
    OW = 1 + (W - 1) // first_stride
    cpi = _round_up(Cin, LANE)
    cpo = _round_up(Cout, LANE)
    n = B * OH * OW                              # BN sample count per channel

    # NHWC, channel-padded master copy (f32).
    x = jnp.transpose(x_nchw, (0, 2, 3, 1))
    x = jnp.pad(x, ((0, 0), (0, 0), (0, 0), (0, cpi - Cin)))

    # ---- left branch: conv1 (3x3, stride s, pad 1) + BN stats ---------------
    w1 = _prep_w3x3(params["w1"], cpi, cpo)
    g1, b1 = _prep_gb(params["g1"], params["b1"], cpo)
    if first_stride == 1:
        assert Cin == Cout, "identity skip requires in_feats == out_feats"
        xph = jnp.pad(x, ((0, 0), (1, 1), (1, 1), (0, 0))).astype(jnp.bfloat16)
        y1, s1, q1 = conv3x3_stats(xph, w1, OH, OW, _TAPS_S1, oy_max=2, hs=OH + 2)
    else:
        xph = _make_phases(x, OH, OW)
        y1, s1, q1 = conv3x3_stats(xph, w1, OH, OW, _TAPS_S2, oy_max=1, hs=OH + 1)
    sc1, sh1 = _scale_shift(s1, q1, n, g1, b1)

    # ---- BN1 + ReLU fused with conv2's zero halo pad (bf16 output) ----------
    hpad = bn_relu_pad(y1, sc1.reshape(1, -1), sh1.reshape(1, -1))

    # ---- conv2 (3x3, stride 1, pad 1) + BN stats -----------------------------
    w2 = _prep_w3x3(params["w2"], cpo, cpo)
    g2, b2 = _prep_gb(params["g2"], params["b2"], cpo)
    y2, s2, q2 = conv3x3_stats(hpad, w2, OH, OW, _TAPS_S1, oy_max=2, hs=OH + 2)
    sc2, sh2 = _scale_shift(s2, q2, n, g2, b2)

    # ---- right branch --------------------------------------------------------
    if first_stride > 1:
        wd = _prep_w1x1(params["wd"], cpi, cpo)
        gd, bd = _prep_gb(params["gd"], params["bd"], cpo)
        xd = x[:, ::first_stride, ::first_stride, :]
        r, sd, qd = matmul_stats(xd.reshape(n, cpi).astype(jnp.bfloat16), wd)
        scr, shr = _scale_shift(sd, qd, n, gd, bd)
    else:
        r = x.reshape(n, cpi)                    # identity (cpi == cpo)
        scr = jnp.ones((cpo,), jnp.float32)
        shr = jnp.zeros((cpo,), jnp.float32)

    # ---- BN2(left) + BN_r(right) + add + ReLU (single fused pass) ------------
    out = bn_add_relu(y2.reshape(n, cpo), r,
                      sc2.reshape(1, -1), sh2.reshape(1, -1),
                      scr.reshape(1, -1), shr.reshape(1, -1))
    out = out.reshape(B, OH, OW, cpo)[:, :, :, :Cout]
    # TODO(synk): fusing the cpo->Cout slice / NCHW transpose into the epilogue
    # output spec would make the final store lane-sparse for typical ResNet
    # widths, so it stays an XLA epilogue here.
    return jnp.transpose(out, (0, 3, 1, 2))


# ------------------------- pure-JAX reference ------------------------------

def _ref_conv(x_nchw, w, stride, pad):
    return jax.lax.conv_general_dilated(
        x_nchw, w, (stride, stride), ((pad, pad), (pad, pad)),
        dimension_numbers=("NCHW", "OIHW", "NCHW"))


def _ref_bn(y, g, b):
    mean = jnp.mean(y, axis=(0, 2, 3), keepdims=True)
    var = jnp.mean((y - mean) ** 2, axis=(0, 2, 3), keepdims=True)
    return (y - mean) / jnp.sqrt(var + EPS) * g.reshape(1, -1, 1, 1) + b.reshape(1, -1, 1, 1)


def residual_block_ref(x, params, first_stride):
    h = jnp.maximum(_ref_bn(_ref_conv(x, params["w1"], first_stride, 1),
                            params["g1"], params["b1"]), 0.0)
    h = _ref_bn(_ref_conv(h, params["w2"], 1, 1), params["g2"], params["b2"])
    if first_stride > 1:
        r = _ref_bn(_ref_conv(x, params["wd"], first_stride, 0),
                    params["gd"], params["bd"])
    else:
        r = x
    return jnp.maximum(h + r, 0.0)


# ------------------------------ params ------------------------------------

def init_params(key, in_feats, out_feats, first_stride):
    k1, k2, k3 = jax.random.split(key, 3)
    a1 = 1.0 / math.sqrt(3 * 3 * in_feats)
    a2 = 1.0 / math.sqrt(3 * 3 * out_feats)
    params = {
        "w1": jax.random.uniform(k1, (out_feats, in_feats, 3, 3), jnp.float32, -a1, a1),
        "g1": jnp.ones((out_feats,), jnp.float32),
        "b1": jnp.zeros((out_feats,), jnp.float32),
        "w2": jax.random.uniform(k2, (out_feats, out_feats, 3, 3), jnp.float32, -a2, a2),
        "g2": jnp.ones((out_feats,), jnp.float32),
        "b2": jnp.zeros((out_feats,), jnp.float32),
    }
    if first_stride > 1:
        ad = 1.0 / math.sqrt(in_feats)
        params.update({
            "wd": jax.random.uniform(k3, (out_feats, in_feats, 1, 1), jnp.float32, -ad, ad),
            "gd": jnp.ones((out_feats,), jnp.float32),
            "bd": jnp.zeros((out_feats,), jnp.float32),
        })
    return params


# -------------------------------- main -------------------------------------

if __name__ == "__main__":
    key = jax.random.PRNGKey(0)
    kx1, kx3, kp1, kp2, kp3 = jax.random.split(key, 5)

    fwd = jax.jit(residual_block_forward, static_argnums=2)

    # bf16 MXU operands (f32 accumulation) -> loosen tolerance vs f32 reference.
    TOL = 5e-2

    # case 1: identity skip (in_feats == out_feats, stride 1)
    B, Cin, H, W = 2, 4, 16, 16
    x1 = jax.random.normal(kx1, (B, Cin, H, W), jnp.float32)
    params1 = init_params(kp1, Cin, Cin, 1)
    y1 = jax.block_until_ready(fwd(x1, params1, 1))
    assert y1.shape == (B, Cin, H, W)
    np.testing.assert_allclose(np.asarray(y1),
                               np.asarray(residual_block_ref(x1, params1, 1)),
                               rtol=TOL, atol=TOL)

    # case 2: downsampling block (stride 2, channel expansion)
    Cout = 8
    params2 = init_params(kp2, Cin, Cout, 2)
    y2 = jax.block_until_ready(fwd(x1, params2, 2))
    assert y2.shape == (B, Cout, H // 2, W // 2)
    np.testing.assert_allclose(np.asarray(y2),
                               np.asarray(residual_block_ref(x1, params2, 2)),
                               rtol=TOL, atol=TOL)

    # case 3: stride-1 block exercising multiple conv row tiles / epilogue tiles
    B3, C3, H3, W3 = 2, 8, 24, 24
    x3 = jax.random.normal(kx3, (B3, C3, H3, W3), jnp.float32)
    params3 = init_params(kp3, C3, C3, 1)
    y3 = jax.block_until_ready(fwd(x3, params3, 1))
    assert y3.shape == (B3, C3, H3, W3)
    np.testing.assert_allclose(np.asarray(y3),
                               np.asarray(residual_block_ref(x3, params3, 1)),
                               rtol=TOL, atol=TOL)

    print("KERNEL_OK")
</pallas_src>

<mosaic_0001>
module attributes {stable_mosaic.version = 11 : i64} {
  func.func @_conv_taps_kernel(%arg0: i32, %arg1: i32, %arg2: memref<1x18x18x128xbf16, #tpu.memory_space<vmem>>, %arg3: memref<1152x128xbf16, #tpu.memory_space<vmem>>, %arg4: memref<1x16x16x128xbf16, #tpu.memory_space<vmem>>, %arg5: memref<1x1x8x128xf32, #tpu.memory_space<vmem>>, %arg6: memref<1x1x8x128xf32, #tpu.memory_space<vmem>>) attributes {dimension_semantics = [#tpu.dimension_semantics<parallel>, #tpu.dimension_semantics<parallel>], iteration_bounds = array<i64: 2, 1>, scalar_prefetch = 0 : i64, scratch_operands = 0 : i64, tpu.core_type = #tpu.core_type<tc>, window_params = [{transform_indices = @transform_0, window_bounds = array<i64: 1, 18, 18, 128>}, {pipeline_mode = #tpu.pipeline_mode<synchronous>, transform_indices = @transform_1, window_bounds = array<i64: 1152, 128>}, {transform_indices = @transform_2, window_bounds = array<i64: 1, 16, 16, 128>}, {transform_indices = @transform_3, window_bounds = array<i64: 1, 1, 8, 128>}, {transform_indices = @transform_4, window_bounds = array<i64: 1, 1, 8, 128>}]} {
    %c16_i32 = arith.constant 16 : i32
    %0 = arith.muli %arg1, %c16_i32 : i32
    %1 = tpu.assume_multiple %0, 16 : i32
    %c0_i32 = arith.constant 0 : i32
    %2 = arith.addi %c0_i32, %1 : i32
    %c0 = arith.constant 0 : index
    %3 = arith.index_cast %2 : i32 to index
    %c0_0 = arith.constant 0 : index
    %c0_1 = arith.constant 0 : index
    %4 = vector.load %arg2[%c0, %3, %c0_0, %c0_1] : memref<1x18x18x128xbf16, #tpu.memory_space<vmem>>, vector<1x18x18x128xbf16>
    %5 = vector.shape_cast %4 : vector<1x18x18x128xbf16> to vector<18x18x128xbf16>
    %6 = vector.extract_strided_slice %5 {offsets = [0, 0, 0], sizes = [18, 16, 128], strides = [1, 1, 1]} : vector<18x18x128xbf16> to vector<18x16x128xbf16>
    %7 = vector.extract_strided_slice %6 {offsets = [0, 0, 0], sizes = [16, 16, 128], strides = [1, 1, 1]} : vector<18x16x128xbf16> to vector<16x16x128xbf16>
    %8 = vector.shape_cast %7 : vector<16x16x128xbf16> to vector<256x128xbf16>
    %9 = vector.extract_strided_slice %5 {offsets = [0, 1, 0], sizes = [18, 16, 128], strides = [1, 1, 1]} : vector<18x18x128xbf16> to vector<18x16x128xbf16>
    %10 = vector.extract_strided_slice %9 {offsets = [0, 0, 0], sizes = [16, 16, 128], strides = [1, 1, 1]} : vector<18x16x128xbf16> to vector<16x16x128xbf16>
    %11 = vector.shape_cast %10 : vector<16x16x128xbf16> to vector<256x128xbf16>
    %12 = vector.extract_strided_slice %5 {offsets = [0, 2, 0], sizes = [18, 16, 128], strides = [1, 1, 1]} : vector<18x18x128xbf16> to vector<18x16x128xbf16>
    %13 = vector.extract_strided_slice %12 {offsets = [0, 0, 0], sizes = [16, 16, 128], strides = [1, 1, 1]} : vector<18x16x128xbf16> to vector<16x16x128xbf16>
    %14 = vector.shape_cast %13 : vector<16x16x128xbf16> to vector<256x128xbf16>
    %15 = vector.extract_strided_slice %6 {offsets = [1, 0, 0], sizes = [16, 16, 128], strides = [1, 1, 1]} : vector<18x16x128xbf16> to vector<16x16x128xbf16>
    %16 = vector.shape_cast %15 : vector<16x16x128xbf16> to vector<256x128xbf16>
    %17 = vector.extract_strided_slice %9 {offsets = [1, 0, 0], sizes = [16, 16, 128], strides = [1, 1, 1]} : vector<18x16x128xbf16> to vector<16x16x128xbf16>
    %18 = vector.shape_cast %17 : vector<16x16x128xbf16> to vector<256x128xbf16>
    %19 = vector.extract_strided_slice %12 {offsets = [1, 0, 0], sizes = [16, 16, 128], strides = [1, 1, 1]} : vector<18x16x128xbf16> to vector<16x16x128xbf16>
    %20 = vector.shape_cast %19 : vector<16x16x128xbf16> to vector<256x128xbf16>
    %21 = vector.extract_strided_slice %6 {offsets = [2, 0, 0], sizes = [16, 16, 128], strides = [1, 1, 1]} : vector<18x16x128xbf16> to vector<16x16x128xbf16>
    %22 = vector.shape_cast %21 : vector<16x16x128xbf16> to vector<256x128xbf16>
    %23 = vector.extract_strided_slice %9 {offsets = [2, 0, 0], sizes = [16, 16, 128], strides = [1, 1, 1]} : vector<18x16x128xbf16> to vector<16x16x128xbf16>
    %24 = vector.shape_cast %23 : vector<16x16x128xbf16> to vector<256x128xbf16>
    %25 = vector.extract_strided_slice %12 {offsets = [2, 0, 0], sizes = [16, 16, 128], strides = [1, 1, 1]} : vector<18x16x128xbf16> to vector<16x16x128xbf16>
    %26 = vector.shape_cast %25 : vector<16x16x128xbf16> to vector<256x128xbf16>
    %27 = tpu.concatenate %8, %11, %14, %16, %18, %20, %22, %24, %26 in 1 : vector<256x128xbf16>, vector<256x128xbf16>, vector<256x128xbf16>, vector<256x128xbf16>, vector<256x128xbf16>, vector<256x128xbf16>, vector<256x128xbf16>, vector<256x128xbf16>, vector<256x128xbf16> -> vector<256x1152xbf16>
    %c0_2 = arith.constant 0 : index
    %c0_3 = arith.constant 0 : index
    %28 = vector.load %arg3[%c0_2, %c0_3] : memref<1152x128xbf16, #tpu.memory_space<vmem>>, vector<1152x128xbf16>
    %cst = arith.constant dense<0.000000e+00> : vector<256x128xf32>
    %29 = tpu.matmul %27, %28, %cst {dimension_numbers = #tpu.dot_dimension_numbers<[1], [0], [0], [1], [0, 0, 1, 1], [], []>} : vector<256x1152xbf16>, vector<1152x128xbf16>, vector<256x128xf32> -> vector<256x128xf32>
    %30 = vector.shape_cast %29 : vector<256x128xf32> to vector<16x16x128xf32>
    %31 = arith.truncf %30 : vector<16x16x128xf32> to vector<16x16x128xbf16>
    %c0_4 = arith.constant 0 : index
    %c0_5 = arith.constant 0 : index
    %c0_6 = arith.constant 0 : index
    %c0_7 = arith.constant 0 : index
    %32 = vector.load %arg4[%c0_4, %c0_5, %c0_6, %c0_7] : memref<1x16x16x128xbf16, #tpu.memory_space<vmem>>, vector<1x16x16x128xbf16>
    %33 = vector.shape_cast %32 : vector<1x16x16x128xbf16> to vector<16x16x128xbf16>
    %34 = vector.shape_cast %31 : vector<16x16x128xbf16> to vector<1x16x16x128xbf16>
    tpu.vector_store %arg4[%c0_4, %c0_5, %c0_6, %c0_7], %34 {strides = array<i32>} : memref<1x16x16x128xbf16, #tpu.memory_space<vmem>>, vector<1x16x16x128xbf16>,
    %cst_8 = arith.constant dense<0.000000e+00> : vector<128xf32>
    %35 = vector.multi_reduction <add>, %29, %cst_8 [0] : vector<256x128xf32> to vector<128xf32>
    %36 = vector.shape_cast %35 : vector<128xf32> to vector<1x128xf32>
    %37 = vector.shape_cast %36 : vector<1x128xf32> to vector<1x128xf32>
    %38 = vector.broadcast %37 : vector<1x128xf32> to vector<8x128xf32>
    %c0_9 = arith.constant 0 : index
    %c0_10 = arith.constant 0 : index
    %c0_11 = arith.constant 0 : index
    %c0_12 = arith.constant 0 : index
    %39 = vector.load %arg5[%c0_9, %c0_10, %c0_11, %c0_12] : memref<1x1x8x128xf32, #tpu.memory_space<vmem>>, vector<1x1x8x128xf32>
    %40 = vector.shape_cast %39 : vector<1x1x8x128xf32> to vector<8x128xf32>
    %41 = vector.shape_cast %38 : vector<8x128xf32> to vector<1x1x8x128xf32>
    tpu.vector_store %arg5[%c0_9, %c0_10, %c0_11, %c0_12], %41 {strides = array<i32>} : memref<1x1x8x128xf32, #tpu.memory_space<vmem>>, vector<1x1x8x128xf32>,
    %42 = arith.mulf %29, %29 : vector<256x128xf32>
    %cst_13 = arith.constant dense<0.000000e+00> : vector<128xf32>
    %43 = vector.multi_reduction <add>, %42, %cst_13 [0] : vector<256x128xf32> to vector<128xf32>
    %44 = vector.shape_cast %43 : vector<128xf32> to vector<1x128xf32>
    %45 = vector.shape_cast %44 : vector<1x128xf32> to vector<1x128xf32>
    %46 = vector.broadcast %45 : vector<1x128xf32> to vector<8x128xf32>
    %c0_14 = arith.constant 0 : index
    %c0_15 = arith.constant 0 : index
    %c0_16 = arith.constant 0 : index
    %c0_17 = arith.constant 0 : index
    %47 = vector.load %arg6[%c0_14, %c0_15, %c0_16, %c0_17] : memref<1x1x8x128xf32, #tpu.memory_space<vmem>>, vector<1x1x8x128xf32>
    %48 = vector.shape_cast %47 : vector<1x1x8x128xf32> to vector<8x128xf32>
    %49 = vector.shape_cast %46 : vector<8x128xf32> to vector<1x1x8x128xf32>
    tpu.vector_store %arg6[%c0_14, %c0_15, %c0_16, %c0_17], %49 {strides = array<i32>} : memref<1x1x8x128xf32, #tpu.memory_space<vmem>>, vector<1x1x8x128xf32>,
    return
  }
  func.func @transform_0(%arg0: i32, %arg1: i32) -> (i32, i32, i32, i32) {
    %c0_i32 = arith.constant 0 : i32
    %c0_i32_0 = arith.constant 0 : i32
    %c0_i32_1 = arith.constant 0 : i32
    %c0_i32_2 = arith.constant 0 : i32
    return %arg0, %c0_i32, %c0_i32_0, %c0_i32_1 : i32, i32, i32, i32
  }
  func.func @transform_1(%arg0: i32, %arg1: i32) -> (i32, i32) {
    %c0_i32 = arith.constant 0 : i32
    %c0_i32_0 = arith.constant 0 : i32
    %c0_i32_1 = arith.constant 0 : i32
    return %c0_i32, %c0_i32_0 : i32, i32
  }
  func.func @transform_2(%arg0: i32, %arg1: i32) -> (i32, i32, i32, i32) {
    %c0_i32 = arith.constant 0 : i32
    %c0_i32_0 = arith.constant 0 : i32
    %c0_i32_1 = arith.constant 0 : i32
    return %arg0, %arg1, %c0_i32, %c0_i32_0 : i32, i32, i32, i32
  }
  func.func @transform_3(%arg0: i32, %arg1: i32) -> (i32, i32, i32, i32) {
    %c0_i32 = arith.constant 0 : i32
    %c0_i32_0 = arith.constant 0 : i32
    %c0_i32_1 = arith.constant 0 : i32
    return %arg0, %arg1, %c0_i32, %c0_i32_0 : i32, i32, i32, i32
  }
  func.func @transform_4(%arg0: i32, %arg1: i32) -> (i32, i32, i32, i32) {
    %c0_i32 = arith.constant 0 : i32
    %c0_i32_0 = arith.constant 0 : i32
    %c0_i32_1 = arith.constant 0 : i32
    return %arg0, %arg1, %c0_i32, %c0_i32_0 : i32, i32, i32, i32
  }
}

module attributes {stable_mosaic.version = 11 : i64} {
  func.func @_bn_relu_pad_kernel(%arg0: i32, %arg1: memref<1x16x16x128xbf16, #tpu.memory_space<vmem>>, %arg2: memref<1x128xf32, #tpu.memory_space<vmem>>, %arg3: memref<1x128xf32, #tpu.memory_space<vmem>>, %arg4: memref<1x18x18x128xbf16, #tpu.memory_space<vmem>>) attributes {dimension_semantics = [#tpu.dimension_semantics<parallel>], iteration_bounds = array<i64: 2>, scalar_prefetch = 0 : i64, scratch_operands = 0 : i64, tpu.core_type = #tpu.core_type<tc>, window_params = [{transform_indices = @transform_0, window_bounds = array<i64: 1, 16, 16, 128>}, {pipeline_mode = #tpu.pipeline_mode<synchronous>, transform_indices = @transform_1, window_bounds = array<i64: 1, 128>}, {pipeline_mode = #tpu.pipeline_mode<synchronous>, transform_indices = @transform_2, window_bounds = array<i64: 1, 128>}, {transform_indices = @transform_3, window_bounds = array<i64: 1, 18, 18, 128>}]} {
    %c0 = arith.constant 0 : index
    %c0_0 = arith.constant 0 : index
    %c0_1 = arith.constant 0 : index
    %c0_2 = arith.constant 0 : index
    %0 = vector.load %arg1[%c0, %c0_0, %c0_1, %c0_2] : memref<1x16x16x128xbf16, #tpu.memory_space<vmem>>, vector<1x16x16x128xbf16>
    %1 = vector.shape_cast %0 : vector<1x16x16x128xbf16> to vector<16x16x128xbf16>
    %2 = arith.extf %1 : vector<16x16x128xbf16> to vector<16x16x128xf32>
    %c0_3 = arith.constant 0 : index
    %c0_4 = arith.constant 0 : index
    %3 = vector.load %arg2[%c0_3, %c0_4] : memref<1x128xf32, #tpu.memory_space<vmem>>, vector<1x128xf32>
    %4 = vector.shape_cast %3 : vector<1x128xf32> to vector<128xf32>
    %5 = vector.shape_cast %4 : vector<128xf32> to vector<1x1x128xf32>
    %6 = vector.broadcast %5 : vector<1x1x128xf32> to vector<16x16x128xf32>
    %7 = arith.mulf %2, %6 : vector<16x16x128xf32>
    %c0_5 = arith.constant 0 : index
    %c0_6 = arith.constant 0 : index
    %8 = vector.load %arg3[%c0_5, %c0_6] : memref<1x128xf32, #tpu.memory_space<vmem>>, vector<1x128xf32>
    %9 = vector.shape_cast %8 : vector<1x128xf32> to vector<128xf32>
    %10 = vector.shape_cast %9 : vector<128xf32> to vector<1x1x128xf32>
    %11 = vector.broadcast %10 : vector<1x1x128xf32> to vector<16x16x128xf32>
    %12 = arith.addf %7, %11 : vector<16x16x128xf32>
    %cst = arith.constant 0.000000e+00 : f32
    %13 = vector.broadcast %cst : f32 to vector<16x16x128xf32>
    %14 = arith.maximumf %12, %13 : vector<16x16x128xf32>
    %cst_7 = arith.constant 0.000000e+00 : bf16
    %15 = vector.broadcast %cst_7 : bf16 to vector<1x18x128xbf16>
    %cst_8 = arith.constant 0.000000e+00 : bf16
    %16 = vector.broadcast %cst_8 : bf16 to vector<16x1x128xbf16>
    %c0_9 = arith.constant 0 : index
    %c0_10 = arith.constant 0 : index
    %c0_11 = arith.constant 0 : index
    %c0_12 = arith.constant 0 : index
    %17 = vector.load %arg4[%c0_9, %c0_10, %c0_11, %c0_12] : memref<1x18x18x128xbf16, #tpu.memory_space<vmem>>, vector<1x1x18x128xbf16>
    %18 = vector.shape_cast %17 : vector<1x1x18x128xbf16> to vector<1x18x128xbf16>
    %19 = vector.shape_cast %15 : vector<1x18x128xbf16> to vector<1x1x18x128xbf16>
    tpu.vector_store %arg4[%c0_9, %c0_10, %c0_11, %c0_12], %19 {strides = array<i32>} : memref<1x18x18x128xbf16, #tpu.memory_space<vmem>>, vector<1x1x18x128xbf16>,
    %c0_13 = arith.constant 0 : index
    %c17 = arith.constant 17 : index
    %c0_14 = arith.constant 0 : index
    %c0_15 = arith.constant 0 : index
    %20 = vector.load %arg4[%c0_13, %c17, %c0_14, %c0_15] : memref<1x18x18x128xbf16, #tpu.memory_space<vmem>>, vector<1x1x18x128xbf16>
    %21 = vector.shape_cast %20 : vector<1x1x18x128xbf16> to vector<1x18x128xbf16>
    %22 = vector.shape_cast %15 : vector<1x18x128xbf16> to vector<1x1x18x128xbf16>
    tpu.vector_store %arg4[%c0_13, %c17, %c0_14, %c0_15], %22 {strides = array<i32>} : memref<1x18x18x128xbf16, #tpu.memory_space<vmem>>, vector<1x1x18x128xbf16>,
    %c0_16 = arith.constant 0 : index
    %c1 = arith.constant 1 : index
    %c0_17 = arith.constant 0 : index
    %c0_18 = arith.constant 0 : index
    %23 = vector.load %arg4[%c0_16, %c1, %c0_17, %c0_18] : memref<1x18x18x128xbf16, #tpu.memory_space<vmem>>, vector<1x16x1x128xbf16>
    %24 = vector.shape_cast %23 : vector<1x16x1x128xbf16> to vector<16x1x128xbf16>
    %25 = vector.shape_cast %16 : vector<16x1x128xbf16> to vector<1x16x1x128xbf16>
    tpu.vector_store %arg4[%c0_16, %c1, %c0_17, %c0_18], %25 {strides = array<i32>} : memref<1x18x18x128xbf16, #tpu.memory_space<vmem>>, vector<1x16x1x128xbf16>,
    %c0_19 = arith.constant 0 : index
    %c1_20 = arith.constant 1 : index
    %c17_21 = arith.constant 17 : index
    %c0_22 = arith.constant 0 : index
    %26 = vector.load %arg4[%c0_19, %c1_20, %c17_21, %c0_22] : memref<1x18x18x128xbf16, #tpu.memory_space<vmem>>, vector<1x16x1x128xbf16>
    %27 = vector.shape_cast %26 : vector<1x16x1x128xbf16> to vector<16x1x128xbf16>
    %28 = vector.shape_cast %16 : vector<16x1x128xbf16> to vector<1x16x1x128xbf16>
    tpu.vector_store %arg4[%c0_19, %c1_20, %c17_21, %c0_22], %28 {strides = array<i32>} : memref<1x18x18x128xbf16, #tpu.memory_space<vmem>>, vector<1x16x1x128xbf16>,
    %29 = arith.truncf %14 : vector<16x16x128xf32> to vector<16x16x128xbf16>
    %c0_23 = arith.constant 0 : index
    %c1_24 = arith.constant 1 : index
    %c1_25 = arith.constant 1 : index
    %c0_26 = arith.constant 0 : index
    %30 = vector.load %arg4[%c0_23, %c1_24, %c1_25, %c0_26] : memref<1x18x18x128xbf16, #tpu.memory_space<vmem>>, vector<1x16x16x128xbf16>
    %31 = vector.shape_cast %30 : vector<1x16x16x128xbf16> to vector<16x16x128xbf16>
    %32 = vector.shape_cast %29 : vector<16x16x128xbf16> to vector<1x16x16x128xbf16>
    tpu.vector_store %arg4[%c0_23, %c1_24, %c1_25, %c0_26], %32 {strides = array<i32>} : memref<1x18x18x128xbf16, #tpu.memory_space<vmem>>, vector<1x16x16x128xbf16>,
    return
  }
  func.func @transform_0(%arg0: i32) -> (i32, i32, i32, i32) {
    %c0_i32 = arith.constant 0 : i32
    %c0_i32_0 = arith.constant 0 : i32
    %c0_i32_1 = arith.constant 0 : i32
    %c0_i32_2 = arith.constant 0 : i32
    return %arg0, %c0_i32, %c0_i32_0, %c0_i32_1 : i32, i32, i32, i32
  }
  func.func @transform_1(%arg0: i32) -> (i32, i32) {
    %c0_i32 = arith.constant 0 : i32
    %c0_i32_0 = arith.constant 0 : i32
    %c0_i32_1 = arith.constant 0 : i32
    return %c0_i32, %c0_i32_0 : i32, i32
  }
  func.func @transform_2(%arg0: i32) -> (i32, i32) {
    %c0_i32 = arith.constant 0 : i32
    %c0_i32_0 = arith.constant 0 : i32
    %c0_i32_1 = arith.constant 0 : i32
    return %c0_i32, %c0_i32_0 : i32, i32
  }
  func.func @transform_3(%arg0: i32) -> (i32, i32, i32, i32) {
    %c0_i32 = arith.constant 0 : i32
    %c0_i32_0 = arith.constant 0 : i32
    %c0_i32_1 = arith.constant 0 : i32
    %c0_i32_2 = arith.constant 0 : i32
    return %arg0, %c0_i32, %c0_i32_0, %c0_i32_1 : i32, i32, i32, i32
  }
}

module attributes {stable_mosaic.version = 11 : i64} {
  func.func @_bn_add_relu_kernel(%arg0: i32, %arg1: memref<512x128xbf16, #tpu.memory_space<vmem>>, %arg2: memref<512x128xf32, #tpu.memory_space<vmem>>, %arg3: memref<1x128xf32, #tpu.memory_space<vmem>>, %arg4: memref<1x128xf32, #tpu.memory_space<vmem>>, %arg5: memref<1x128xf32, #tpu.memory_space<vmem>>, %arg6: memref<1x128xf32, #tpu.memory_space<vmem>>, %arg7: memref<512x128xf32, #tpu.memory_space<vmem>>) attributes {dimension_semantics = [#tpu.dimension_semantics<parallel>], iteration_bounds = array<i64: 1>, scalar_prefetch = 0 : i64, scratch_operands = 0 : i64, tpu.core_type = #tpu.core_type<tc>, window_params = [{transform_indices = @transform_0, window_bounds = array<i64: 512, 128>}, {transform_indices = @transform_1, window_bounds = array<i64: 512, 128>}, {pipeline_mode = #tpu.pipeline_mode<synchronous>, transform_indices = @transform_2, window_bounds = array<i64: 1, 128>}, {pipeline_mode = #tpu.pipeline_mode<synchronous>, transform_indices = @transform_3, window_bounds = array<i64: 1, 128>}, {pipeline_mode = #tpu.pipeline_mode<synchronous>, transform_indices = @transform_4, window_bounds = array<i64: 1, 128>}, {pipeline_mode = #tpu.pipeline_mode<synchronous>, transform_indices = @transform_5, window_bounds = array<i64: 1, 128>}, {transform_indices = @transform_6, window_bounds = array<i64: 512, 128>}]} {
    %c0 = arith.constant 0 : index
    %c0_0 = arith.constant 0 : index
    %0 = vector.load %arg1[%c0, %c0_0] : memref<512x128xbf16, #tpu.memory_space<vmem>>, vector<512x128xbf16>
    %1 = arith.extf %0 : vector<512x128xbf16> to vector<512x128xf32>
    %c0_1 = arith.constant 0 : index
    %c0_2 = arith.constant 0 : index
    %2 = vector.load %arg3[%c0_1, %c0_2] : memref<1x128xf32, #tpu.memory_space<vmem>>, vector<1x128xf32>
    %3 = vector.broadcast %2 : vector<1x128xf32> to vector<512x128xf32>
    %4 = arith.mulf %1, %3 : vector<512x128xf32>
    %c0_3 = arith.constant 0 : index
    %c0_4 = arith.constant 0 : index
    %5 = vector.load %arg4[%c0_3, %c0_4] : memref<1x128xf32, #tpu.memory_space<vmem>>, vector<1x128xf32>
    %6 = vector.broadcast %5 : vector<1x128xf32> to vector<512x128xf32>
    %7 = arith.addf %4, %6 : vector<512x128xf32>
    %c0_5 = arith.constant 0 : index
    %c0_6 = arith.constant 0 : index
    %8 = vector.load %arg2[%c0_5, %c0_6] : memref<512x128xf32, #tpu.memory_space<vmem>>, vector<512x128xf32>
    %c0_7 = arith.constant 0 : index
    %c0_8 = arith.constant 0 : index
    %9 = vector.load %arg5[%c0_7, %c0_8] : memref<1x128xf32, #tpu.memory_space<vmem>>, vector<1x128xf32>
    %10 = vector.broadcast %9 : vector<1x128xf32> to vector<512x128xf32>
    %11 = arith.mulf %8, %10 : vector<512x128xf32>
    %c0_9 = arith.constant 0 : index
    %c0_10 = arith.constant 0 : index
    %12 = vector.load %arg6[%c0_9, %c0_10] : memref<1x128xf32, #tpu.memory_space<vmem>>, vector<1x128xf32>
    %13 = vector.broadcast %12 : vector<1x128xf32> to vector<512x128xf32>
    %14 = arith.addf %11, %13 : vector<512x128xf32>
    %15 = arith.addf %7, %14 : vector<512x128xf32>
    %cst = arith.constant 0.000000e+00 : f32
    %16 = vector.broadcast %cst : f32 to vector<512x128xf32>
    %17 = arith.maximumf %15, %16 : vector<512x128xf32>
    %c0_11 = arith.constant 0 : index
    %c0_12 = arith.constant 0 : index
    %18 = vector.load %arg7[%c0_11, %c0_12] : memref<512x128xf32, #tpu.memory_space<vmem>>, vector<512x128xf32>
    tpu.vector_store %arg7[%c0_11, %c0_12], %17 {strides = array<i32>} : memref<512x128xf32, #tpu.memory_space<vmem>>, vector<512x128xf32>,
    return
  }
  func.func @transform_0(%arg0: i32) -> (i32, i32) {
    %c0_i32 = arith.constant 0 : i32
    %c0_i32_0 = arith.constant 0 : i32
    return %arg0, %c0_i32 : i32, i32
  }
  func.func @transform_1(%arg0: i32) -> (i32, i32) {
    %c0_i32 = arith.constant 0 : i32
    %c0_i32_0 = arith.constant 0 : i32
    return %arg0, %c0_i32 : i32, i32
  }
  func.func @transform_2(%arg0: i32) -> (i32, i32) {
    %c0_i32 = arith.constant 0 : i32
    %c0_i32_0 = arith.constant 0 : i32
    %c0_i32_1 = arith.constant 0 : i32
    return %c0_i32, %c0_i32_0 : i32, i32
  }
  func.func @transform_3(%arg0: i32) -> (i32, i32) {
    %c0_i32 = arith.constant 0 : i32
    %c0_i32_0 = arith.constant 0 : i32
    %c0_i32_1 = arith.constant 0 : i32
    return %c0_i32, %c0_i32_0 : i32, i32
  }
  func.func @transform_4(%arg0: i32) -> (i32, i32) {
    %c0_i32 = arith.constant 0 : i32
    %c0_i32_0 = arith.constant 0 : i32
    %c0_i32_1 = arith.constant 0 : i32
    return %c0_i32, %c0_i32_0 : i32, i32
  }
  func.func @transform_5(%arg0: i32) -> (i32, i32) {
    %c0_i32 = arith.constant 0 : i32
    %c0_i32_0 = arith.constant 0 : i32
    %c0_i32_1 = arith.constant 0 : i32
    return %c0_i32, %c0_i32_0 : i32, i32
  }
  func.func @transform_6(%arg0: i32) -> (i32, i32) {
    %c0_i32 = arith.constant 0 : i32
    %c0_i32_0 = arith.constant 0 : i32
    return %arg0, %c0_i32 : i32, i32
  }
}

</mosaic_0001>

<bundles_post_ra>
// kernel: residual_block_forward.7
= control target key start
LH: loop header
LB: loop body
LE: loop exit
PB: predicated region body
PF: predicated region fallthrough
CT: control target
= control target key end

     0   :  { %s1673_s0 = inlined_call_operand.vmem [shape: bf16[512,128], index: 0, kind: input, shape index: {}]   ;;  %s1674_s1 = inlined_call_operand.vmem [shape: f32[512,128], index: 1, kind: input, shape index: {}]   ;;  %s1675_s2 = inlined_call_operand.vmem [shape: f32[1,128], index: 2, kind: input, shape index: {}]   ;;  %s1676_s3 = inlined_call_operand.vmem [shape: f32[1,128], index: 3, kind: input, shape index: {}]   ;;  %s1677_s4 = inlined_call_operand.vmem [shape: f32[1,128], index: 4, kind: input, shape index: {}]   ;;  %s1678_s5 = inlined_call_operand.vmem [shape: f32[1,128], index: 5, kind: input, shape index: {}]   ;;  %s1679_s6 = inlined_call_operand.vmem [shape: f32[512,128], index: 6, kind: output, shape index: {}]  }
   0x1   :  { %v700_v0 = vld [vmem:[%s1673_s0] sm:$0xff]   ;;  %v294_v9 = vld [vmem:[%s1674_s1 + $0x8] sm:$0xff]  ;;  %v295_v11 = vld [vmem:[%s1674_s1 + $0x10] sm:$0xff] }
   0x2   :  { %v903_v1 = vld [vmem:[%s1675_s2] ss:$0 sm:$0xff]  ;;  %v701_v3 = vunpack.c.l.bf16 %v700_v0  ;;  %v702_v7 = vunpack.c.h.bf16 %v700_v0  ;;  %v827_v10 = vld [vmem:[%s1673_s0 + $0x8] sm:$0xff]   ;;  %v296_v16 = vld [vmem:[%s1674_s1 + $0x18] sm:$0xff] }
   0x3   :  { %v908_v2 = vld [vmem:[%s1676_s3] ss:$0 sm:$0xff]  ;;  %v705_v15 = vunpack.c.l.bf16 %v827_v10  ;;  %v828_v17 = vld [vmem:[%s1673_s0 + $0x10] sm:$0xff]   ;;  %v706_v20 = vunpack.c.h.bf16 %v827_v10  ;;  %v298_v27 = vld [vmem:[%s1674_s1 + $0x28] sm:$0xff] }
   0x4   :  { %v293_v4 = vld [vmem:[%s1674_s1] sm:$0xff]  ;;  %v158_v12 = vmul.f32 %v701_v3, %v903_v1  ;;  %v159_v13 = vmul.f32 %v702_v7, %v903_v1  ;;  %v709_v31 = vunpack.c.l.bf16 %v828_v17  ;;  %v710_v38 = vunpack.c.h.bf16 %v828_v17  ;;  %v829_v40 = vld [vmem:[%s1673_s0 + $0x18] sm:$0xff]   ;;  %v299_v41 = vld [vmem:[%s1674_s1 + $0x30] sm:$0xff] }
   0x5   :  { %v916_v5 = vld [vmem:[%s1677_s4] ss:$0 sm:$0xff]  ;;  %v160_v26 = vmul.f32 %v705_v15, %v903_v1  ;;  %v161_v29 = vmul.f32 %v706_v20, %v903_v1  ;;  %v300_v46 = vld [vmem:[%s1674_s1 + $0x38] sm:$0xff]  ;;  %v713_v53 = vunpack.c.l.bf16 %v829_v40  ;;  %v714_v55 = vunpack.c.h.bf16 %v829_v40  ;;  %v302_v3 = vld [vmem:[%s1674_s1 + $0x48] sm:$0xff] }
   0x6   :  { %v921_v6 = vld [vmem:[%s1678_s5] ss:$0 sm:$0xff]  ;;  %v364_v8 = vmul.f32 %v916_v5, %v293_v4  ;;  %v365_v14 = vmul.f32 %v916_v5, %v294_v9  ;;  %v366_v19 = vmul.f32 %v916_v5, %v295_v11  ;;  %v367_v21 = vmul.f32 %v916_v5, %v296_v16  ;;  %v831_v4 = vld [vmem:[%s1673_s0 + $0x28] sm:$0xff]   ;;  %v303_v15 = vld [vmem:[%s1674_s1 + $0x50] sm:$0xff] }
   0x7   :  { %v297_v22 = vld [vmem:[%s1674_s1 + $0x20] sm:$0xff]  ;;  %v229_v23 = vadd.f32 %v908_v2, %v158_v12  ;;  %v230_v24 = vadd.f32 %v908_v2, %v159_v13  ;;  %v231_v34 = vadd.f32 %v908_v2, %v160_v26  ;;  %v232_v36 = vadd.f32 %v908_v2, %v161_v29  ;;  %v832_v29 = vld [vmem:[%s1673_s0 + $0x30] sm:$0xff]  }
   0x8   :  { %v435_v18 = vadd.f32 %v921_v6, %v364_v8  ;;  %v436_v25 = vadd.f32 %v921_v6, %v365_v14  ;;  %v437_v28 = vadd.f32 %v921_v6, %v366_v19  ;;  %v438_v30 = vadd.f32 %v921_v6, %v367_v21  ;;  %v830_v51 = vld [vmem:[%s1673_s0 + $0x20] sm:$0xff]  }
   0x9   :  { %v368_v35 = vmul.f32 %v916_v5, %v297_v22  ;;  %v162_v37 = vmul.f32 %v709_v31, %v903_v1  ;;  %v369_v39 = vmul.f32 %v916_v5, %v298_v27  ;;  %v163_v49 = vmul.f32 %v710_v38, %v903_v1  ;;  %v301_v56 = vld [vmem:[%s1674_s1 + $0x40] sm:$0xff] }
   0xa   :  { %v499_v32 = vadd.f32 %v435_v18, %v229_v23  ;;  %v500_v33 = vadd.f32 %v436_v25, %v230_v24  ;;  %v501_v44 = vadd.f32 %v437_v28, %v231_v34  ;;  %v502_v47 = vadd.f32 %v438_v30, %v232_v36  ;;  %v304_v24 = vld [vmem:[%s1674_s1 + $0x58] sm:$0xff]  ;;  %v305_v30 = vld [vmem:[%s1674_s1 + $0x60] sm:$0xff] }
   0xb   :  { %v439_v45 = vadd.f32 %v921_v6, %v368_v35  ;;  %v233_v48 = vadd.f32 %v908_v2, %v162_v37  ;;  %v440_v50 = vadd.f32 %v921_v6, %v369_v39  ;;  %v370_v54 = vmul.f32 %v916_v5, %v299_v41  ;;  %v306_v39 = vld [vmem:[%s1674_s1 + $0x68] sm:$0xff] }
   0xc   :  { %v563_v42 = vmax.f32 %v499_v32, 0.0  ;;  %v564_v43 = vmax.f32 %v500_v33, 0.0  ;;  %v565_v52 = vmax.f32 %v501_v44, 0.0  ;;  %v566_v57 = vmax.f32 %v502_v47, 0.0  ;;  %v833_v44 = vld [vmem:[%s1673_s0 + $0x38] sm:$0xff]  }
   0xd   :  { %v503_v58 = vadd.f32 %v439_v45, %v233_v48  ;;  %v234_v59 = vadd.f32 %v908_v2, %v163_v49  ;;  %v371_v60 = vmul.f32 %v916_v5, %v300_v46  ;;  %v164_v61 = vmul.f32 %v713_v53, %v903_v1  ;;  %v307_v49 = vld [vmem:[%s1674_s1 + $0x70] sm:$0xff] }
   0xe   :  { %627 = vst [vmem:[%s1679_s6] sm:$0xff] %v563_v42  ;;  %628 = vst [vmem:[%s1679_s6 + $0x8] sm:$0xff] %v564_v43  ;;  %v441_v62 = vadd.f32 %v921_v6, %v370_v54  ;;  %v165_v63 = vmul.f32 %v714_v55, %v903_v1  ;;  %v717_v0 = vunpack.c.l.bf16 %v830_v51  ;;  %v372_v10 = vmul.f32 %v916_v5, %v301_v56  ;;  %v308_v54 = vld [vmem:[%s1674_s1 + $0x78] sm:$0xff] }
   0xf   :  { %629 = vst [vmem:[%s1679_s6 + $0x10] sm:$0xff] %v565_v52  ;;  %630 = vst [vmem:[%s1679_s6 + $0x18] sm:$0xff] %v566_v57  ;;  %v567_v7 = vmax.f32 %v503_v58, 0.0  ;;  %v504_v8 = vadd.f32 %v440_v50, %v234_v59  ;;  %v442_v9 = vadd.f32 %v921_v6, %v371_v60  ;;  %v235_v11 = vadd.f32 %v908_v2, %v164_v61  ;;  %v834_v59 = vld [vmem:[%s1673_s0 + $0x40] sm:$0xff]  }
  0x10   :  { %v236_v12 = vadd.f32 %v908_v2, %v165_v63  ;;  %v166_v13 = vmul.f32 %v717_v0, %v903_v1  ;;  %v718_v14 = vunpack.c.h.bf16 %v830_v51  ;;  %v443_v17 = vadd.f32 %v921_v6, %v372_v10  ;;  %v309_v0 = vld [vmem:[%s1674_s1 + $0x80] sm:$0xff] }
  0x11   :  { %631 = vst [vmem:[%s1679_s6 + $0x20] sm:$0xff] %v567_v7  ;;  %v568_v16 = vmax.f32 %v504_v8, 0.0  ;;  %v373_v18 = vmul.f32 %v916_v5, %v302_v3  ;;  %v721_v19 = vunpack.c.l.bf16 %v831_v4  ;;  %v505_v20 = vadd.f32 %v441_v62, %v235_v11 }
  0x12   :  { %v506_v21 = vadd.f32 %v442_v9, %v236_v12  ;;  %v237_v22 = vadd.f32 %v908_v2, %v166_v13  ;;  %v167_v23 = vmul.f32 %v718_v14, %v903_v1  ;;  %v374_v27 = vmul.f32 %v916_v5, %v303_v15  ;;  %v310_v13 = vld [vmem:[%s1674_s1 + $0x88] sm:$0xff] }
  0x13   :  { %632 = vst [vmem:[%s1679_s6 + $0x28] sm:$0xff] %v568_v16  ;;  %v444_v25 = vadd.f32 %v921_v6, %v373_v18  ;;  %v168_v26 = vmul.f32 %v721_v19, %v903_v1  ;;  %v722_v28 = vunpack.c.h.bf16 %v831_v4  ;;  %v569_v31 = vmax.f32 %v505_v20, 0.0  ;;  %v835_v18 = vld [vmem:[%s1673_s0 + $0x48] sm:$0xff]  }
  0x14   :  { %v570_v32 = vmax.f32 %v506_v21, 0.0  ;;  %v507_v33 = vadd.f32 %v443_v17, %v237_v22  ;;  %v238_v34 = vadd.f32 %v908_v2, %v167_v23  ;;  %v445_v36 = vadd.f32 %v921_v6, %v374_v27  ;;  %v311_v23 = vld [vmem:[%s1674_s1 + $0x90] sm:$0xff] }
  0x15   :  { %v239_v35 = vadd.f32 %v908_v2, %v168_v26  ;;  %v169_v37 = vmul.f32 %v722_v28, %v903_v1  ;;  %v375_v38 = vmul.f32 %v916_v5, %v304_v24  ;;  %633 = vst [vmem:[%s1679_s6 + $0x30] sm:$0xff] %v569_v31  ;;  %v725_v42 = vunpack.c.l.bf16 %v832_v29 }
  0x16   :  { %634 = vst [vmem:[%s1679_s6 + $0x38] sm:$0xff] %v570_v32  ;;  %v571_v40 = vmax.f32 %v507_v33, 0.0  ;;  %v508_v41 = vadd.f32 %v444_v25, %v238_v34  ;;  %v376_v43 = vmul.f32 %v916_v5, %v305_v30  ;;  %v726_v48 = vunpack.c.h.bf16 %v832_v29  ;;  %v312_v32 = vld [vmem:[%s1674_s1 + $0x98] sm:$0xff]  ;;  %v836_v33 = vld [vmem:[%s1673_s0 + $0x50] sm:$0xff]  }
  0x17   :  { %v509_v45 = vadd.f32 %v445_v36, %v239_v35  ;;  %v240_v46 = vadd.f32 %v908_v2, %v169_v37  ;;  %v446_v47 = vadd.f32 %v921_v6, %v375_v38  ;;  %v170_v51 = vmul.f32 %v725_v42, %v903_v1  ;;  %v313_v38 = vld [vmem:[%s1674_s1 + $0xa0] sm:$0xff] }
  0x18   :  { %635 = vst [vmem:[%s1679_s6 + $0x40] sm:$0xff] %v571_v40  ;;  %v572_v50 = vmax.f32 %v508_v41, 0.0  ;;  %v447_v52 = vadd.f32 %v921_v6, %v376_v43  ;;  %v377_v53 = vmul.f32 %v916_v5, %v306_v39  ;;  %v171_v57 = vmul.f32 %v726_v48, %v903_v1 }
  0x19   :  { %v573_v55 = vmax.f32 %v509_v45, 0.0  ;;  %v510_v56 = vadd.f32 %v446_v47, %v240_v46  ;;  %v729_v58 = vunpack.c.l.bf16 %v833_v44  ;;  %v241_v60 = vadd.f32 %v908_v2, %v170_v51  ;;  %v314_v47 = vld [vmem:[%s1674_s1 + $0xa8] sm:$0xff] }
  0x1a   :  { %636 = vst [vmem:[%s1679_s6 + $0x48] sm:$0xff] %v572_v50  ;;  %v448_v61 = vadd.f32 %v921_v6, %v377_v53  ;;  %v378_v62 = vmul.f32 %v916_v5, %v307_v49  ;;  %v730_v63 = vunpack.c.h.bf16 %v833_v44  ;;  %v242_v4 = vadd.f32 %v908_v2, %v171_v57  ;;  %v315_v57 = vld [vmem:[%s1674_s1 + $0xb0] sm:$0xff] }
  0x1b   :  { %637 = vst [vmem:[%s1679_s6 + $0x50] sm:$0xff] %v573_v55  ;;  %v574_v3 = vmax.f32 %v510_v56, 0.0  ;;  %v172_v7 = vmul.f32 %v729_v58, %v903_v1  ;;  %v379_v8 = vmul.f32 %v916_v5, %v308_v54  ;;  %v511_v9 = vadd.f32 %v447_v52, %v241_v60  ;;  %v837_v52 = vld [vmem:[%s1673_s0 + $0x58] sm:$0xff]  }
  0x1c   :  { %v449_v10 = vadd.f32 %v921_v6, %v378_v62  ;;  %v173_v11 = vmul.f32 %v730_v63, %v903_v1  ;;  %v733_v12 = vunpack.c.l.bf16 %v834_v59  ;;  %v512_v14 = vadd.f32 %v448_v61, %v242_v4  ;;  %v316_v4 = vld [vmem:[%s1674_s1 + $0xb8] sm:$0xff] }
  0x1d   :  { %638 = vst [vmem:[%s1679_s6 + $0x58] sm:$0xff] %v574_v3  ;;  %v243_v15 = vadd.f32 %v908_v2, %v172_v7  ;;  %v450_v16 = vadd.f32 %v921_v6, %v379_v8  ;;  %v380_v17 = vmul.f32 %v916_v5, %v309_v0  ;;  %v575_v19 = vmax.f32 %v511_v9, 0.0  ;;  %v838_v7 = vld [vmem:[%s1673_s0 + $0x60] sm:$0xff]  }
  0x1e   :  { %v244_v20 = vadd.f32 %v908_v2, %v173_v11  ;;  %v174_v21 = vmul.f32 %v733_v12, %v903_v1  ;;  %v734_v22 = vunpack.c.h.bf16 %v834_v59  ;;  %v576_v24 = vmax.f32 %v512_v14, 0.0  ;;  %v317_v12 = vld [vmem:[%s1674_s1 + $0xc0] sm:$0xff] }
  0x1f   :  { %v513_v25 = vadd.f32 %v449_v10, %v243_v15  ;;  %v451_v26 = vadd.f32 %v921_v6, %v380_v17  ;;  %v381_v27 = vmul.f32 %v916_v5, %v310_v13  ;;  %639 = vst [vmem:[%s1679_s6 + $0x60] sm:$0xff] %v575_v19  ;;  %v737_v31 = vunpack.c.l.bf16 %v835_v18 }
  0x20   :  { %v514_v28 = vadd.f32 %v450_v16, %v244_v20  ;;  %v245_v29 = vadd.f32 %v908_v2, %v174_v21  ;;  %v175_v30 = vmul.f32 %v734_v22, %v903_v1  ;;  %640 = vst [vmem:[%s1679_s6 + $0x68] sm:$0xff] %v576_v24  ;;  %v382_v36 = vmul.f32 %v916_v5, %v311_v23  ;;  %v318_v21 = vld [vmem:[%s1674_s1 + $0xc8] sm:$0xff] }
  0x21   :  { %v577_v34 = vmax.f32 %v513_v25, 0.0  ;;  %v452_v35 = vadd.f32 %v921_v6, %v381_v27  ;;  %v738_v37 = vunpack.c.h.bf16 %v835_v18  ;;  %v176_v42 = vmul.f32 %v737_v31, %v903_v1  ;;  %v319_v31 = vld [vmem:[%s1674_s1 + $0xd0] sm:$0xff] }
  0x22   :  { %v578_v39 = vmax.f32 %v514_v28, 0.0  ;;  %v515_v40 = vadd.f32 %v451_v26, %v245_v29  ;;  %v246_v41 = vadd.f32 %v908_v2, %v175_v30  ;;  %v453_v43 = vadd.f32 %v921_v6, %v382_v36  ;;  %v839_v26 = vld [vmem:[%s1673_s0 + $0x68] sm:$0xff]  }
  0x23   :  { %641 = vst [vmem:[%s1679_s6 + $0x70] sm:$0xff] %v577_v34  ;;  %v177_v44 = vmul.f32 %v738_v37, %v903_v1  ;;  %v383_v45 = vmul.f32 %v916_v5, %v312_v32  ;;  %v741_v46 = vunpack.c.l.bf16 %v836_v33  ;;  %v247_v50 = vadd.f32 %v908_v2, %v176_v42 }
  0x24   :  { %642 = vst [vmem:[%s1679_s6 + $0x78] sm:$0xff] %v578_v39  ;;  %v579_v48 = vmax.f32 %v515_v40, 0.0  ;;  %v516_v49 = vadd.f32 %v452_v35, %v246_v41  ;;  %v384_v51 = vmul.f32 %v916_v5, %v313_v38  ;;  %v742_v56 = vunpack.c.h.bf16 %v836_v33  ;;  %v320_v40 = vld [vmem:[%s1674_s1 + $0xd8] sm:$0xff]  ;;  %v840_v41 = vld [vmem:[%s1673_s0 + $0x70] sm:$0xff]  }
  0x25   :  { %v248_v53 = vadd.f32 %v908_v2, %v177_v44  ;;  %v454_v54 = vadd.f32 %v921_v6, %v383_v45  ;;  %v178_v55 = vmul.f32 %v741_v46, %v903_v1  ;;  %v517_v59 = vadd.f32 %v453_v43, %v247_v50  ;;  %v321_v46 = vld [vmem:[%s1674_s1 + $0xe0] sm:$0xff] }
  0x26   :  { %643 = vst [vmem:[%s1679_s6 + $0x80] sm:$0xff] %v579_v48  ;;  %v580_v58 = vmax.f32 %v516_v49, 0.0  ;;  %v455_v60 = vadd.f32 %v921_v6, %v384_v51  ;;  %v385_v61 = vmul.f32 %v916_v5, %v314_v47  ;;  %v179_v0 = vmul.f32 %v742_v56, %v903_v1 }
  0x27   :  { %v518_v62 = vadd.f32 %v454_v54, %v248_v53  ;;  %v249_v63 = vadd.f32 %v908_v2, %v178_v55  ;;  %v745_v3 = vunpack.c.l.bf16 %v837_v52  ;;  %v581_v8 = vmax.f32 %v517_v59, 0.0  ;;  %v322_v55 = vld [vmem:[%s1674_s1 + $0xe8] sm:$0xff] }
  0x28   :  { %644 = vst [vmem:[%s1679_s6 + $0x88] sm:$0xff] %v580_v58  ;;  %v456_v9 = vadd.f32 %v921_v6, %v385_v61  ;;  %v386_v10 = vmul.f32 %v916_v5, %v315_v57  ;;  %v746_v11 = vunpack.c.h.bf16 %v837_v52  ;;  %v250_v15 = vadd.f32 %v908_v2, %v179_v0 }
  0x29   :  { %v582_v13 = vmax.f32 %v518_v62, 0.0  ;;  %v519_v14 = vadd.f32 %v455_v60, %v249_v63  ;;  %v180_v16 = vmul.f32 %v745_v3, %v903_v1  ;;  %645 = vst [vmem:[%s1679_s6 + $0x90] sm:$0xff] %v581_v8  ;;  %v387_v19 = vmul.f32 %v916_v5, %v316_v4  ;;  %v841_v60 = vld [vmem:[%s1673_s0 + $0x78] sm:$0xff]   ;;  %v323_v3 = vld [vmem:[%s1674_s1 + $0xf0] sm:$0xff] }
  0x2a   :  { %v457_v17 = vadd.f32 %v921_v6, %v386_v10  ;;  %v181_v18 = vmul.f32 %v746_v11, %v903_v1  ;;  %v749_v20 = vunpack.c.l.bf16 %v838_v7  ;;  %v520_v23 = vadd.f32 %v456_v9, %v250_v15  ;;  %v842_v15 = vld [vmem:[%s1673_s0 + $0x80] sm:$0xff]  }
  0x2b   :  { %646 = vst [vmem:[%s1679_s6 + $0x98] sm:$0xff] %v582_v13  ;;  %v583_v22 = vmax.f32 %v519_v14, 0.0  ;;  %v251_v24 = vadd.f32 %v908_v2, %v180_v16  ;;  %v388_v25 = vmul.f32 %v916_v5, %v317_v12  ;;  %v458_v28 = vadd.f32 %v921_v6, %v387_v19  ;;  %v324_v14 = vld [vmem:[%s1674_s1 + $0xf8] sm:$0xff] }
  0x2c   :  { %v252_v27 = vadd.f32 %v908_v2, %v181_v18  ;;  %v182_v29 = vmul.f32 %v749_v20, %v903_v1  ;;  %v750_v30 = vunpack.c.h.bf16 %v838_v7  ;;  %v584_v32 = vmax.f32 %v520_v23, 0.0  ;;  %v325_v20 = vld [vmem:[%s1674_s1 + $0x100] sm:$0xff] }
  0x2d   :  { %647 = vst [vmem:[%s1679_s6 + $0xa0] sm:$0xff] %v583_v22  ;;  %v521_v33 = vadd.f32 %v457_v17, %v251_v24  ;;  %v459_v34 = vadd.f32 %v921_v6, %v388_v25  ;;  %v389_v35 = vmul.f32 %v916_v5, %v318_v21  ;;  %v753_v39 = vunpack.c.l.bf16 %v839_v26 }
  0x2e   :  { %v522_v36 = vadd.f32 %v458_v28, %v252_v27  ;;  %v253_v37 = vadd.f32 %v908_v2, %v182_v29  ;;  %v183_v38 = vmul.f32 %v750_v30, %v903_v1  ;;  %648 = vst [vmem:[%s1679_s6 + $0xa8] sm:$0xff] %v584_v32  ;;  %v390_v44 = vmul.f32 %v916_v5, %v319_v31  ;;  %v326_v29 = vld [vmem:[%s1674_s1 + $0x108] sm:$0xff] }
  0x2f   :  { %v585_v42 = vmax.f32 %v521_v33, 0.0  ;;  %v460_v43 = vadd.f32 %v921_v6, %v389_v35  ;;  %v754_v45 = vunpack.c.h.bf16 %v839_v26  ;;  %v184_v50 = vmul.f32 %v753_v39, %v903_v1  ;;  %v327_v39 = vld [vmem:[%s1674_s1 + $0x110] sm:$0xff] }
  0x30   :  { %v586_v47 = vmax.f32 %v522_v36, 0.0  ;;  %v523_v48 = vadd.f32 %v459_v34, %v253_v37  ;;  %v254_v49 = vadd.f32 %v908_v2, %v183_v38  ;;  %v461_v51 = vadd.f32 %v921_v6, %v390_v44  ;;  %v843_v34 = vld [vmem:[%s1673_s0 + $0x88] sm:$0xff]  }
  0x31   :  { %649 = vst [vmem:[%s1679_s6 + $0xb0] sm:$0xff] %v585_v42  ;;  %v185_v52 = vmul.f32 %v754_v45, %v903_v1  ;;  %v391_v53 = vmul.f32 %v916_v5, %v320_v40  ;;  %v757_v54 = vunpack.c.l.bf16 %v840_v41  ;;  %v255_v58 = vadd.f32 %v908_v2, %v184_v50 }
  0x32   :  { %650 = vst [vmem:[%s1679_s6 + $0xb8] sm:$0xff] %v586_v47  ;;  %v587_v56 = vmax.f32 %v523_v48, 0.0  ;;  %v524_v57 = vadd.f32 %v460_v43, %v254_v49  ;;  %v392_v59 = vmul.f32 %v916_v5, %v321_v46  ;;  %v758_v0 = vunpack.c.h.bf16 %v840_v41  ;;  %v328_v48 = vld [vmem:[%s1674_s1 + $0x118] sm:$0xff]  ;;  %v844_v49 = vld [vmem:[%s1673_s0 + $0x90] sm:$0xff]  }
  0x33   :  { %v256_v61 = vadd.f32 %v908_v2, %v185_v52  ;;  %v462_v62 = vadd.f32 %v921_v6, %v391_v53  ;;  %v186_v63 = vmul.f32 %v757_v54, %v903_v1  ;;  %v525_v7 = vadd.f32 %v461_v51, %v255_v58  ;;  %v329_v54 = vld [vmem:[%s1674_s1 + $0x120] sm:$0xff] }
  0x34   :  { %651 = vst [vmem:[%s1679_s6 + $0xc0] sm:$0xff] %v587_v56  ;;  %v588_v4 = vmax.f32 %v524_v57, 0.0  ;;  %v463_v8 = vadd.f32 %v921_v6, %v392_v59  ;;  %v393_v9 = vmul.f32 %v916_v5, %v322_v55  ;;  %v187_v12 = vmul.f32 %v758_v0, %v903_v1 }
  0x35   :  { %v526_v10 = vadd.f32 %v462_v62, %v256_v61  ;;  %v257_v11 = vadd.f32 %v908_v2, %v186_v63  ;;  %v761_v13 = vunpack.c.l.bf16 %v841_v60  ;;  %v589_v16 = vmax.f32 %v525_v7, 0.0  ;;  %v330_v63 = vld [vmem:[%s1674_s1 + $0x128] sm:$0xff] }
  0x36   :  { %652 = vst [vmem:[%s1679_s6 + $0xc8] sm:$0xff] %v588_v4  ;;  %v464_v17 = vadd.f32 %v921_v6, %v393_v9  ;;  %v394_v18 = vmul.f32 %v916_v5, %v323_v3  ;;  %v762_v19 = vunpack.c.h.bf16 %v841_v60  ;;  %v258_v23 = vadd.f32 %v908_v2, %v187_v12 }
  0x37   :  { %v590_v21 = vmax.f32 %v526_v10, 0.0  ;;  %v527_v22 = vadd.f32 %v463_v8, %v257_v11  ;;  %v188_v24 = vmul.f32 %v761_v13, %v903_v1  ;;  %653 = vst [vmem:[%s1679_s6 + $0xd0] sm:$0xff] %v589_v16  ;;  %v395_v27 = vmul.f32 %v916_v5, %v324_v14  ;;  %v845_v8 = vld [vmem:[%s1673_s0 + $0x98] sm:$0xff]   ;;  %v331_v13 = vld [vmem:[%s1674_s1 + $0x130] sm:$0xff] }
  0x38   :  { %v465_v25 = vadd.f32 %v921_v6, %v394_v18  ;;  %v189_v26 = vmul.f32 %v762_v19, %v903_v1  ;;  %v765_v28 = vunpack.c.l.bf16 %v842_v15  ;;  %v528_v31 = vadd.f32 %v464_v17, %v258_v23  ;;  %v846_v23 = vld [vmem:[%s1673_s0 + $0xa0] sm:$0xff]  }
  0x39   :  { %654 = vst [vmem:[%s1679_s6 + $0xd8] sm:$0xff] %v590_v21  ;;  %v591_v30 = vmax.f32 %v527_v22, 0.0  ;;  %v259_v32 = vadd.f32 %v908_v2, %v188_v24  ;;  %v396_v33 = vmul.f32 %v916_v5, %v325_v20  ;;  %v466_v36 = vadd.f32 %v921_v6, %v395_v27  ;;  %v332_v22 = vld [vmem:[%s1674_s1 + $0x138] sm:$0xff] }
  0x3a   :  { %v260_v35 = vadd.f32 %v908_v2, %v189_v26  ;;  %v190_v37 = vmul.f32 %v765_v28, %v903_v1  ;;  %v766_v38 = vunpack.c.h.bf16 %v842_v15  ;;  %v592_v40 = vmax.f32 %v528_v31, 0.0  ;;  %v333_v28 = vld [vmem:[%s1674_s1 + $0x140] sm:$0xff] }
  0x3b   :  { %655 = vst [vmem:[%s1679_s6 + $0xe0] sm:$0xff] %v591_v30  ;;  %v529_v41 = vadd.f32 %v465_v25, %v259_v32  ;;  %v467_v42 = vadd.f32 %v921_v6, %v396_v33  ;;  %v397_v43 = vmul.f32 %v916_v5, %v326_v29  ;;  %v769_v47 = vunpack.c.l.bf16 %v843_v34 }
  0x3c   :  { %v530_v44 = vadd.f32 %v466_v36, %v260_v35  ;;  %v261_v45 = vadd.f32 %v908_v2, %v190_v37  ;;  %v191_v46 = vmul.f32 %v766_v38, %v903_v1  ;;  %656 = vst [vmem:[%s1679_s6 + $0xe8] sm:$0xff] %v592_v40  ;;  %v398_v52 = vmul.f32 %v916_v5, %v327_v39  ;;  %v334_v37 = vld [vmem:[%s1674_s1 + $0x148] sm:$0xff] }
  0x3d   :  { %v593_v50 = vmax.f32 %v529_v41, 0.0  ;;  %v468_v51 = vadd.f32 %v921_v6, %v397_v43  ;;  %v770_v53 = vunpack.c.h.bf16 %v843_v34  ;;  %v192_v58 = vmul.f32 %v769_v47, %v903_v1  ;;  %v335_v47 = vld [vmem:[%s1674_s1 + $0x150] sm:$0xff] }
  0x3e   :  { %v594_v55 = vmax.f32 %v530_v44, 0.0  ;;  %v531_v56 = vadd.f32 %v467_v42, %v261_v45  ;;  %v262_v57 = vadd.f32 %v908_v2, %v191_v46  ;;  %v469_v59 = vadd.f32 %v921_v6, %v398_v52  ;;  %v847_v42 = vld [vmem:[%s1673_s0 + $0xa8] sm:$0xff]  }
  0x3f   :  { %657 = vst [vmem:[%s1679_s6 + $0xf0] sm:$0xff] %v593_v50  ;;  %v193_v60 = vmul.f32 %v770_v53, %v903_v1  ;;  %v399_v61 = vmul.f32 %v916_v5, %v328_v48  ;;  %v773_v62 = vunpack.c.l.bf16 %v844_v49  ;;  %v263_v4 = vadd.f32 %v908_v2, %v192_v58 }
  0x40   :  { %658 = vst [vmem:[%s1679_s6 + $0xf8] sm:$0xff] %v594_v55  ;;  %v595_v0 = vmax.f32 %v531_v56, 0.0  ;;  %v532_v3 = vadd.f32 %v468_v51, %v262_v57  ;;  %v400_v7 = vmul.f32 %v916_v5, %v329_v54  ;;  %v774_v12 = vunpack.c.h.bf16 %v844_v49  ;;  %v336_v56 = vld [vmem:[%s1674_s1 + $0x158] sm:$0xff]  ;;  %v848_v57 = vld [vmem:[%s1673_s0 + $0xb0] sm:$0xff]  }
  0x41   :  { %v264_v9 = vadd.f32 %v908_v2, %v193_v60  ;;  %v470_v10 = vadd.f32 %v921_v6, %v399_v61  ;;  %v194_v11 = vmul.f32 %v773_v62, %v903_v1  ;;  %v533_v15 = vadd.f32 %v469_v59, %v263_v4  ;;  %v337_v62 = vld [vmem:[%s1674_s1 + $0x160] sm:$0xff] }
  0x42   :  { %659 = vst [vmem:[%s1679_s6 + $0x100] sm:$0xff] %v595_v0  ;;  %v596_v14 = vmax.f32 %v532_v3, 0.0  ;;  %v471_v16 = vadd.f32 %v921_v6, %v400_v7  ;;  %v401_v17 = vmul.f32 %v916_v5, %v330_v63  ;;  %v195_v20 = vmul.f32 %v774_v12, %v903_v1 }
  0x43   :  { %v534_v18 = vadd.f32 %v470_v10, %v264_v9  ;;  %v265_v19 = vadd.f32 %v908_v2, %v194_v11  ;;  %v777_v21 = vunpack.c.l.bf16 %v845_v8  ;;  %v597_v24 = vmax.f32 %v533_v15, 0.0  ;;  %v338_v11 = vld [vmem:[%s1674_s1 + $0x168] sm:$0xff] }
  0x44   :  { %660 = vst [vmem:[%s1679_s6 + $0x108] sm:$0xff] %v596_v14  ;;  %v472_v25 = vadd.f32 %v921_v6, %v401_v17  ;;  %v402_v26 = vmul.f32 %v916_v5, %v331_v13  ;;  %v778_v27 = vunpack.c.h.bf16 %v845_v8  ;;  %v266_v31 = vadd.f32 %v908_v2, %v195_v20 }
  0x45   :  { %v598_v29 = vmax.f32 %v534_v18, 0.0  ;;  %v535_v30 = vadd.f32 %v471_v16, %v265_v19  ;;  %v196_v32 = vmul.f32 %v777_v21, %v903_v1  ;;  %661 = vst [vmem:[%s1679_s6 + $0x110] sm:$0xff] %v597_v24  ;;  %v403_v35 = vmul.f32 %v916_v5, %v332_v22  ;;  %v849_v16 = vld [vmem:[%s1673_s0 + $0xb8] sm:$0xff]   ;;  %v339_v21 = vld [vmem:[%s1674_s1 + $0x170] sm:$0xff] }
  0x46   :  { %v473_v33 = vadd.f32 %v921_v6, %v402_v26  ;;  %v197_v34 = vmul.f32 %v778_v27, %v903_v1  ;;  %v781_v36 = vunpack.c.l.bf16 %v846_v23  ;;  %v536_v39 = vadd.f32 %v472_v25, %v266_v31  ;;  %v850_v31 = vld [vmem:[%s1673_s0 + $0xc0] sm:$0xff]  }
  0x47   :  { %662 = vst [vmem:[%s1679_s6 + $0x118] sm:$0xff] %v598_v29  ;;  %v599_v38 = vmax.f32 %v535_v30, 0.0  ;;  %v267_v40 = vadd.f32 %v908_v2, %v196_v32  ;;  %v404_v41 = vmul.f32 %v916_v5, %v333_v28  ;;  %v474_v44 = vadd.f32 %v921_v6, %v403_v35  ;;  %v340_v30 = vld [vmem:[%s1674_s1 + $0x178] sm:$0xff] }
  0x48   :  { %v268_v43 = vadd.f32 %v908_v2, %v197_v34  ;;  %v198_v45 = vmul.f32 %v781_v36, %v903_v1  ;;  %v782_v46 = vunpack.c.h.bf16 %v846_v23  ;;  %v600_v48 = vmax.f32 %v536_v39, 0.0  ;;  %v341_v36 = vld [vmem:[%s1674_s1 + $0x180] sm:$0xff] }
  0x49   :  { %663 = vst [vmem:[%s1679_s6 + $0x120] sm:$0xff] %v599_v38  ;;  %v537_v49 = vadd.f32 %v473_v33, %v267_v40  ;;  %v475_v50 = vadd.f32 %v921_v6, %v404_v41  ;;  %v405_v51 = vmul.f32 %v916_v5, %v334_v37  ;;  %v785_v55 = vunpack.c.l.bf16 %v847_v42 }
  0x4a   :  { %v538_v52 = vadd.f32 %v474_v44, %v268_v43  ;;  %v269_v53 = vadd.f32 %v908_v2, %v198_v45  ;;  %v199_v54 = vmul.f32 %v782_v46, %v903_v1  ;;  %664 = vst [vmem:[%s1679_s6 + $0x128] sm:$0xff] %v600_v48  ;;  %v406_v60 = vmul.f32 %v916_v5, %v335_v47  ;;  %v342_v45 = vld [vmem:[%s1674_s1 + $0x188] sm:$0xff] }
  0x4b   :  { %v601_v58 = vmax.f32 %v537_v49, 0.0  ;;  %v476_v59 = vadd.f32 %v921_v6, %v405_v51  ;;  %v786_v61 = vunpack.c.h.bf16 %v847_v42  ;;  %v200_v4 = vmul.f32 %v785_v55, %v903_v1  ;;  %v343_v55 = vld [vmem:[%s1674_s1 + $0x190] sm:$0xff] }
  0x4c   :  { %v602_v63 = vmax.f32 %v538_v52, 0.0  ;;  %v539_v0 = vadd.f32 %v475_v50, %v269_v53  ;;  %v270_v3 = vadd.f32 %v908_v2, %v199_v54  ;;  %v477_v7 = vadd.f32 %v921_v6, %v406_v60  ;;  %v851_v50 = vld [vmem:[%s1673_s0 + $0xc8] sm:$0xff]  }
  0x4d   :  { %665 = vst [vmem:[%s1679_s6 + $0x130] sm:$0xff] %v601_v58  ;;  %v201_v8 = vmul.f32 %v786_v61, %v903_v1  ;;  %v407_v9 = vmul.f32 %v916_v5, %v336_v56  ;;  %v789_v10 = vunpack.c.l.bf16 %v848_v57  ;;  %v271_v14 = vadd.f32 %v908_v2, %v200_v4 }
  0x4e   :  { %666 = vst [vmem:[%s1679_s6 + $0x138] sm:$0xff] %v602_v63  ;;  %v603_v12 = vmax.f32 %v539_v0, 0.0  ;;  %v540_v13 = vadd.f32 %v476_v59, %v270_v3  ;;  %v408_v15 = vmul.f32 %v916_v5, %v337_v62  ;;  %v790_v20 = vunpack.c.h.bf16 %v848_v57  ;;  %v344_v0 = vld [vmem:[%s1674_s1 + $0x198] sm:$0xff]  ;;  %v852_v3 = vld [vmem:[%s1673_s0 + $0xd0] sm:$0xff]  }
  0x4f   :  { %v272_v17 = vadd.f32 %v908_v2, %v201_v8  ;;  %v478_v18 = vadd.f32 %v921_v6, %v407_v9  ;;  %v202_v19 = vmul.f32 %v789_v10, %v903_v1  ;;  %v541_v23 = vadd.f32 %v477_v7, %v271_v14  ;;  %v345_v10 = vld [vmem:[%s1674_s1 + $0x1a0] sm:$0xff] }
  0x50   :  { %667 = vst [vmem:[%s1679_s6 + $0x140] sm:$0xff] %v603_v12  ;;  %v604_v22 = vmax.f32 %v540_v13, 0.0  ;;  %v479_v24 = vadd.f32 %v921_v6, %v408_v15  ;;  %v409_v25 = vmul.f32 %v916_v5, %v338_v11  ;;  %v203_v28 = vmul.f32 %v790_v20, %v903_v1 }
  0x51   :  { %v542_v26 = vadd.f32 %v478_v18, %v272_v17  ;;  %v273_v27 = vadd.f32 %v908_v2, %v202_v19  ;;  %v793_v29 = vunpack.c.l.bf16 %v849_v16  ;;  %v605_v32 = vmax.f32 %v541_v23, 0.0  ;;  %v346_v19 = vld [vmem:[%s1674_s1 + $0x1a8] sm:$0xff] }
  0x52   :  { %668 = vst [vmem:[%s1679_s6 + $0x148] sm:$0xff] %v604_v22  ;;  %v480_v33 = vadd.f32 %v921_v6, %v409_v25  ;;  %v410_v34 = vmul.f32 %v916_v5, %v339_v21  ;;  %v794_v35 = vunpack.c.h.bf16 %v849_v16  ;;  %v274_v39 = vadd.f32 %v908_v2, %v203_v28 }
  0x53   :  { %v606_v37 = vmax.f32 %v542_v26, 0.0  ;;  %v543_v38 = vadd.f32 %v479_v24, %v273_v27  ;;  %v204_v40 = vmul.f32 %v793_v29, %v903_v1  ;;  %669 = vst [vmem:[%s1679_s6 + $0x150] sm:$0xff] %v605_v32  ;;  %v411_v43 = vmul.f32 %v916_v5, %v340_v30  ;;  %v853_v24 = vld [vmem:[%s1673_s0 + $0xd8] sm:$0xff]   ;;  %v347_v29 = vld [vmem:[%s1674_s1 + $0x1b0] sm:$0xff] }
  0x54   :  { %v481_v41 = vadd.f32 %v921_v6, %v410_v34  ;;  %v205_v42 = vmul.f32 %v794_v35, %v903_v1  ;;  %v797_v44 = vunpack.c.l.bf16 %v850_v31  ;;  %v544_v47 = vadd.f32 %v480_v33, %v274_v39  ;;  %v854_v39 = vld [vmem:[%s1673_s0 + $0xe0] sm:$0xff]  }
  0x55   :  { %670 = vst [vmem:[%s1679_s6 + $0x158] sm:$0xff] %v606_v37  ;;  %v607_v46 = vmax.f32 %v543_v38, 0.0  ;;  %v275_v48 = vadd.f32 %v908_v2, %v204_v40  ;;  %v412_v49 = vmul.f32 %v916_v5, %v341_v36  ;;  %v482_v52 = vadd.f32 %v921_v6, %v411_v43  ;;  %v348_v38 = vld [vmem:[%s1674_s1 + $0x1b8] sm:$0xff] }
  0x56   :  { %v276_v51 = vadd.f32 %v908_v2, %v205_v42  ;;  %v206_v53 = vmul.f32 %v797_v44, %v903_v1  ;;  %v798_v54 = vunpack.c.h.bf16 %v850_v31  ;;  %v608_v56 = vmax.f32 %v544_v47, 0.0  ;;  %v1559_v47 = vld [vmem:[%s1678_s5] ss:$0 sm:$0xff] }
  0x57   :  { %671 = vst [vmem:[%s1679_s6 + $0x160] sm:$0xff] %v607_v46  ;;  %v545_v57 = vadd.f32 %v481_v41, %v275_v48  ;;  %v483_v58 = vadd.f32 %v921_v6, %v412_v49  ;;  %v413_v59 = vmul.f32 %v916_v5, %v342_v45  ;;  %v801_v63 = vunpack.c.l.bf16 %v851_v50  ;;  %v1544_v45 = vld [vmem:[%s1676_s3] ss:$0 sm:$0xff] }
  0x58   :  { %v546_v60 = vadd.f32 %v482_v52, %v276_v51  ;;  %v277_v61 = vadd.f32 %v908_v2, %v206_v53  ;;  %v207_v62 = vmul.f32 %v798_v54, %v903_v1  ;;  %672 = vst [vmem:[%s1679_s6 + $0x168] sm:$0xff] %v608_v56  ;;  %v414_v8 = vmul.f32 %v916_v5, %v343_v55  ;;  %v350_v53 = vld [vmem:[%s1674_s1 + $0x1c8] sm:$0xff] }
  0x59   :  { %v609_v4 = vmax.f32 %v545_v57, 0.0  ;;  %v484_v7 = vadd.f32 %v921_v6, %v413_v59  ;;  %v802_v9 = vunpack.c.h.bf16 %v851_v50  ;;  %v208_v14 = vmul.f32 %v801_v63, %v903_v1  ;;  %v1566_v50 = vld [vmem:[%s1677_s4] ss:$0 sm:$0xff]  ;;  %v351_v63 = vld [vmem:[%s1674_s1 + $0x1d0] sm:$0xff] }
  0x5a   :  { %v610_v11 = vmax.f32 %v546_v60, 0.0  ;;  %v547_v12 = vadd.f32 %v483_v58, %v277_v61  ;;  %v278_v13 = vadd.f32 %v908_v2, %v207_v62  ;;  %v485_v15 = vadd.f32 %v921_v6, %v414_v8  ;;  %v855_v58 = vld [vmem:[%s1673_s0 + $0xe8] sm:$0xff]  }
  0x5b   :  { %673 = vst [vmem:[%s1679_s6 + $0x170] sm:$0xff] %v609_v4  ;;  %v209_v16 = vmul.f32 %v802_v9, %v903_v1  ;;  %v415_v17 = vmul.f32 %v916_v5, %v344_v0  ;;  %v805_v18 = vunpack.c.l.bf16 %v852_v3  ;;  %v279_v22 = vadd.f32 %v908_v2, %v208_v14 }
  0x5c   :  { %674 = vst [vmem:[%s1679_s6 + $0x178] sm:$0xff] %v610_v11  ;;  %v611_v20 = vmax.f32 %v547_v12, 0.0  ;;  %v548_v21 = vadd.f32 %v484_v7, %v278_v13  ;;  %v416_v23 = vmul.f32 %v916_v5, %v345_v10  ;;  %v806_v28 = vunpack.c.h.bf16 %v852_v3  ;;  %v352_v12 = vld [vmem:[%s1674_s1 + $0x1d8] sm:$0xff]  ;;  %v856_v13 = vld [vmem:[%s1673_s0 + $0xf0] sm:$0xff]  }
  0x5d   :  { %v280_v25 = vadd.f32 %v908_v2, %v209_v16  ;;  %v486_v26 = vadd.f32 %v921_v6, %v415_v17  ;;  %v210_v27 = vmul.f32 %v805_v18, %v903_v1  ;;  %v549_v31 = vadd.f32 %v485_v15, %v279_v22  ;;  %v353_v18 = vld [vmem:[%s1674_s1 + $0x1e0] sm:$0xff] }
  0x5e   :  { %675 = vst [vmem:[%s1679_s6 + $0x180] sm:$0xff] %v611_v20  ;;  %v612_v30 = vmax.f32 %v548_v21, 0.0  ;;  %v487_v32 = vadd.f32 %v921_v6, %v416_v23  ;;  %v417_v33 = vmul.f32 %v916_v5, %v346_v19  ;;  %v211_v36 = vmul.f32 %v806_v28, %v903_v1  ;;  %v349_v1 = vld [vmem:[%s1674_s1 + $0x1c0] sm:$0xff] }
  0x5f   :  { %v550_v34 = vadd.f32 %v486_v26, %v280_v25  ;;  %v281_v35 = vadd.f32 %v908_v2, %v210_v27  ;;  %v809_v37 = vunpack.c.l.bf16 %v853_v24  ;;  %v613_v40 = vmax.f32 %v549_v31, 0.0  ;;  %v354_v27 = vld [vmem:[%s1674_s1 + $0x1e8] sm:$0xff] }
  0x60   :  { %676 = vst [vmem:[%s1679_s6 + $0x188] sm:$0xff] %v612_v30  ;;  %v488_v41 = vadd.f32 %v921_v6, %v417_v33  ;;  %v418_v2 = vmul.f32 %v916_v5, %v347_v29  ;;  %v810_v42 = vunpack.c.h.bf16 %v853_v24  ;;  %v282_v46 = vadd.f32 %v1544_v45, %v211_v36  ;;  %v1550_v6 = vld [vmem:[%s1675_s2] ss:$0 sm:$0xff] }
  0x61   :  { %v614_v43 = vmax.f32 %v550_v34, 0.0  ;;  %v551_v44 = vadd.f32 %v487_v32, %v281_v35  ;;  %v212_v5 = vmul.f32 %v1550_v6, %v809_v37  ;;  %677 = vst [vmem:[%s1679_s6 + $0x190] sm:$0xff] %v613_v40  ;;  %v419_v51 = vmul.f32 %v1566_v50, %v348_v38  ;;  %v857_v32 = vld [vmem:[%s1673_s0 + $0xf8] sm:$0xff]   ;;  %v355_v37 = vld [vmem:[%s1674_s1 + $0x1f0] sm:$0xff] }
  0x62   :  { %v489_v48 = vadd.f32 %v1559_v47, %v418_v2  ;;  %v213_v49 = vmul.f32 %v1550_v6, %v810_v42  ;;  %v813_v52 = vunpack.c.l.bf16 %v854_v39  ;;  %v552_v55 = vadd.f32 %v488_v41, %v282_v46 }
  0x63   :  { %678 = vst [vmem:[%s1679_s6 + $0x198] sm:$0xff] %v614_v43  ;;  %v615_v54 = vmax.f32 %v551_v44, 0.0  ;;  %v283_v56 = vadd.f32 %v1544_v45, %v212_v5  ;;  %v420_v57 = vmul.f32 %v1566_v50, %v349_v1  ;;  %v490_v60 = vadd.f32 %v1559_v47, %v419_v51  ;;  %v356_v44 = vld [vmem:[%s1674_s1 + $0x1f8] sm:$0xff] }
  0x64   :  { %v284_v59 = vadd.f32 %v1544_v45, %v213_v49  ;;  %v214_v61 = vmul.f32 %v1550_v6, %v813_v52  ;;  %v814_v62 = vunpack.c.h.bf16 %v854_v39  ;;  %v616_v0 = vmax.f32 %v552_v55, 0.0 }
  0x65   :  { %679 = vst [vmem:[%s1679_s6 + $0x1a0] sm:$0xff] %v615_v54  ;;  %v553_v3 = vadd.f32 %v489_v48, %v283_v56  ;;  %v491_v4 = vadd.f32 %v1559_v47, %v420_v57  ;;  %v421_v7 = vmul.f32 %v1566_v50, %v350_v53  ;;  %v817_v11 = vunpack.c.l.bf16 %v855_v58 }
  0x66   :  { %v554_v8 = vadd.f32 %v490_v60, %v284_v59  ;;  %v285_v9 = vadd.f32 %v1544_v45, %v214_v61  ;;  %v215_v10 = vmul.f32 %v1550_v6, %v814_v62  ;;  %680 = vst [vmem:[%s1679_s6 + $0x1a8] sm:$0xff] %v616_v0  ;;  %v422_v16 = vmul.f32 %v1566_v50, %v351_v63 }
  0x67   :  { %v617_v14 = vmax.f32 %v553_v3, 0.0  ;;  %v492_v15 = vadd.f32 %v1559_v47, %v421_v7  ;;  %v818_v17 = vunpack.c.h.bf16 %v855_v58  ;;  %v216_v22 = vmul.f32 %v1550_v6, %v817_v11 }
  0x68   :  { %v618_v19 = vmax.f32 %v554_v8, 0.0  ;;  %v555_v20 = vadd.f32 %v491_v4, %v285_v9  ;;  %v286_v21 = vadd.f32 %v1544_v45, %v215_v10  ;;  %v493_v23 = vadd.f32 %v1559_v47, %v422_v16 }
  0x69   :  { %681 = vst [vmem:[%s1679_s6 + $0x1b0] sm:$0xff] %v617_v14  ;;  %v217_v24 = vmul.f32 %v1550_v6, %v818_v17  ;;  %v423_v25 = vmul.f32 %v1566_v50, %v352_v12  ;;  %v821_v26 = vunpack.c.l.bf16 %v856_v13  ;;  %v287_v30 = vadd.f32 %v1544_v45, %v216_v22 }
  0x6a   :  { %682 = vst [vmem:[%s1679_s6 + $0x1b8] sm:$0xff] %v618_v19  ;;  %v619_v28 = vmax.f32 %v555_v20, 0.0  ;;  %v556_v29 = vadd.f32 %v492_v15, %v286_v21  ;;  %v424_v31 = vmul.f32 %v1566_v50, %v353_v18  ;;  %v822_v36 = vunpack.c.h.bf16 %v856_v13 }
  0x6b   :  { %v288_v33 = vadd.f32 %v1544_v45, %v217_v24  ;;  %v494_v34 = vadd.f32 %v1559_v47, %v423_v25  ;;  %v218_v35 = vmul.f32 %v1550_v6, %v821_v26  ;;  %v557_v39 = vadd.f32 %v493_v23, %v287_v30 }
  0x6c   :  { %683 = vst [vmem:[%s1679_s6 + $0x1c0] sm:$0xff] %v619_v28  ;;  %v620_v38 = vmax.f32 %v556_v29, 0.0  ;;  %v495_v40 = vadd.f32 %v1559_v47, %v424_v31  ;;  %v425_v41 = vmul.f32 %v1566_v50, %v354_v27  ;;  %v219_v1 = vmul.f32 %v1550_v6, %v822_v36 }
  0x6d   :  { %v558_v2 = vadd.f32 %v494_v34, %v288_v33  ;;  %v289_v42 = vadd.f32 %v1544_v45, %v218_v35  ;;  %v825_v43 = vunpack.c.l.bf16 %v857_v32  ;;  %v621_v46 = vmax.f32 %v557_v39, 0.0 }
  0x6e   :  { %684 = vst [vmem:[%s1679_s6 + $0x1c8] sm:$0xff] %v620_v38  ;;  %v496_v5 = vadd.f32 %v1559_v47, %v425_v41  ;;  %v426_v48 = vmul.f32 %v1566_v50, %v355_v37  ;;  %v826_v49 = vunpack.c.h.bf16 %v857_v32  ;;  %v290_v53 = vadd.f32 %v1544_v45, %v219_v1 }
  0x6f   :  { %v622_v51 = vmax.f32 %v558_v2, 0.0  ;;  %v559_v52 = vadd.f32 %v495_v40, %v289_v42  ;;  %v220_v54 = vmul.f32 %v1550_v6, %v825_v43  ;;  %685 = vst [vmem:[%s1679_s6 + $0x1d0] sm:$0xff] %v621_v46  ;;  %v427_v57 = vmul.f32 %v1566_v50, %v356_v44 }
  0x70   :  { %v497_v55 = vadd.f32 %v1559_v47, %v426_v48  ;;  %v221_v56 = vmul.f32 %v1550_v6, %v826_v49  ;;  %v560_v59 = vadd.f32 %v496_v5, %v290_v53 }
  0x71   :  { %686 = vst [vmem:[%s1679_s6 + $0x1d8] sm:$0xff] %v622_v51  ;;  %v623_v58 = vmax.f32 %v559_v52, 0.0  ;;  %v291_v60 = vadd.f32 %v1544_v45, %v220_v54  ;;  %v498_v62 = vadd.f32 %v1559_v47, %v427_v57 }
  0x72   :  { %v292_v61 = vadd.f32 %v1544_v45, %v221_v56  ;;  %v624_v63 = vmax.f32 %v560_v59, 0.0 }
  0x73   :  { %687 = vst [vmem:[%s1679_s6 + $0x1e0] sm:$0xff] %v623_v58  ;;  %v561_v6 = vadd.f32 %v497_v55, %v291_v60 }
  0x74   :  { %v562_v0 = vadd.f32 %v498_v62, %v292_v61  ;;  %688 = vst [vmem:[%s1679_s6 + $0x1e8] sm:$0xff] %v624_v63 }
  0x75   :  { %v625_v50 = vmax.f32 %v561_v6, 0.0 }
  0x76   :  { %v626_v3 = vmax.f32 %v562_v0, 0.0 }
  0x77   :  { %689 = vst [vmem:[%s1679_s6 + $0x1f0] sm:$0xff] %v625_v50 }
  0x78   :  { %690 = vst [vmem:[%s1679_s6 + $0x1f8] sm:$0xff] %v626_v3 }

// kernel: residual_block_forward.5
= control target key start
LH: loop header
LB: loop body
LE: loop exit
PB: predicated region body
PF: predicated region fallthrough
CT: control target
= control target key end

     0   :  { %s1385_s12 = smov 0   ;;  %s1863_s0 = inlined_call_operand.vmem [shape: bf16[2,16,16,128], index: 0, kind: input, shape index: {}]   ;;  %s1864_s1 = inlined_call_operand.vmem [shape: f32[1,128], index: 1, kind: input, shape index: {}]   ;;  %s1865_s2 = inlined_call_operand.vmem [shape: f32[1,128], index: 2, kind: input, shape index: {}]   ;;  %s1866_s3 = inlined_call_operand.vmem [shape: bf16[2,18,18,128], index: 3, kind: output, shape index: {}]  }
   0x1 LB: > { %s1042_s13 = sadd.s32 4294967295, %s1362_s12   ;;  %p1046_p0 = scmp.ge.s32.totalorder %s1362_s12, 1  ;;  %s1362_s12 = sphi %s1385_s12, %s13_s12  }
   0x2   : > { %p137_p1 = scmp.lt.s32.totalorder %s1362_s12, 3 }
   0x4   : > { %p138_p2 = pnand %p1046_p0, %p137_p1 }
   0x5   : > { %p161_p3 = scmp.lt.s32.totalorder (!%p138_p2), %s1042_s13, 1  ;;  %vm354_vm0 = vcmask (!%p138_p2), 1040384   ;;  %vm355_vm1 = vsmask.f32 (!%p138_p2), 256  ;;  %vm405_vm3 = vsmask.f32 (!%p138_p2), 7938 }
   0x6   : > { %141 = sbr.rel (%p138_p2) target bundleno = 138 (0x8a), region = 32  ;;  %vm1395_vm2 = vmand (!%p138_p2), %vm354_vm0, %vm355_vm1  ;;  %v1413_v2 = vld [vmem:[%s1864_s1] ss:$0 sm:$0xff] (!%p138_p2)  ;;  %v1364_v7 = vmov (!%p138_p2), 0   ;;  %vm873_vm5 = vcmask (!%p138_p2), 1043456  }
   0x7   : > { %v1455_v25 = vld [vmem:[%s1865_s2] ss:$0 sm:$0xff] (!%p138_p2)  ;;  %vm1490_vm4 = vmand (!%p138_p2), %vm354_vm0, %vm405_vm3  ;;  %vm551_vm6 = vsmask.f32 (!%p138_p2), 4368 }
   0x8   : > { %vm1608_vm7 = vmand (!%p138_p2), %vm873_vm5, %vm405_vm3 }
   0x9   : > { %vm1615_vm8 = vmor (!%p138_p2), %vm355_vm1, %vm551_vm6 }
   0xd   : > { %s1876_s13 = smov (!%p161_p3, %s1042_s13), 1 }
   0xe   : > { %s1345_s14 = smul.u32 216, %s1876_s13  ;;  %s1233_s15 = sshll.u32 %s1876_s13, 7 }
   0xf   : > { %s1402_s18 = scalar_lea.vmem %s1863_s0, %s1233_s15 }
  0x10   : > { %s1407_s21 = scalar_lea.vmem %s1866_s3, %s1345_s14  ;;  %v1267_v1 = vld [vmem:[%s1402_s18] sm:$0xff]   ;;  %v1330_v3 = vld [vmem:[%s1402_s18 + $0x8] sm:$0xff]   ;;  %v1433_v15 = vld [vmem:[%s1402_s18 + $0x10] sm:$0xff]  }
  0x11   : > { %v1055_v4 = vld [vmem:[%s1407_s21 + $0xc] sm:$0x1]  ;;  %v1057_v5 = vld [vmem:[%s1407_s21 + $0x18] sm:$0x1]  ;;  %v1059_v6 = vld [vmem:[%s1407_s21 + $0x24] sm:$0x1]  ;;  %v1268_v8 = vunpack.c.l.bf16 %v1267_v1  ;;  %v1269_v9 = vunpack.c.h.bf16 %v1267_v1  ;;  %v1272_v14 = vunpack.c.l.bf16 %v1330_v3  ;;  %v1273_v19 = vunpack.c.h.bf16 %v1330_v3 }
  0x12   : > { %346 = vst [vmem:[%s1407_s21] sm:$0xf] %v1364_v7  ;;  %347 = vst [vmem:[%s1407_s21 + $0x4] sm:$0xf] %v1364_v7  ;;  %v358_v10 = vsel %vm1395_vm2, 0, %v1055_v4  ;;  %v361_v11 = vsel %vm1395_vm2, 0, %v1057_v5  ;;  %v364_v12 = vsel %vm1395_vm2, 0, %v1059_v6  ;;  %v1276_v31 = vunpack.c.l.bf16 %v1433_v15 }
  0x13   : > { %348 = vst [vmem:[%s1407_s21 + $0x8] sm:$0x1] %v1364_v7  ;;  %1052 = vst [vmem:[%s1407_s21 + $0xcc] sm:$0xf] %v1364_v7  ;;  %v1061_v13 = vld [vmem:[%s1407_s21 + $0x30] sm:$0x1]  ;;  %v243_v30 = vmul.f32 %v1268_v8, %v1413_v2  ;;  %v244_v37 = vmul.f32 %v1269_v9, %v1413_v2  ;;  %v245_v38 = vmul.f32 %v1272_v14, %v1413_v2  ;;  %v1277_v45 = vunpack.c.h.bf16 %v1433_v15 }
  0x14   : > { %1053 = vst [vmem:[%s1407_s21 + $0xd0] sm:$0xf] %v1364_v7  ;;  %1054 = vst [vmem:[%s1407_s21 + $0xd4] sm:$0x1] %v1364_v7  ;;  %v367_v16 = vsel %vm1395_vm2, 0, %v1061_v13  ;;  %v1443_v20 = vld [vmem:[%s1402_s18 + $0x18] sm:$0xff]   ;;  %v246_v44 = vmul.f32 %v1273_v19, %v1413_v2  ;;  %v247_v57 = vmul.f32 %v1276_v31, %v1413_v2 }
  0x15   : > { %1056 = vst [vmem:[%s1407_s21 + $0xc] sm:$0x1] %v358_v10  ;;  %1058 = vst [vmem:[%s1407_s21 + $0x18] sm:$0x1] %v361_v11  ;;  %v1063_v17 = vld [vmem:[%s1407_s21 + $0x3c] sm:$0x1]  ;;  %v1280_v50 = vunpack.c.l.bf16 %v1443_v20  ;;  %v1281_v51 = vunpack.c.h.bf16 %v1443_v20  ;;  %v1515_v56 = vadd.f32 %v1455_v25, %v243_v30  ;;  %v1527_v62 = vadd.f32 %v1455_v25, %v244_v37 }
  0x16   : > { %1060 = vst [vmem:[%s1407_s21 + $0x24] sm:$0x1] %v364_v12  ;;  %v1065_v18 = vld [vmem:[%s1407_s21 + $0x48] sm:$0x1]  ;;  %1062 = vst [vmem:[%s1407_s21 + $0x30] sm:$0x1] %v367_v16  ;;  %v284_v6 = vadd.f32 %v1455_v25, %v245_v38  ;;  %v248_v7 = vmul.f32 %v1277_v45, %v1413_v2 }
  0x17   : > { %v370_v21 = vsel %vm1395_vm2, 0, %v1063_v17  ;;  %v373_v22 = vsel %vm1395_vm2, 0, %v1065_v18  ;;  %v1067_v23 = vld [vmem:[%s1407_s21 + $0x54] sm:$0x1]  ;;  %v1069_v24 = vld [vmem:[%s1407_s21 + $0x60] sm:$0x1]  ;;  %v249_v12 = vmul.f32 %v1280_v50, %v1413_v2  ;;  %v250_v13 = vmul.f32 %v1281_v51, %v1413_v2 }
  0x18   : > { %1064 = vst [vmem:[%s1407_s21 + $0x3c] sm:$0x1] %v370_v21  ;;  %1066 = vst [vmem:[%s1407_s21 + $0x48] sm:$0x1] %v373_v22  ;;  %v376_v26 = vsel %vm1395_vm2, 0, %v1067_v23  ;;  %v379_v27 = vsel %vm1395_vm2, 0, %v1069_v24  ;;  %v285_v18 = vadd.f32 %v1455_v25, %v246_v44  ;;  %v286_v24 = vadd.f32 %v1455_v25, %v247_v57 }
  0x19   : > { %v1071_v28 = vld [vmem:[%s1407_s21 + $0x6c] sm:$0x1]  ;;  %v1073_v29 = vld [vmem:[%s1407_s21 + $0x78] sm:$0x1]  ;;  %v1468_v32 = vld [vmem:[%s1402_s18 + $0x20] sm:$0xff]   ;;  %v287_v31 = vadd.f32 %v1455_v25, %v248_v7  ;;  %v288_v37 = vadd.f32 %v1455_v25, %v249_v12  ;;  %v289_v38 = vadd.f32 %v1455_v25, %v250_v13  ;;  %v316_v44 = vmax.f32 %v284_v6, 0.0 }
  0x1a   : > { %1068 = vst [vmem:[%s1407_s21 + $0x54] sm:$0x1] %v376_v26  ;;  %1070 = vst [vmem:[%s1407_s21 + $0x60] sm:$0x1] %v379_v27  ;;  %v382_v33 = vsel %vm1395_vm2, 0, %v1071_v28  ;;  %v385_v34 = vsel %vm1395_vm2, 0, %v1073_v29  ;;  %v1284_v63 = vunpack.c.l.bf16 %v1468_v32  ;;  %v1285_v19 = vunpack.c.h.bf16 %v1468_v32 }
  0x1b   : > { %v1075_v35 = vld [vmem:[%s1407_s21 + $0x84] sm:$0x1]  ;;  %v1077_v36 = vld [vmem:[%s1407_s21 + $0x90] sm:$0x1]  ;;  %1072 = vst [vmem:[%s1407_s21 + $0x6c] sm:$0x1] %v382_v33  ;;  %v1236_v43 = vpack.c.bf16 %v316_v44, %v316_v44 }
  0x1c   : > { %1074 = vst [vmem:[%s1407_s21 + $0x78] sm:$0x1] %v385_v34  ;;  %v388_v39 = vsel %vm1395_vm2, 0, %v1075_v35  ;;  %v391_v40 = vsel %vm1395_vm2, 0, %v1077_v36  ;;  %v1079_v41 = vld [vmem:[%s1407_s21 + $0x9c] sm:$0x1]  ;;  %v251_v26 = vmul.f32 %v1284_v63, %v1413_v2  ;;  %v252_v32 = vmul.f32 %v1285_v19, %v1413_v2 }
  0x1d   : > { %v1081_v42 = vld [vmem:[%s1407_s21 + $0xa8] sm:$0x1]  ;;  %1076 = vst [vmem:[%s1407_s21 + $0x84] sm:$0x1] %v388_v39  ;;  %1078 = vst [vmem:[%s1407_s21 + $0x90] sm:$0x1] %v391_v40 }
  0x1e   : > { %v394_v46 = vsel %vm1395_vm2, 0, %v1079_v41  ;;  %v397_v47 = vsel %vm1395_vm2, 0, %v1081_v42  ;;  %v1083_v48 = vld [vmem:[%s1407_s21 + $0xb4] sm:$0x1]  ;;  %v1085_v49 = vld [vmem:[%s1407_s21 + $0xc0] sm:$0x1] }
  0x1f   : > { %1080 = vst [vmem:[%s1407_s21 + $0x9c] sm:$0x1] %v394_v46  ;;  %1082 = vst [vmem:[%s1407_s21 + $0xa8] sm:$0x1] %v397_v47  ;;  %v400_v52 = vsel %vm1395_vm2, 0, %v1083_v48  ;;  %v403_v53 = vsel %vm1395_vm2, 0, %v1085_v49  ;;  %v1601_v46 = vadd.f32 %v1455_v25, %v251_v26  ;;  %v1604_v47 = vadd.f32 %v1455_v25, %v252_v32 }
  0x20   : > { %v1087_v54 = vld [vmem:[%s1407_s21 + $0x14] sm:$0x1]  ;;  %v1089_v55 = vld [vmem:[%s1407_s21 + $0x20] sm:$0x1]  ;;  %1084 = vst [vmem:[%s1407_s21 + $0xb4] sm:$0x1] %v400_v52 }
  0x21   : > { %1086 = vst [vmem:[%s1407_s21 + $0xc0] sm:$0x1] %v403_v53  ;;  %v408_v58 = vsel %vm1490_vm4, 0, %v1087_v54  ;;  %v411_v59 = vsel %vm1490_vm4, 0, %v1089_v55  ;;  %v1091_v60 = vld [vmem:[%s1407_s21 + $0x2c] sm:$0x1] }
  0x22   : > { %v1093_v61 = vld [vmem:[%s1407_s21 + $0x38] sm:$0x1]  ;;  %1088 = vst [vmem:[%s1407_s21 + $0x14] sm:$0x1] %v408_v58  ;;  %1090 = vst [vmem:[%s1407_s21 + $0x20] sm:$0x1] %v411_v59 }
  0x23   : > { %v414_v1 = vsel %vm1490_vm4, 0, %v1091_v60  ;;  %v417_v3 = vsel %vm1490_vm4, 0, %v1093_v61  ;;  %v1095_v4 = vld [vmem:[%s1407_s21 + $0x44] sm:$0x1]  ;;  %v1097_v5 = vld [vmem:[%s1407_s21 + $0x50] sm:$0x1] }
  0x24   : > { %1092 = vst [vmem:[%s1407_s21 + $0x2c] sm:$0x1] %v414_v1  ;;  %1094 = vst [vmem:[%s1407_s21 + $0x38] sm:$0x1] %v417_v3  ;;  %v420_v8 = vsel %vm1490_vm4, 0, %v1095_v4  ;;  %v423_v9 = vsel %vm1490_vm4, 0, %v1097_v5 }
  0x25   : > { %v1099_v10 = vld [vmem:[%s1407_s21 + $0x5c] sm:$0x1]  ;;  %v1101_v11 = vld [vmem:[%s1407_s21 + $0x68] sm:$0x1]  ;;  %1096 = vst [vmem:[%s1407_s21 + $0x44] sm:$0x1] %v420_v8 }
  0x26   : > { %1098 = vst [vmem:[%s1407_s21 + $0x50] sm:$0x1] %v423_v9  ;;  %v426_v14 = vsel %vm1490_vm4, 0, %v1099_v10  ;;  %v429_v15 = vsel %vm1490_vm4, 0, %v1101_v11  ;;  %v1103_v16 = vld [vmem:[%s1407_s21 + $0x74] sm:$0x1] }
  0x27   : > { %v1105_v17 = vld [vmem:[%s1407_s21 + $0x80] sm:$0x1]  ;;  %1100 = vst [vmem:[%s1407_s21 + $0x5c] sm:$0x1] %v426_v14  ;;  %1102 = vst [vmem:[%s1407_s21 + $0x68] sm:$0x1] %v429_v15 }
  0x28   : > { %v432_v20 = vsel %vm1490_vm4, 0, %v1103_v16  ;;  %v435_v21 = vsel %vm1490_vm4, 0, %v1105_v17  ;;  %v1107_v22 = vld [vmem:[%s1407_s21 + $0x8c] sm:$0x1]  ;;  %v1109_v23 = vld [vmem:[%s1407_s21 + $0x98] sm:$0x1] }
  0x29   : > { %1104 = vst [vmem:[%s1407_s21 + $0x74] sm:$0x1] %v432_v20  ;;  %1106 = vst [vmem:[%s1407_s21 + $0x80] sm:$0x1] %v435_v21  ;;  %v438_v27 = vsel %vm1490_vm4, 0, %v1107_v22  ;;  %v441_v28 = vsel %vm1490_vm4, 0, %v1109_v23 }
  0x2a   : > { %v1111_v29 = vld [vmem:[%s1407_s21 + $0xa4] sm:$0x1]  ;;  %v1113_v30 = vld [vmem:[%s1407_s21 + $0xb0] sm:$0x1]  ;;  %1108 = vst [vmem:[%s1407_s21 + $0x8c] sm:$0x1] %v438_v27 }
  0x2b   : > { %1110 = vst [vmem:[%s1407_s21 + $0x98] sm:$0x1] %v441_v28  ;;  %v444_v33 = vsel %vm1490_vm4, 0, %v1111_v29  ;;  %v447_v34 = vsel %vm1490_vm4, 0, %v1113_v30  ;;  %v1115_v35 = vld [vmem:[%s1407_s21 + $0xbc] sm:$0x1] }
  0x2c   : > { %v1117_v36 = vld [vmem:[%s1407_s21 + $0xc8] sm:$0x1]  ;;  %1112 = vst [vmem:[%s1407_s21 + $0xa4] sm:$0x1] %v444_v33  ;;  %1114 = vst [vmem:[%s1407_s21 + $0xb0] sm:$0x1] %v447_v34 }
  0x2d   : > { %v450_v39 = vsel %vm1490_vm4, 0, %v1115_v35  ;;  %v453_v40 = vsel %vm1490_vm4, 0, %v1117_v36  ;;  %v314_v41 = vmax.f32 %v1515_v56, 0.0  ;;  %v315_v42 = vmax.f32 %v1527_v62, 0.0  ;;  %v1151_v6 = vld [vmem:[%s1407_s21 + $0xc] sm:$0xf] }
  0x2e   : > { %1116 = vst [vmem:[%s1407_s21 + $0xbc] sm:$0x1] %v450_v39  ;;  %1118 = vst [vmem:[%s1407_s21 + $0xc8] sm:$0x1] %v453_v40  ;;  %v317_v45 = vmax.f32 %v285_v18, 0.0  ;;  %v318_v50 = vmax.f32 %v286_v24, 0.0 }
  0x2f   : > { %v1234_v48 = vpack.c.bf16 %v314_v41, %v314_v41  ;;  %v1235_v49 = vpack.c.bf16 %v315_v42, %v315_v42  ;;  %v319_v51 = vmax.f32 %v287_v31, 0.0  ;;  %v320_v53 = vmax.f32 %v288_v37, 0.0  ;;  %v1154_v8 = vld [vmem:[%s1407_s21 + $0x14] sm:$0x1]  ;;  %v1156_v17 = vld [vmem:[%s1407_s21 + $0x18] sm:$0xf] }
  0x30   : > { %v1237_v52 = vpack.c.bf16 %v317_v45, %v317_v45  ;;  %v321_v54 = vmax.f32 %v289_v38, 0.0  ;;  %v571_v59 = vshrl.u32 %v1236_v43, 16  ;;  %v574_v60 = vshll.u32 %v1236_v43, 16  ;;  %v1159_v18 = vld [vmem:[%s1407_s21 + $0x20] sm:$0x1]  ;;  %v1334_v36 = vld [vmem:[%s1402_s18 + $0x28] sm:$0xff]  }
  0x31   : > { %v554_v55 = vshrl.u32 %v1234_v48, 16  ;;  %v557_v56 = vshll.u32 %v1234_v48, 16  ;;  %v562_v57 = vshrl.u32 %v1235_v49, 16  ;;  %v565_v58 = vshll.u32 %v1235_v49, 16  ;;  %v1161_v37 = vld [vmem:[%s1407_s21 + $0x24] sm:$0xf] }
  0x32   : > { %v579_v61 = vshrl.u32 %v1237_v52, 16  ;;  %v582_v62 = vshll.u32 %v1237_v52, 16  ;;  %v1238_v4 = vpack.c.bf16 %v318_v50, %v318_v50  ;;  %v1239_v5 = vpack.c.bf16 %v319_v51, %v319_v51  ;;  %v1164_v49 = vld [vmem:[%s1407_s21 + $0x2c] sm:$0x1]  ;;  %v1166_v50 = vld [vmem:[%s1407_s21 + $0x30] sm:$0xf] }
  0x33   : > { %v556_v1 = vrot.slane %v554_v55, 7  ;;  %v564_v3 = vrot.slane %v562_v57, 7  ;;  %v573_v9 = vrot.slane %v571_v59, 7  ;;  %v1240_v11 = vpack.c.bf16 %v320_v53, %v320_v53  ;;  %v1169_v57 = vld [vmem:[%s1407_s21 + $0x38] sm:$0x1] }
  0x34   : > { %v581_v10 = vrot.slane %v579_v61, 7  ;;  %v1241_v12 = vpack.c.bf16 %v321_v54, %v321_v54  ;;  %v588_v27 = vshrl.u32 %v1238_v4, 16  ;;  %v591_v31 = vshll.u32 %v1238_v4, 16 }
  0x35   : > { %v559_v13 = vor.u32 %v557_v56, %v556_v1  ;;  %v560_v14 = vrot.slane %v556_v1, 4  ;;  %v567_v15 = vor.u32 %v565_v58, %v564_v3  ;;  %v569_v16 = vrot.slane %v564_v3, 4 }
  0x36   : > { %v576_v19 = vor.u32 %v574_v60, %v573_v9  ;;  %v577_v20 = vrot.slane %v573_v9, 4  ;;  %v584_v21 = vor.u32 %v582_v62, %v581_v10  ;;  %v586_v22 = vrot.slane %v581_v10, 4  ;;  %v1171_v10 = vld [vmem:[%s1407_s21 + $0x3c] sm:$0xf] }
  0x37   : > { %v876_v23 = vsel %vm1608_vm7, %v559_v13, %v1151_v6  ;;  %v568_v24 = vsel %vm1615_vm8, %v560_v14, %v567_v15  ;;  %v880_v26 = vsel %vm1395_vm2, %v569_v16, %v1154_v8  ;;  %v590_v32 = vrot.slane %v588_v27, 7  ;;  %v1336_v15 = vld [vmem:[%s1402_s18 + $0x38] sm:$0xff]  }
  0x38   : > { %1152 = vst [vmem:[%s1407_s21 + $0xc] sm:$0xf] %v876_v23  ;;  %1153 = vst [vmem:[%s1407_s21 + $0x10] sm:$0xf] %v568_v24  ;;  %v883_v28 = vsel %vm1608_vm7, %v576_v19, %v1156_v17  ;;  %v585_v29 = vsel %vm1615_vm8, %v577_v20, %v584_v21  ;;  %v887_v30 = vsel %vm1395_vm2, %v586_v22, %v1159_v18  ;;  %v596_v33 = vshrl.u32 %v1239_v5, 16 }
  0x39   : > { %1155 = vst [vmem:[%s1407_s21 + $0x14] sm:$0x1] %v880_v26  ;;  %1157 = vst [vmem:[%s1407_s21 + $0x18] sm:$0xf] %v883_v28  ;;  %v599_v34 = vshll.u32 %v1239_v5, 16  ;;  %v605_v35 = vshrl.u32 %v1240_v11, 16  ;;  %v593_v42 = vor.u32 %v591_v31, %v590_v32  ;;  %v1288_v53 = vunpack.c.l.bf16 %v1334_v36 }
  0x3a   : > { %1158 = vst [vmem:[%s1407_s21 + $0x1c] sm:$0xf] %v585_v29  ;;  %1160 = vst [vmem:[%s1407_s21 + $0x20] sm:$0x1] %v887_v30  ;;  %v608_v38 = vshll.u32 %v1240_v11, 16  ;;  %v613_v39 = vshrl.u32 %v1241_v12, 16  ;;  %v1296_v27 = vunpack.c.l.bf16 %v1336_v15  ;;  %v1297_v28 = vunpack.c.h.bf16 %v1336_v15 }
  0x3b   : > { %v616_v40 = vshll.u32 %v1241_v12, 16  ;;  %v322_v41 = vmax.f32 %v1601_v46, 0.0  ;;  %v594_v44 = vrot.slane %v590_v32, 4  ;;  %v598_v45 = vrot.slane %v596_v33, 7  ;;  %v1174_v29 = vld [vmem:[%s1407_s21 + $0x44] sm:$0x1] }
  0x3c   : > { %v607_v48 = vrot.slane %v605_v35, 7  ;;  %v615_v51 = vrot.slane %v613_v39, 7  ;;  %v323_v52 = vmax.f32 %v1604_v47, 0.0  ;;  %v890_v54 = vsel %vm1608_vm7, %v593_v42, %v1161_v37  ;;  %v1335_v47 = vld [vmem:[%s1402_s18 + $0x30] sm:$0xff]   ;;  %v1683_v42 = vld [vmem:[%s1402_s18 + $0x40] sm:$0xff]  }
  0x3d   : > { %v1242_v43 = vpack.c.bf16 %v322_v41, %v322_v41  ;;  %v601_v55 = vor.u32 %v599_v34, %v598_v45  ;;  %v603_v46 = vrot.slane %v598_v45, 4  ;;  %1162 = vst [vmem:[%s1407_s21 + $0x24] sm:$0xf] %v890_v54  ;;  %v253_v11 = vmul.f32 %v1288_v53, %v1413_v2 }
  0x3e   : > { %v610_v56 = vor.u32 %v608_v38, %v607_v48  ;;  %v611_v58 = vrot.slane %v607_v48, 4  ;;  %v618_v59 = vor.u32 %v616_v40, %v615_v51  ;;  %v620_v60 = vrot.slane %v615_v51, 4 }
  0x3f   : > { %v622_v61 = vshrl.u32 %v1242_v43, 16  ;;  %v602_v62 = vsel %vm1615_vm8, %v594_v44, %v601_v55  ;;  %v894_v1 = vsel %vm1395_vm2, %v603_v46, %v1164_v49  ;;  %v625_v4 = vshll.u32 %v1242_v43, 16 }
  0x40   : > { %v897_v3 = vsel %vm1608_vm7, %v610_v56, %v1166_v50  ;;  %1163 = vst [vmem:[%s1407_s21 + $0x28] sm:$0xf] %v602_v62  ;;  %1165 = vst [vmem:[%s1407_s21 + $0x2c] sm:$0x1] %v894_v1  ;;  %v619_v5 = vsel %vm1615_vm8, %v611_v58, %v618_v59  ;;  %v901_v6 = vsel %vm1395_vm2, %v620_v60, %v1169_v57  ;;  %v1289_v12 = vunpack.c.h.bf16 %v1334_v36  ;;  %v1176_v60 = vld [vmem:[%s1407_s21 + $0x48] sm:$0xf] }
  0x41   : > { %1167 = vst [vmem:[%s1407_s21 + $0x30] sm:$0xf] %v897_v3  ;;  %v624_v8 = vrot.slane %v622_v61, 7  ;;  %v1243_v9 = vpack.c.bf16 %v323_v52, %v323_v52  ;;  %1168 = vst [vmem:[%s1407_s21 + $0x34] sm:$0xf] %v619_v5  ;;  %v1292_v13 = vunpack.c.l.bf16 %v1335_v47  ;;  %v1293_v14 = vunpack.c.h.bf16 %v1335_v47 }
  0x42   : > { %1170 = vst [vmem:[%s1407_s21 + $0x38] sm:$0x1] %v901_v6  ;;  %v292_v20 = vadd.f32 %v1455_v25, %v253_v11  ;;  %v254_v21 = vmul.f32 %v1289_v12, %v1413_v2  ;;  %v257_v36 = vmul.f32 %v1296_v27, %v1413_v2  ;;  %v258_v37 = vmul.f32 %v1297_v28, %v1413_v2  ;;  %v1179_v6 = vld [vmem:[%s1407_s21 + $0x50] sm:$0x1]  ;;  %v1186_v27 = vld [vmem:[%s1407_s21 + $0x60] sm:$0xf] }
  0x43   : > { %v627_v16 = vor.u32 %v625_v4, %v624_v8  ;;  %v628_v17 = vrot.slane %v624_v8, 4  ;;  %v630_v18 = vshrl.u32 %v1243_v9, 16  ;;  %v633_v19 = vshll.u32 %v1243_v9, 16  ;;  %v1181_v9 = vld [vmem:[%s1407_s21 + $0x54] sm:$0xf] }
  0x44   : > { %v255_v22 = vmul.f32 %v1292_v13, %v1413_v2  ;;  %v256_v23 = vmul.f32 %v1293_v14, %v1413_v2  ;;  %v324_v30 = vmax.f32 %v292_v20, 0.0  ;;  %v293_v31 = vadd.f32 %v1455_v25, %v254_v21 }
  0x45   : > { %v904_v24 = vsel %vm1608_vm7, %v627_v16, %v1171_v10  ;;  %v632_v26 = vrot.slane %v630_v18, 7  ;;  %v296_v48 = vadd.f32 %v1455_v25, %v257_v36  ;;  %v297_v49 = vadd.f32 %v1455_v25, %v258_v37  ;;  %v1184_v18 = vld [vmem:[%s1407_s21 + $0x5c] sm:$0x1] }
  0x46   : > { %1172 = vst [vmem:[%s1407_s21 + $0x3c] sm:$0xf] %v904_v24  ;;  %v294_v32 = vadd.f32 %v1455_v25, %v255_v22  ;;  %v295_v33 = vadd.f32 %v1455_v25, %v256_v23  ;;  %v1244_v38 = vpack.c.bf16 %v324_v30, %v324_v30  ;;  %v325_v39 = vmax.f32 %v293_v31, 0.0  ;;  %v1339_v30 = vld [vmem:[%s1402_s18 + $0x50] sm:$0xff]  }
  0x47   : > { %v635_v34 = vor.u32 %v633_v19, %v632_v26  ;;  %v637_v35 = vrot.slane %v632_v26, 4  ;;  %v328_v54 = vmax.f32 %v296_v48, 0.0  ;;  %v329_v55 = vmax.f32 %v297_v49, 0.0 }
  0x48   : > { %v326_v40 = vmax.f32 %v294_v32, 0.0  ;;  %v327_v41 = vmax.f32 %v295_v33, 0.0  ;;  %v639_v50 = vshrl.u32 %v1244_v38, 16  ;;  %v642_v51 = vshll.u32 %v1244_v38, 16 }
  0x49   : > { %v636_v44 = vsel %vm1615_vm8, %v628_v17, %v635_v34  ;;  %v908_v45 = vsel %vm1395_vm2, %v637_v35, %v1174_v29  ;;  %v1245_v43 = vpack.c.bf16 %v325_v39, %v325_v39  ;;  %v1300_v46 = vunpack.c.l.bf16 %v1683_v42  ;;  %v1338_v29 = vld [vmem:[%s1402_s18 + $0x48] sm:$0xff]  }
  0x4a   : > { %1173 = vst [vmem:[%s1407_s21 + $0x40] sm:$0xf] %v636_v44  ;;  %1175 = vst [vmem:[%s1407_s21 + $0x44] sm:$0x1] %v908_v45  ;;  %v1246_v52 = vpack.c.bf16 %v326_v40, %v326_v40  ;;  %v1247_v53 = vpack.c.bf16 %v327_v41, %v327_v41  ;;  %v641_v56 = vrot.slane %v639_v50, 7  ;;  %v1248_v1 = vpack.c.bf16 %v328_v54, %v328_v54  ;;  %v1731_v54 = vld [vmem:[%s1402_s18 + $0x58] sm:$0xff]  }
  0x4b   : > { %v647_v57 = vshrl.u32 %v1245_v43, 16  ;;  %v650_v58 = vshll.u32 %v1245_v43, 16  ;;  %v1249_v13 = vpack.c.bf16 %v329_v55, %v329_v55  ;;  %v259_v37 = vmul.f32 %v1300_v46, %v1413_v2  ;;  %v1189_v40 = vld [vmem:[%s1407_s21 + $0x68] sm:$0x1] }
  0x4c   : > { %v656_v59 = vshrl.u32 %v1246_v52, 16  ;;  %v659_v61 = vshll.u32 %v1246_v52, 16  ;;  %v664_v47 = vshrl.u32 %v1247_v53, 16  ;;  %v667_v62 = vshll.u32 %v1247_v53, 16 }
  0x4d   : > { %v644_v3 = vor.u32 %v642_v51, %v641_v56  ;;  %v645_v4 = vrot.slane %v641_v56, 4  ;;  %v649_v5 = vrot.slane %v647_v57, 7  ;;  %v673_v11 = vshrl.u32 %v1248_v1, 16 }
  0x4e   : > { %v658_v8 = vrot.slane %v656_v59, 7  ;;  %v666_v10 = vrot.slane %v664_v47, 7  ;;  %v676_v12 = vshll.u32 %v1248_v1, 16  ;;  %v681_v28 = vshrl.u32 %v1249_v13, 16 }
  0x4f   : > { %v911_v14 = vsel %vm1608_vm7, %v644_v3, %v1176_v60  ;;  %v652_v15 = vor.u32 %v650_v58, %v649_v5  ;;  %v654_v16 = vrot.slane %v649_v5, 4  ;;  %v675_v22 = vrot.slane %v673_v11, 7 }
  0x50   : > { %v661_v17 = vor.u32 %v659_v61, %v658_v8  ;;  %1177 = vst [vmem:[%s1407_s21 + $0x48] sm:$0xf] %v911_v14  ;;  %v662_v19 = vrot.slane %v658_v8, 4  ;;  %v669_v20 = vor.u32 %v667_v62, %v666_v10  ;;  %v671_v21 = vrot.slane %v666_v10, 4 }
  0x51   : > { %v653_v23 = vsel %vm1615_vm8, %v645_v4, %v652_v15  ;;  %v915_v24 = vsel %vm1395_vm2, %v654_v16, %v1179_v6  ;;  %v678_v33 = vor.u32 %v676_v12, %v675_v22  ;;  %v679_v34 = vrot.slane %v675_v22, 4 }
  0x52   : > { %v918_v26 = vsel %vm1608_vm7, %v661_v17, %v1181_v9  ;;  %1178 = vst [vmem:[%s1407_s21 + $0x4c] sm:$0xf] %v653_v23  ;;  %1180 = vst [vmem:[%s1407_s21 + $0x50] sm:$0x1] %v915_v24  ;;  %v670_v31 = vsel %vm1615_vm8, %v662_v19, %v669_v20  ;;  %v922_v32 = vsel %vm1395_vm2, %v671_v21, %v1184_v18  ;;  %v683_v35 = vrot.slane %v681_v28, 7 }
  0x53   : > { %1182 = vst [vmem:[%s1407_s21 + $0x54] sm:$0xf] %v918_v26  ;;  %1183 = vst [vmem:[%s1407_s21 + $0x58] sm:$0xf] %v670_v31  ;;  %v684_v36 = vshll.u32 %v1249_v13, 16  ;;  %v1301_v38 = vunpack.c.h.bf16 %v1683_v42  ;;  %v925_v39 = vsel %vm1608_vm7, %v678_v33, %v1186_v27  ;;  %v1304_v41 = vunpack.c.l.bf16 %v1338_v29 }
  0x54   : > { %1185 = vst [vmem:[%s1407_s21 + $0x5c] sm:$0x1] %v922_v32  ;;  %v1305_v44 = vunpack.c.h.bf16 %v1338_v29  ;;  %v1308_v45 = vunpack.c.l.bf16 %v1339_v30  ;;  %1187 = vst [vmem:[%s1407_s21 + $0x60] sm:$0xf] %v925_v39  ;;  %v688_v49 = vrot.slane %v683_v35, 4  ;;  %v298_v50 = vadd.f32 %v1455_v25, %v259_v37 }
  0x55   : > { %v686_v48 = vor.u32 %v684_v36, %v683_v35  ;;  %v260_v51 = vmul.f32 %v1301_v38, %v1413_v2  ;;  %v261_v43 = vmul.f32 %v1304_v41, %v1413_v2  ;;  %v1309_v53 = vunpack.c.h.bf16 %v1339_v30  ;;  %v1191_v21 = vld [vmem:[%s1407_s21 + $0x6c] sm:$0xf]  ;;  %v1194_v31 = vld [vmem:[%s1407_s21 + $0x74] sm:$0x1]  ;;  %v1196_v39 = vld [vmem:[%s1407_s21 + $0x78] sm:$0xf] }
  0x56   : > { %v262_v42 = vmul.f32 %v1305_v44, %v1413_v2  ;;  %v263_v52 = vmul.f32 %v1308_v45, %v1413_v2  ;;  %v929_v46 = vsel %vm1395_vm2, %v688_v49, %v1189_v40  ;;  %v330_v56 = vmax.f32 %v298_v50, 0.0  ;;  %v1199_v40 = vld [vmem:[%s1407_s21 + $0x80] sm:$0x1]  ;;  %v1201_v50 = vld [vmem:[%s1407_s21 + $0x84] sm:$0xf] }
  0x57   : > { %v687_v55 = vsel %vm1615_vm8, %v679_v34, %v686_v48  ;;  %v299_v57 = vadd.f32 %v1455_v25, %v260_v51  ;;  %1190 = vst [vmem:[%s1407_s21 + $0x68] sm:$0x1] %v929_v46  ;;  %v300_v58 = vadd.f32 %v1455_v25, %v261_v43  ;;  %v264_v61 = vmul.f32 %v1309_v53, %v1413_v2  ;;  %v1341_v53 = vld [vmem:[%s1402_s18 + $0x60] sm:$0xff]  }
  0x58   : > { %1188 = vst [vmem:[%s1407_s21 + $0x64] sm:$0xf] %v687_v55  ;;  %v301_v59 = vadd.f32 %v1455_v25, %v262_v42  ;;  %v302_v60 = vadd.f32 %v1455_v25, %v263_v52  ;;  %v1250_v47 = vpack.c.bf16 %v330_v56, %v330_v56  ;;  %v1312_v1 = vunpack.c.l.bf16 %v1731_v54 }
  0x59   : > { %v331_v62 = vmax.f32 %v299_v57, 0.0  ;;  %v1313_v3 = vunpack.c.h.bf16 %v1731_v54  ;;  %v332_v4 = vmax.f32 %v300_v58, 0.0  ;;  %v303_v8 = vadd.f32 %v1455_v25, %v264_v61  ;;  %v1342_v54 = vld [vmem:[%s1402_s18 + $0x68] sm:$0xff]   ;;  %v1343_v58 = vld [vmem:[%s1402_s18 + $0x70] sm:$0xff]  }
  0x5a   : > { %v333_v5 = vmax.f32 %v301_v59, 0.0  ;;  %v334_v6 = vmax.f32 %v302_v60, 0.0  ;;  %v690_v9 = vshrl.u32 %v1250_v47, 16  ;;  %v693_v10 = vshll.u32 %v1250_v47, 16 }
  0x5b   : > { %v1251_v11 = vpack.c.bf16 %v331_v62, %v331_v62  ;;  %v265_v12 = vmul.f32 %v1312_v1, %v1413_v2  ;;  %v1252_v13 = vpack.c.bf16 %v332_v4, %v332_v4  ;;  %v335_v16 = vmax.f32 %v303_v8, 0.0 }
  0x5c   : > { %v1253_v14 = vpack.c.bf16 %v333_v5, %v333_v5  ;;  %v1254_v15 = vpack.c.bf16 %v334_v6, %v334_v6  ;;  %v692_v17 = vrot.slane %v690_v9, 7  ;;  %v266_v47 = vmul.f32 %v1313_v3, %v1413_v2  ;;  %v1204_v6 = vld [vmem:[%s1407_s21 + $0x8c] sm:$0x1] }
  0x5d   : > { %v698_v18 = vshrl.u32 %v1251_v11, 16  ;;  %v701_v19 = vshll.u32 %v1251_v11, 16  ;;  %v304_v20 = vadd.f32 %v1455_v25, %v265_v12  ;;  %v707_v22 = vshrl.u32 %v1252_v13, 16 }
  0x5e   : > { %v710_v23 = vshll.u32 %v1252_v13, 16  ;;  %v715_v24 = vshrl.u32 %v1253_v14, 16  ;;  %v718_v26 = vshll.u32 %v1253_v14, 16  ;;  %v695_v27 = vor.u32 %v693_v10, %v692_v17 }
  0x5f   : > { %v696_v28 = vrot.slane %v692_v17, 4  ;;  %v700_v29 = vrot.slane %v698_v18, 7  ;;  %v724_v30 = vshrl.u32 %v1254_v15, 16  ;;  %v709_v32 = vrot.slane %v707_v22, 7 }
  0x60   : > { %v717_v33 = vrot.slane %v715_v24, 7  ;;  %v727_v34 = vshll.u32 %v1254_v15, 16  ;;  %v1255_v35 = vpack.c.bf16 %v335_v16, %v335_v16  ;;  %v932_v36 = vsel %vm1608_vm7, %v695_v27, %v1191_v21 }
  0x61   : > { %v703_v37 = vor.u32 %v701_v19, %v700_v29  ;;  %v705_v38 = vrot.slane %v700_v29, 4  ;;  %v726_v41 = vrot.slane %v724_v30, 7  ;;  %1192 = vst [vmem:[%s1407_s21 + $0x6c] sm:$0xf] %v932_v36  ;;  %v712_v44 = vor.u32 %v710_v23, %v709_v32 }
  0x62   : > { %v713_v45 = vrot.slane %v709_v32, 4  ;;  %v720_v48 = vor.u32 %v718_v26, %v717_v33  ;;  %v722_v49 = vrot.slane %v717_v33, 4  ;;  %v732_v57 = vshrl.u32 %v1255_v35, 16 }
  0x63   : > { %v704_v51 = vsel %vm1615_vm8, %v696_v28, %v703_v37  ;;  %v936_v43 = vsel %vm1395_vm2, %v705_v38, %v1194_v31  ;;  %v729_v42 = vor.u32 %v727_v34, %v726_v41  ;;  %v730_v52 = vrot.slane %v726_v41, 4  ;;  %v1206_v28 = vld [vmem:[%s1407_s21 + $0x90] sm:$0xf] }
  0x64   : > { %1193 = vst [vmem:[%s1407_s21 + $0x70] sm:$0xf] %v704_v51  ;;  %1195 = vst [vmem:[%s1407_s21 + $0x74] sm:$0x1] %v936_v43  ;;  %v939_v55 = vsel %vm1608_vm7, %v712_v44, %v1196_v39  ;;  %v721_v46 = vsel %vm1615_vm8, %v713_v45, %v720_v48  ;;  %v943_v56 = vsel %vm1395_vm2, %v722_v49, %v1199_v40  ;;  %v735_v60 = vshll.u32 %v1255_v35, 16 }
  0x65   : > { %1197 = vst [vmem:[%s1407_s21 + $0x78] sm:$0xf] %v939_v55  ;;  %1198 = vst [vmem:[%s1407_s21 + $0x7c] sm:$0xf] %v721_v46  ;;  %v946_v59 = vsel %vm1608_vm7, %v729_v42, %v1201_v50  ;;  %v336_v61 = vmax.f32 %v304_v20, 0.0  ;;  %v734_v62 = vrot.slane %v732_v57, 7  ;;  %v1316_v1 = vunpack.c.l.bf16 %v1341_v53 }
  0x66   : > { %1200 = vst [vmem:[%s1407_s21 + $0x80] sm:$0x1] %v943_v56  ;;  %1202 = vst [vmem:[%s1407_s21 + $0x84] sm:$0xf] %v946_v59  ;;  %v1317_v4 = vunpack.c.h.bf16 %v1341_v53  ;;  %v1320_v5 = vunpack.c.l.bf16 %v1342_v54  ;;  %v305_v9 = vadd.f32 %v1455_v25, %v266_v47  ;;  %v1321_v10 = vunpack.c.h.bf16 %v1342_v54  ;;  %v1209_v49 = vld [vmem:[%s1407_s21 + $0x98] sm:$0x1] }
  0x67   : > { %v1256_v8 = vpack.c.bf16 %v336_v61, %v336_v61  ;;  %v1324_v11 = vunpack.c.l.bf16 %v1343_v58  ;;  %v737_v12 = vor.u32 %v735_v60, %v734_v62  ;;  %v739_v13 = vrot.slane %v734_v62, 4  ;;  %v1211_v56 = vld [vmem:[%s1407_s21 + $0x9c] sm:$0xf]  ;;  %v1214_v61 = vld [vmem:[%s1407_s21 + $0xa4] sm:$0x1] }
  0x68   : > { %v267_v14 = vmul.f32 %v1316_v1, %v1413_v2  ;;  %v268_v3 = vmul.f32 %v1317_v4, %v1413_v2  ;;  %v337_v17 = vmax.f32 %v305_v9, 0.0  ;;  %v269_v18 = vmul.f32 %v1320_v5, %v1413_v2  ;;  %v1344_v1 = vld [vmem:[%s1402_s18 + $0x78] sm:$0xff]  }
  0x69   : > { %v741_v15 = vshrl.u32 %v1256_v8, 16  ;;  %v744_v16 = vshll.u32 %v1256_v8, 16  ;;  %v738_v19 = vsel %vm1615_vm8, %v730_v52, %v737_v12  ;;  %v950_v20 = vsel %vm1395_vm2, %v739_v13, %v1204_v6 }
  0x6a   : > { %v306_v21 = vadd.f32 %v1455_v25, %v267_v14  ;;  %v307_v22 = vadd.f32 %v1455_v25, %v268_v3  ;;  %1203 = vst [vmem:[%s1407_s21 + $0x88] sm:$0xf] %v738_v19  ;;  %1205 = vst [vmem:[%s1407_s21 + $0x8c] sm:$0x1] %v950_v20  ;;  %v1257_v24 = vpack.c.bf16 %v337_v17, %v337_v17  ;;  %v1325_v32 = vunpack.c.h.bf16 %v1343_v58 }
  0x6b   : > { %v743_v23 = vrot.slane %v741_v15, 7  ;;  %v308_v26 = vadd.f32 %v1455_v25, %v269_v18  ;;  %v270_v27 = vmul.f32 %v1321_v10, %v1413_v2  ;;  %v271_v31 = vmul.f32 %v1324_v11, %v1413_v2  ;;  %v1216_v15 = vld [vmem:[%s1407_s21 + $0xa8] sm:$0xf] }
  0x6c   : > { %v338_v29 = vmax.f32 %v306_v21, 0.0  ;;  %v339_v30 = vmax.f32 %v307_v22, 0.0  ;;  %v749_v35 = vshrl.u32 %v1257_v24, 16  ;;  %v752_v36 = vshll.u32 %v1257_v24, 16 }
  0x6d   : > { %v746_v33 = vor.u32 %v744_v16, %v743_v23  ;;  %v747_v34 = vrot.slane %v743_v23, 4  ;;  %v340_v39 = vmax.f32 %v308_v26, 0.0  ;;  %v309_v40 = vadd.f32 %v1455_v25, %v270_v27  ;;  %v1355_v23 = vld [vmem:[%s1864_s1] ss:$0 sm:$0xff] }
  0x6e   : > { %v1258_v37 = vpack.c.bf16 %v338_v29, %v338_v29  ;;  %v1259_v38 = vpack.c.bf16 %v339_v30, %v339_v30  ;;  %v751_v44 = vrot.slane %v749_v35, 7  ;;  %v310_v45 = vadd.f32 %v1455_v25, %v271_v31  ;;  %v1219_v30 = vld [vmem:[%s1407_s21 + $0xb0] sm:$0x1] }
  0x6f   : > { %v953_v41 = vsel %vm1608_vm7, %v746_v33, %v1206_v28  ;;  %v272_v48 = vmul.f32 %v1325_v32, %v1413_v2  ;;  %v1260_v54 = vpack.c.bf16 %v340_v39, %v340_v39  ;;  %v341_v55 = vmax.f32 %v309_v40, 0.0 }
  0x70   : > { %1207 = vst [vmem:[%s1407_s21 + $0x90] sm:$0xf] %v953_v41  ;;  %v758_v50 = vshrl.u32 %v1258_v37, 16  ;;  %v761_v51 = vshll.u32 %v1258_v37, 16  ;;  %v766_v43 = vshrl.u32 %v1259_v38, 16  ;;  %v769_v42 = vshll.u32 %v1259_v38, 16 }
  0x71   : > { %v754_v52 = vor.u32 %v752_v36, %v751_v44  ;;  %v756_v53 = vrot.slane %v751_v44, 4  ;;  %v342_v58 = vmax.f32 %v310_v45, 0.0  ;;  %v311_v2 = vadd.f32 %v1455_v25, %v272_v48  ;;  %v1221_v37 = vld [vmem:[%s1407_s21 + $0xb4] sm:$0xf] }
  0x72   : > { %v760_v46 = vrot.slane %v758_v50, 7  ;;  %v768_v57 = vrot.slane %v766_v43, 7  ;;  %v775_v47 = vshrl.u32 %v1260_v54, 16  ;;  %v778_v62 = vshll.u32 %v1260_v54, 16 }
  0x73   : > { %v755_v59 = vsel %vm1615_vm8, %v747_v34, %v754_v52  ;;  %v957_v60 = vsel %vm1395_vm2, %v756_v53, %v1209_v49  ;;  %v1261_v10 = vpack.c.bf16 %v341_v55, %v341_v55  ;;  %v1262_v11 = vpack.c.bf16 %v342_v58, %v342_v58  ;;  %v1224_v49 = vld [vmem:[%s1407_s21 + $0xbc] sm:$0x1]  ;;  %v1226_v58 = vld [vmem:[%s1407_s21 + $0xc0] sm:$0xf] }
  0x74   : > { %1208 = vst [vmem:[%s1407_s21 + $0x94] sm:$0xf] %v755_v59  ;;  %1210 = vst [vmem:[%s1407_s21 + $0x98] sm:$0x1] %v957_v60  ;;  %v763_v4 = vor.u32 %v761_v51, %v760_v46  ;;  %v764_v5 = vrot.slane %v760_v46, 4  ;;  %v771_v6 = vor.u32 %v769_v42, %v768_v57  ;;  %v773_v8 = vrot.slane %v768_v57, 4 }
  0x75   : > { %v777_v9 = vrot.slane %v775_v47, 7  ;;  %v343_v12 = vmax.f32 %v311_v2, 0.0  ;;  %v1328_v16 = vunpack.c.l.bf16 %v1344_v1  ;;  %v783_v18 = vshrl.u32 %v1261_v10, 16 }
  0x76   : > { %v960_v13 = vsel %vm1608_vm7, %v763_v4, %v1211_v56  ;;  %v772_v14 = vsel %vm1615_vm8, %v764_v5, %v771_v6  ;;  %v964_v3 = vsel %vm1395_vm2, %v773_v8, %v1214_v61  ;;  %v786_v19 = vshll.u32 %v1261_v10, 16 }
  0x77   : > { %1212 = vst [vmem:[%s1407_s21 + $0x9c] sm:$0xf] %v960_v13  ;;  %1213 = vst [vmem:[%s1407_s21 + $0xa0] sm:$0xf] %v772_v14  ;;  %v780_v17 = vor.u32 %v778_v62, %v777_v9  ;;  %v792_v20 = vshrl.u32 %v1262_v11, 16  ;;  %v795_v21 = vshll.u32 %v1262_v11, 16  ;;  %v1263_v22 = vpack.c.bf16 %v343_v12, %v343_v12 }
  0x78   : > { %1215 = vst [vmem:[%s1407_s21 + $0xa4] sm:$0x1] %v964_v3  ;;  %v273_v24 = vmul.f32 %v1355_v23, %v1328_v16  ;;  %v781_v27 = vrot.slane %v777_v9, 4  ;;  %v785_v28 = vrot.slane %v783_v18, 7  ;;  %v1329_v29 = vunpack.c.h.bf16 %v1344_v1  ;;  %v1229_v1 = vld [vmem:[%s1407_s21 + $0xc8] sm:$0x1] }
  0x79   : > { %v967_v26 = vsel %vm1608_vm7, %v780_v17, %v1216_v15  ;;  %v794_v31 = vrot.slane %v792_v20, 7  ;;  %v800_v32 = vshrl.u32 %v1263_v22, 16  ;;  %v803_v33 = vshll.u32 %v1263_v22, 16 }
  0x7a   : > { %1217 = vst [vmem:[%s1407_s21 + $0xa8] sm:$0xf] %v967_v26  ;;  %v312_v34 = vadd.f32 %v1455_v25, %v273_v24  ;;  %v788_v35 = vor.u32 %v786_v19, %v785_v28  ;;  %v790_v36 = vrot.slane %v785_v28, 4  ;;  %v274_v38 = vmul.f32 %v1355_v23, %v1329_v29 }
  0x7b   : > { %v797_v39 = vor.u32 %v795_v21, %v794_v31  ;;  %v798_v40 = vrot.slane %v794_v31, 4  ;;  %v802_v41 = vrot.slane %v800_v32, 7 }
  0x7c   : > { %v344_v44 = vmax.f32 %v312_v34, 0.0  ;;  %v789_v45 = vsel %vm1615_vm8, %v781_v27, %v788_v35  ;;  %v971_v48 = vsel %vm1395_vm2, %v790_v36, %v1219_v30  ;;  %v313_v50 = vadd.f32 %v1455_v25, %v274_v38 }
  0x7d   : > { %1218 = vst [vmem:[%s1407_s21 + $0xac] sm:$0xf] %v789_v45  ;;  %1220 = vst [vmem:[%s1407_s21 + $0xb0] sm:$0x1] %v971_v48  ;;  %v974_v51 = vsel %vm1608_vm7, %v797_v39, %v1221_v37  ;;  %v805_v43 = vor.u32 %v803_v33, %v802_v41  ;;  %v807_v42 = vrot.slane %v802_v41, 4 }
  0x7e   : > { %v1264_v52 = vpack.c.bf16 %v344_v44, %v344_v44  ;;  %1222 = vst [vmem:[%s1407_s21 + $0xb4] sm:$0xf] %v974_v51  ;;  %v345_v53 = vmax.f32 %v313_v50, 0.0 }
  0x7f   : > { %v806_v54 = vsel %vm1615_vm8, %v798_v40, %v805_v43  ;;  %v978_v55 = vsel %vm1395_vm2, %v807_v42, %v1224_v49 }
  0x80   : > { %v809_v25 = vshrl.u32 %v1264_v52, 16  ;;  %v812_v46 = vshll.u32 %v1264_v52, 16  ;;  %1223 = vst [vmem:[%s1407_s21 + $0xb8] sm:$0xf] %v806_v54  ;;  %1225 = vst [vmem:[%s1407_s21 + $0xbc] sm:$0x1] %v978_v55  ;;  %v1265_v56 = vpack.c.bf16 %v345_v53, %v345_v53 }
  0x82   : > { %v811_v57 = vrot.slane %v809_v25, 7  ;;  %v817_v2 = vshrl.u32 %v1265_v56, 16  ;;  %v820_v59 = vshll.u32 %v1265_v56, 16 }
  0x84   : > { %v814_v60 = vor.u32 %v812_v46, %v811_v57  ;;  %v815_v61 = vrot.slane %v811_v57, 4  ;;  %v819_v47 = vrot.slane %v817_v2, 7 }
  0x86   : > { %v981_v62 = vsel %vm1608_vm7, %v814_v60, %v1226_v58  ;;  %v822_v4 = vor.u32 %v820_v59, %v819_v47  ;;  %v824_v5 = vrot.slane %v819_v47, 4 }
  0x87   : > { %1227 = vst [vmem:[%s1407_s21 + $0xc0] sm:$0xf] %v981_v62 }
  0x88   : > { %v823_v6 = vsel %vm1615_vm8, %v815_v61, %v822_v4  ;;  %v985_v8 = vsel %vm1395_vm2, %v824_v5, %v1229_v1 }
  0x89   : > { %1228 = vst [vmem:[%s1407_s21 + $0xc4] sm:$0xf] %v823_v6  ;;  %1230 = vst [vmem:[%s1407_s21 + $0xc8] sm:$0x1] %v985_v8 }
  0x8a PF: > { %s13_s12 = sadd.s32 1, %s1362_s12  }
  0x8b   : > { %p10_p4 = scmp.ge.s32.totalorder %s13_s12, 4  }
  0x8d   :  { %12 = sbr.rel (!%p10_p4) target bundleno = 1 (0x1), region = 64 }

// kernel: residual_block_forward.4
= control target key start
LH: loop header
LB: loop body
LE: loop exit
PB: predicated region body
PF: predicated region fallthrough
CT: control target
= control target key end

     0   :  { %s4001_s15 = smov 0   ;;  %s4003_s16 = smov 0   ;;  %s5325_s0 = inlined_call_operand.vmem [shape: bf16[2,18,18,128], index: 0, kind: input, shape index: {}]   ;;  %s5326_s1 = inlined_call_operand.vmem [shape: bf16[1152,128], index: 1, kind: input, shape index: {}]   ;;  %s5327_s2 = inlined_call_operand.vmem [shape: bf16[2,16,16,128], index: 2, kind: output, shape index: {0}]   ;;  %s5328_s3 = inlined_call_operand.vmem [shape: f32[2,1,8,128], index: 3, kind: output, shape index: {1}]   ;;  %s5329_s4 = inlined_call_operand.vmem [shape: f32[2,1,8,128], index: 4, kind: output, shape index: {2}]  }
   0x1   :  { %s4005_s17 = smov 0  }
   0x2 LB: > { %s27_s18 = sadd.s32 1, %s3970_s16  ;;  %p2977_p0 = scmp.ge.s32.totalorder %s3974_s17, 1  ;;  %s3974_s17 = sphi %s4005_s17, %s15_s17   ;;  %s3970_s16 = sphi %s4003_s16, %s5360_s16   ;;  %s3966_s15 = sphi %s4001_s15, %s5359_s15  }
   0x3   : > { %p29_p1 = scmp.ge.s32.totalorder %s27_s18, 2  ;;  %p185_p2 = scmp.lt.s32.totalorder %s3974_s17, 3 }
   0x5   : > { %s5362_s18 = smov (%p29_p1, %s27_s18), 0  ;;  %p186_p3 = pnand %p2977_p0, %p185_p2 }
   0x7   : > { %189 = sbr.rel (%p186_p3) target bundleno = 571 (0x23b), region = 28 }
   0xe   : > { %v3850_v0 = vld [vmem:[%s5326_s1 + $0x40] sm:$0xff]   ;;  %p230_p4 = scmp.lt.s32.totalorder %s3966_s15, 1  ;;  %v3852_v2 = vld [vmem:[%s5326_s1 + $0x48] sm:$0xff]   ;;  %v3854_v4 = vld [vmem:[%s5326_s1 + $0x50] sm:$0xff]   ;;  %vm319_vm0 = vsmask.f32 3328 }
   0xf   : > { %v3851_v1 = vld [vmem:[%s5326_s1] sm:$0xff]   ;;  %3289 = vmatprep.subr.bf16.mxu0 %v3850_v0  ;;  %3809 = vmatprep.subr.bf16.mxu1 %v3850_v0  ;;  %v3853_v3 = vld [vmem:[%s5326_s1 + $0x8] sm:$0xff]   ;;  %v3855_v5 = vld [vmem:[%s5326_s1 + $0x10] sm:$0xff]   ;;  %vm320_vm1 = vsmask.f32 7440  ;;  %vm754_vm3 = vcmask 1042432  }
  0x10   : > { %3290 = vmatpush3.bf16.msra.mxu0 %v3851_v1  ;;  %3817 = vmatpush3.bf16.msra.mxu1 %v3851_v1  ;;  %s5364_s15 = smov (!%p230_p4, %s3966_s15), 1  ;;  %v3856_v6 = vld [vmem:[%s5326_s1 + $0x58] sm:$0xff]   ;;  %v3858_v8 = vld [vmem:[%s5326_s1 + $0x60] sm:$0xff]   ;;  %v3860_v10 = vld [vmem:[%s5326_s1 + $0x68] sm:$0xff]   ;;  %vm755_vm4 = vcmask 1046532  }
  0x11   : > { %3291 = vmatprep.subr.bf16.mxu0 %v3852_v2  ;;  %3810 = vmatprep.subr.bf16.mxu1 %v3852_v2  ;;  %s3825_s7 = smul.u32 216, %s5364_s15  ;;  %v3857_v7 = vld [vmem:[%s5326_s1 + $0x18] sm:$0xff]   ;;  %v3859_v9 = vld [vmem:[%s5326_s1 + $0x20] sm:$0xff]   ;;  %v3861_v16 = vld [vmem:[%s5326_s1 + $0x28] sm:$0xff]   ;;  %s2981_s22 = sshll.u32 %s5364_s15, 3 }
  0x12   : > { %v3862_v21 = vld [vmem:[%s5326_s1 + $0x70] sm:$0xff]   ;;  %v3864_v36 = vld [vmem:[%s5326_s1 + $0x78] sm:$0xff]   ;;  %vm4097_vm2 = vmor %vm319_vm0, %vm320_vm1  ;;  %s252_s25 = scalar_lea.vmem %s5328_s3, %s2981_s22  ;;  %s259_s28 = scalar_lea.vmem %s5329_s4, %s2981_s22 }
  0x13   : > { %s4052_s14 = scalar_lea.vmem %s5325_s0, %s3825_s7  ;;  %v3863_v31 = vld [vmem:[%s5326_s1 + $0x30] sm:$0xff]   ;;  %v3865_v50 = vld [vmem:[%s5326_s1 + $0x38] sm:$0xff]   ;;  %v3868_v57 = vld [vmem:[%s5326_s1 + $0xc0] sm:$0xff]  }
  0x14   : > { %3292 = vmatpush3.bf16.msra.mxu0 %v3853_v3  ;;  %3818 = vmatpush3.bf16.msra.mxu1 %v3853_v3  ;;  %v4061_v11 = vld [vmem:[%s4052_s14] sm:$0xf]  ;;  %v4064_v12 = vld [vmem:[%s4052_s14 + $0x4] sm:$0xf]  ;;  %v4067_v13 = vld [vmem:[%s4052_s14 + $0x8] sm:$0x1] }
  0x15   : > { %3293 = vmatprep.subr.bf16.mxu0 %v3854_v4  ;;  %3811 = vmatprep.subr.bf16.mxu1 %v3854_v4  ;;  %v323_v14 = vshrl.u32 %v4061_v11, 16  ;;  %v326_v15 = vshll.u32 %v4061_v11, 16  ;;  %v332_v17 = vshll.u32 %v4064_v12, 16  ;;  %v336_v18 = vshrl.u32 %v4064_v12, 16  ;;  %v4078_v20 = vld [vmem:[%s4052_s14 + $0x90] sm:$0xf]  ;;  %vm4290_vm5 = vmor %vm754_vm3, %vm755_vm4 }
  0x16   : > { %v342_v19 = vshll.u32 %v4067_v13, 16  ;;  %v2983_v24 = vrot.slane %v4061_v11, 9  ;;  %v302_v25 = vld [vmem:[%s4052_s14 + $0x94] sm:$0xf]  ;;  %v759_v28 = vrot.slane %v4064_v12, 5  ;;  %v611_v30 = vshrl.u32 %v4078_v20, 16 }
  0x17   : > { %v325_v22 = vrot.slane %v323_v14, 4  ;;  %v328_v23 = vrot.slane %v326_v15, 5  ;;  %v334_v26 = vrot.slane %v332_v17, 5  ;;  %v338_v27 = vrot.slane %v336_v18, 4  ;;  %v303_v29 = vld [vmem:[%s4052_s14 + $0x98] sm:$0x1] }
  0x18   : > { %3294 = vmatpush3.bf16.msra.mxu0 %v3855_v5  ;;  %3819 = vmatpush3.bf16.msra.mxu1 %v3855_v5  ;;  %v344_v33 = vrot.slane %v342_v19, 5  ;;  %v614_v34 = vshll.u32 %v4078_v20, 16  ;;  %v620_v35 = vshll.u32 %v302_v25, 16  ;;  %v613_v39 = vrot.slane %v611_v30, 4  ;;  %v3869_v60 = vld [vmem:[%s5326_s1 + $0x140] sm:$0xff]  }
  0x19   : > { %3295 = vmatprep.subr.bf16.mxu0 %v3856_v6  ;;  %3812 = vmatprep.subr.bf16.mxu1 %v3856_v6  ;;  %v329_v32 = vor.u32 %v328_v23, %v325_v22  ;;  %v339_v38 = vor.u32 %v338_v27, %v334_v26  ;;  %v624_v40 = vshrl.u32 %v302_v25, 16  ;;  %v630_v41 = vshll.u32 %v303_v29, 16  ;;  %v4122_v61 = vld [vmem:[%s4052_s14 + $0xc] sm:$0xf]  ;;  %v4125_v62 = vld [vmem:[%s4052_s14 + $0x10] sm:$0xf] }
  0x1a   : > { %v762_v43 = vrot.slane %v4067_v13, 5  ;;  %v616_v44 = vrot.slane %v614_v34, 5  ;;  %v622_v45 = vrot.slane %v620_v35, 5  ;;  %v4104_v47 = vrot.slane %v759_v28, 4  ;;  %v3870_v0 = vld [vmem:[%s5326_s1 + $0x80] sm:$0xff]   ;;  %v3876_v35 = vld [vmem:[%s5326_s1 + $0xd0] sm:$0xff]  }
  0x1b   : > { %v330_v42 = vrot.slane %v329_v32, 4  ;;  %v340_v46 = vrot.slane %v339_v38, 4  ;;  %v626_v48 = vrot.slane %v624_v40, 4  ;;  %v632_v49 = vrot.slane %v630_v41, 5  ;;  %v3871_v1 = vld [vmem:[%s5326_s1 + $0x100] sm:$0xff]   ;;  %v3900_v13 = vld [vmem:[%s5326_s1 + $0x118] sm:$0xff]  }
  0x1c   : > { %3296 = vmatpush3.bf16.msra.mxu0 %v3857_v7  ;;  %3820 = vmatpush3.bf16.msra.mxu1 %v3857_v7  ;;  %v617_v52 = vor.u32 %v616_v44, %v613_v39  ;;  %v3001_v59 = vcombine.low %v4061_v11, %v4064_v12  ;;  %v4136_v2 = vld [vmem:[%s4052_s14 + $0x14] sm:$0x1]  ;;  %v347_v3 = vshrl.u32 %v4122_v61, 16  ;;  %v350_v4 = vshll.u32 %v4122_v61, 16  ;;  %v305_v14 = vld [vmem:[%s4052_s14 + $0xa0] sm:$0xf] }
  0x1d   : > { %3297 = vmatprep.subr.bf16.mxu0 %v3858_v8  ;;  %3813 = vmatprep.subr.bf16.mxu1 %v3858_v8  ;;  %v335_v51 = vsel %vm4097_vm2, %v330_v42, %v334_v26  ;;  %v345_v53 = vsel %vm4097_vm2, %v340_v46, %v344_v33  ;;  %v627_v54 = vor.u32 %v626_v48, %v622_v45  ;;  %v356_v5 = vshll.u32 %v4125_v62, 16  ;;  %v3873_v26 = vld [vmem:[%s5326_s1 + $0x88] sm:$0xff]  }
  0x1e   : > { %v3017_v55 = vcombine.low %v335_v51, %v345_v53  ;;  %v618_v56 = vrot.slane %v617_v52, 4  ;;  %v4144_v7 = vcombine.low %v4078_v20, %v302_v25  ;;  %v360_v8 = vshrl.u32 %v4125_v62, 16  ;;  %v3879_v44 = vld [vmem:[%s5326_s1 + $0x148] sm:$0xff]   ;;  %v3877_v51 = vld [vmem:[%s5326_s1 + $0x90] sm:$0xff]  }
  0x1f   : > { %v628_v58 = vrot.slane %v627_v54, 4  ;;  %v349_v17 = vrot.slane %v347_v3, 4  ;;  %v352_v18 = vrot.slane %v350_v4, 5  ;;  %v358_v19 = vrot.slane %v356_v5, 5  ;;  %v3881_v54 = vld [vmem:[%s5326_s1 + $0x108] sm:$0xff]  }
  0x20   : > { %3298 = vmatpush3.bf16.msra.mxu0 %v3859_v9  ;;  %3821 = vmatpush3.bf16.msra.mxu1 %v3859_v9  ;;  %v623_v63 = vsel %vm4097_vm2, %v618_v56, %v622_v45  ;;  %v366_v9 = vshll.u32 %v4136_v2, 16  ;;  %v362_v20 = vrot.slane %v360_v8, 4  ;;  %v644_v29 = vshll.u32 %v305_v14, 16  ;;  %v4187_v56 = vld [vmem:[%s4052_s14 + $0x1c] sm:$0xf] }
  0x21   : > { %3299 = vmatprep.subr.bf16.mxu0 %v3860_v10  ;;  %3814 = vmatprep.subr.bf16.mxu1 %v3860_v10  ;;  %v633_v6 = vsel %vm4097_vm2, %v628_v58, %v632_v49  ;;  %v304_v10 = vld [vmem:[%s4052_s14 + $0x9c] sm:$0xf]  ;;  %v353_v27 = vor.u32 %v352_v18, %v349_v17  ;;  %v648_v30 = vshrl.u32 %v305_v14, 16  ;;  %v384_v4 = vshrl.u32 %v4187_v56, 16  ;;  %v308_v8 = vld [vmem:[%s4052_s14 + $0xac] sm:$0xf] }
  0x22   : > { %1761 = vmatprep.mubr.bf16.mxu0 %v3017_v55  ;;  %v4150_v15 = vcombine.low %v623_v63, %v633_v6  ;;  %v368_v22 = vrot.slane %v366_v9, 5  ;;  %v635_v23 = vshrl.u32 %v304_v10, 16  ;;  %v638_v25 = vshll.u32 %v304_v10, 16  ;;  %v4184_v55 = vld [vmem:[%s4052_s14 + $0x18] sm:$0xf] }
  0x23   : > { %v363_v32 = vor.u32 %v362_v20, %v358_v19  ;;  %v646_v38 = vrot.slane %v644_v29, 5  ;;  %v650_v39 = vrot.slane %v648_v30, 4  ;;  %v3878_v58 = vld [vmem:[%s5326_s1 + $0xd8] sm:$0xff]   ;;  %v374_v63 = vshll.u32 %v4184_v55, 16  ;;  %v307_v6 = vld [vmem:[%s4052_s14 + $0xa8] sm:$0xf] }
  0x24   : > { %3300 = vmatpush3.bf16.msra.mxu0 %v3861_v16  ;;  %3822 = vmatpush3.bf16.msra.mxu1 %v3861_v16  ;;  %5343 = vst [vmem:[#allocation2_spill] sm:$0xff] %v4150_v15  ;;  %v3872_v16 = vld [vmem:[%s5326_s1 + $0xc8] sm:$0xff]   ;;  %v637_v33 = vrot.slane %v635_v23, 4  ;;  %v640_v34 = vrot.slane %v638_v25, 5  ;;  %v4203_v3 = vcombine.low %v304_v10, %v305_v14  ;;  %v309_v10 = vld [vmem:[%s4052_s14 + $0xb0] sm:$0x1] }
  0x25   : > { %3301 = vmatprep.subr.bf16.mxu0 %v3862_v21  ;;  %3815 = vmatprep.subr.bf16.mxu1 %v3862_v21  ;;  %v306_v21 = vld [vmem:[%s4052_s14 + $0xa4] sm:$0x1]  ;;  %v364_v41 = vrot.slane %v363_v32, 4  ;;  %v651_v46 = vor.u32 %v650_v39, %v646_v38  ;;  %v376_v18 = vrot.slane %v374_v63, 5  ;;  %v386_v14 = vrot.slane %v384_v4, 4 }
  0x26   : > { %1857 = vmatprep.mubr.bf16.mxu1 %v4150_v15  ;;  %v641_v42 = vor.u32 %v640_v34, %v637_v33  ;;  %v659_v20 = vshrl.u32 %v307_v6, 16  ;;  %v668_v25 = vshll.u32 %v308_v8, 16  ;;  %v3884_v29 = vld [vmem:[%s5326_s1 + $0xe0] sm:$0xff]   ;;  %v4631_v15 = vld [vmem:[%s4052_s14 + $0x8c] sm:$0x1] }
  0x27   : > { %v369_v48 = vsel %vm4097_vm2, %v364_v41, %v368_v22  ;;  %v652_v53 = vrot.slane %v651_v46, 4  ;;  %v662_v22 = vshll.u32 %v307_v6, 16  ;;  %v3885_v33 = vld [vmem:[%s5326_s1 + $0xa0] sm:$0xff]   ;;  %v4233_v46 = vcombine.low %v307_v6, %v308_v8  ;;  %v3891_v6 = vld [vmem:[%s5326_s1 + $0x150] sm:$0xff]  }
  0x28   : > { %3302 = vmatpush3.bf16.msra.mxu0 %v3863_v31  ;;  %3823 = vmatpush3.bf16.msra.mxu1 %v3863_v31  ;;  %v654_v31 = vshll.u32 %v306_v21, 16  ;;  %v642_v49 = vrot.slane %v641_v42, 4 }
  0x29   : > { %3303 = vmatprep.subr.bf16.mxu0 %v3864_v36  ;;  %3816 = vmatprep.subr.bf16.mxu1 %v3864_v36  ;;  %v354_v36 = vrot.slane %v353_v27, 4  ;;  %v678_v27 = vshll.u32 %v309_v10, 16  ;;  %v664_v32 = vrot.slane %v662_v22, 5  ;;  %v3890_v10 = vld [vmem:[%s5326_s1 + $0xf0] sm:$0xff]   ;;  %v312_v22 = vld [vmem:[%s4052_s14 + $0xbc] sm:$0x1] }
  0x2a   : > { %v656_v40 = vrot.slane %v654_v31, 5  ;;  %v661_v31 = vrot.slane %v659_v20, 4 }
  0x2b   : > { %v359_v45 = vsel %vm4097_vm2, %v354_v36, %v358_v19  ;;  %v680_v41 = vrot.slane %v678_v27, 5 }
  0x2c   : > { %3304 = vmatpush3.bf16.msra.mxu0 %v3865_v50  ;;  %3824 = vmatpush3.bf16.msra.mxu1 %v3865_v50  ;;  %v4173_v50 = vcombine.low %v4122_v61, %v4125_v62  ;;  %v4178_v52 = vcombine.low %v359_v45, %v369_v48  ;;  %v4231_v45 = vcombine.low %v4184_v55, %v4187_v56  ;;  %v4236_v48 = vld [vmem:[%s4052_s14 + $0x24] sm:$0xf] }
  0x2d   : > { %3401 = vmatprep.subr.bf16.mxu1 %v3868_v57  ;;  %3513 = vmatprep.subr.bf16.mxu0 %v3869_v60  ;;  %v647_v57 = vsel %vm4097_vm2, %v642_v49, %v646_v38  ;;  %v371_v60 = vshrl.u32 %v4184_v55, 16  ;;  %v3886_v38 = vld [vmem:[%s5326_s1 + $0xe8] sm:$0xff]  }
  0x2e   : > { %v4239_v49 = vld [vmem:[%s4052_s14 + $0x28] sm:$0xf] }
  0x2f   : > { %1762 = vmatmul.mubr.bf16.vlgmr.msra.gmra.mrb[0].mxu0 %v3001_v59  ;;  %1858 = vmatmul.mubr.bf16.vlgmr.msra.gmra.mrb[0].mxu1 %v4144_v7  ;;  %v4195_v59 = vld [vmem:[%s4052_s14 + $0x20] sm:$0x1]  ;;  %v373_v17 = vrot.slane %v371_v60, 4  ;;  %v398_v60 = vshll.u32 %v4236_v48, 16  ;;  %v408_v4 = vshrl.u32 %v4239_v49, 16 }
  0x30   : > { %3402 = vmatpush3.bf16.msra.mxu1 %v3870_v0  ;;  %3514 = vmatpush3.bf16.msra.mxu0 %v3871_v1  ;;  %v380_v0 = vshll.u32 %v4187_v56, 16  ;;  %v657_v1 = vsel %vm4097_vm2, %v652_v53, %v656_v40  ;;  %v390_v5 = vshll.u32 %v4195_v59, 16  ;;  %v665_v40 = vor.u32 %v664_v32, %v661_v31 }
  0x31   : > { %3403 = vmatprep.subr.bf16.mxu1 %v3872_v16  ;;  %3515 = vmatprep.subr.bf16.mxu0 %v3879_v44  ;;  %v4209_v9 = vcombine.low %v647_v57, %v657_v1  ;;  %v3880_v16 = vld [vmem:[%s5326_s1 + $0x98] sm:$0xff]   ;;  %v377_v23 = vor.u32 %v376_v18, %v373_v17  ;;  %v4247_v57 = vld [vmem:[%s4052_s14 + $0x2c] sm:$0x1]  ;;  %v404_v1 = vshll.u32 %v4239_v49, 16  ;;  %v400_v17 = vrot.slane %v398_v60, 5 }
  0x32   : > { %1769 = vmatprep.mubr.bf16.mxu0 %v4178_v52  ;;  %v382_v19 = vrot.slane %v380_v0, 5  ;;  %v392_v21 = vrot.slane %v390_v5, 5  ;;  %v666_v53 = vrot.slane %v665_v40, 4  ;;  %v4256_v5 = vld [vmem:[%s4052_s14 + $0xb4] sm:$0xf]  ;;  %v414_v18 = vshll.u32 %v4247_v57, 16 }
  0x33   : > { %5344 = vst [vmem:[#allocation3_spill] sm:$0xff] %v4209_v9  ;;  %1865 = vmatprep.mubr.bf16.mxu1 %v4209_v9  ;;  %v378_v34 = vrot.slane %v377_v23, 4  ;;  %v410_v20 = vrot.slane %v408_v4, 4  ;;  %v683_v23 = vshrl.u32 %v4256_v5, 16  ;;  %v3895_v60 = vld [vmem:[%s5326_s1 + $0xb8] sm:$0xff]   ;;  %v4307_v4 = vcombine.low %v4236_v48, %v4239_v49 }
  0x34   : > { %3404 = vmatpush3.bf16.msra.mxu1 %v3873_v26  ;;  %3516 = vmatpush3.bf16.msra.mxu0 %v3881_v54  ;;  %v672_v26 = vshrl.u32 %v308_v8, 16  ;;  %v387_v30 = vor.u32 %v386_v14, %v382_v19  ;;  %v3887_v54 = vld [vmem:[%s5326_s1 + $0xa8] sm:$0xff]  }
  0x35   : > { %3405 = vmatprep.subr.bf16.mxu1 %v3876_v35  ;;  %v670_v35 = vrot.slane %v668_v25, 5  ;;  %v383_v42 = vsel %vm4097_vm2, %v378_v34, %v382_v19  ;;  %v4265_v19 = vld [vmem:[%s4052_s14 + $0xb8] sm:$0xf]  ;;  %v3893_v25 = vld [vmem:[%s5326_s1 + $0x110] sm:$0xff]   ;;  %3517 = vmatprep.subr.bf16.mxu0 %v3891_v6  ;;  %v685_v32 = vrot.slane %v683_v23, 4  ;;  %5348 = vst [vmem:[#allocation5_spill] sm:$0xff] %v4307_v4 }
  0x36   : > { %v674_v36 = vrot.slane %v672_v26, 4  ;;  %v388_v39 = vrot.slane %v387_v30, 4  ;;  %v686_v30 = vshll.u32 %v4256_v5, 16  ;;  %v696_v34 = vshrl.u32 %v4265_v19, 16  ;;  %v3897_v6 = vld [vmem:[%s5326_s1 + $0x1c0] sm:$0xff]  }
  0x37   : > { %1770 = vmatmul.mubr.bf16.gmra.mrb[4].mxu0 %v4173_v50  ;;  %1866 = vmatmul.mubr.bf16.gmra.mrb[4].mxu1 %v4203_v3  ;;  %v671_v8 = vsel %vm4097_vm2, %v666_v53, %v670_v35  ;;  %v4358_v23 = vcombine.low %v4256_v5, %v4265_v19 }
  0x38   : > { %3406 = vmatpush3.bf16.msra.mxu1 %v3877_v51  ;;  %v675_v44 = vor.u32 %v674_v36, %v670_v35  ;;  %v393_v51 = vsel %vm4097_vm2, %v388_v39, %v392_v21  ;;  %v406_v21 = vrot.slane %v404_v1, 5  ;;  %3518 = vmatpush3.bf16.msra.mxu0 %v3893_v25  ;;  %v688_v36 = vrot.slane %v686_v30, 5  ;;  %v3892_v39 = vld [vmem:[%s5326_s1 + $0xb0] sm:$0xff]  }
  0x39   : > { %3407 = vmatprep.subr.bf16.mxu1 %v3878_v58  ;;  %v395_v58 = vshrl.u32 %v4236_v48, 16  ;;  %v4251_v63 = vcombine.low %v383_v42, %v393_v51  ;;  %v3894_v51 = vld [vmem:[%s5326_s1 + $0xf8] sm:$0xff]  }
  0x3a   : > { %v676_v0 = vrot.slane %v675_v44, 4  ;;  %v411_v31 = vor.u32 %v410_v20, %v406_v21  ;;  %v698_v44 = vrot.slane %v696_v34, 4  ;;  %v4336_v20 = vsel %vm4290_vm5, %v2983_v24, %v759_v28  ;;  %v3903_v24 = vld [vmem:[%s5326_s1 + $0x160] sm:$0xff]  }
  0x3b   : > { %1777 = vmatprep.mubr.bf16.mxu0 %v4251_v63 }
  0x3c   : > { %3408 = vmatpush3.bf16.msra.mxu1 %v3880_v16  ;;  %v397_v16 = vrot.slane %v395_v58, 4  ;;  %v681_v14 = vsel %vm4097_vm2, %v676_v0, %v680_v41  ;;  %v412_v41 = vrot.slane %v411_v31, 4 }
  0x3d   : > { %3409 = vmatprep.subr.bf16.mxu1 %v3884_v29  ;;  %v4278_v26 = vcombine.low %v671_v8, %v681_v14  ;;  %v416_v29 = vrot.slane %v414_v18, 5  ;;  %v4322_v18 = vsel %vm4290_vm5, %v4104_v47, %v762_v43  ;;  %v4325_v14 = vld [vmem:[%s4052_s14 + $0x30] sm:$0xf]  ;;  %v4345_v47 = vld [vmem:[%s4052_s14 + $0x38] sm:$0x1] }
  0x3e   : > { %v401_v27 = vor.u32 %v400_v17, %v397_v16  ;;  %v3899_v17 = vld [vmem:[%s5326_s1 + $0x158] sm:$0xff]   ;;  %v422_v12 = vshll.u32 %v4325_v14, 16 }
  0x3f   : > { %5345 = vst [vmem:[#allocation4_spill] sm:$0xff] %v4278_v26  ;;  %1778 = vmatmul.mubr.bf16.gmra.mrb[8].mxu0 %v4231_v45  ;;  %1873 = vmatprep.mubr.bf16.mxu1 %v4278_v26  ;;  %v417_v0 = vsel %vm4097_vm2, %v412_v41, %v416_v29 }
  0x40   : > { %3410 = vmatpush3.bf16.msra.mxu1 %v3885_v33  ;;  %v692_v33 = vshll.u32 %v4265_v19, 16  ;;  %v402_v35 = vrot.slane %v401_v27, 4  ;;  %3519 = vmatprep.subr.bf16.mxu0 %v3899_v17  ;;  %v438_v27 = vshll.u32 %v4345_v47, 16  ;;  %v424_v31 = vrot.slane %v422_v12, 5  ;;  %v4405_v12 = vld [vmem:[%s4052_s14 + $0x50] sm:$0x1] }
  0x41   : > { %3411 = vmatprep.subr.bf16.mxu1 %v3886_v38  ;;  %v702_v38 = vshll.u32 %v312_v22, 16  ;;  %1874 = vmatmul.mubr.bf16.gmra.mrb[8].mxu1 %v4233_v46  ;;  %v419_v22 = vshrl.u32 %v4325_v14, 16 }
  0x42   : > { %v694_v42 = vrot.slane %v692_v33, 5  ;;  %v407_v53 = vsel %vm4097_vm2, %v402_v35, %v406_v21  ;;  %v4328_v21 = vld [vmem:[%s4052_s14 + $0x34] sm:$0xf]  ;;  %3520 = vmatpush3.bf16.msra.mxu0 %v3900_v13  ;;  %v440_v34 = vrot.slane %v438_v27, 5  ;;  %v3033_v35 = vcombine.low %v4336_v20, %v4322_v18 }
  0x43   : > { %v704_v58 = vrot.slane %v702_v38, 5  ;;  %v4312_v8 = vcombine.low %v407_v53, %v417_v0  ;;  %v428_v11 = vshll.u32 %v4328_v21, 16  ;;  %v432_v25 = vshrl.u32 %v4328_v21, 16  ;;  %3521 = vmatprep.subr.bf16.mxu0 %v3903_v24  ;;  %v4372_v38 = vld [vmem:[%s4052_s14 + $0x40] sm:$0xf] }
  0x44   : > { %3412 = vmatpush3.bf16.msra.mxu1 %v3887_v54  ;;  %v689_v54 = vor.u32 %v688_v36, %v685_v32  ;;  %v699_v1 = vor.u32 %v698_v44, %v694_v42  ;;  %v421_v30 = vrot.slane %v419_v22, 4  ;;  %v4369_v36 = vld [vmem:[%s4052_s14 + $0x3c] sm:$0xf]  ;;  %v4388_v0 = vld [vmem:[%s4052_s14 + $0x48] sm:$0xf]  ;;  %v2984_v22 = vrot.slane %v4122_v61, 9 }
  0x45   : > { %3413 = vmatprep.subr.bf16.mxu1 %v3890_v10  ;;  %1785 = vmatprep.mubr.bf16.mxu0 %v4312_v8  ;;  %v430_v32 = vrot.slane %v428_v11, 5  ;;  %v434_v33 = vrot.slane %v432_v25, 4  ;;  %v446_v44 = vshll.u32 %v4369_v36, 16  ;;  %v3908_v11 = vld [vmem:[%s5326_s1 + $0x168] sm:$0xff]   ;;  %v766_v25 = vrot.slane %v4125_v62, 5 }
  0x46   : > { %v690_v16 = vrot.slane %v689_v54, 4  ;;  %v700_v10 = vrot.slane %v699_v1, 4  ;;  %v425_v5 = vor.u32 %v424_v31, %v421_v30  ;;  %v4383_v54 = vcombine.low %v4325_v14, %v4328_v21 }
  0x47   : > { %1786 = vmatmul.mubr.bf16.gmra.mrb[12].mxu0 %v4307_v4  ;;  %v435_v19 = vor.u32 %v434_v33, %v430_v32  ;;  %v448_v17 = vrot.slane %v446_v44, 5  ;;  %v769_v27 = vrot.slane %v4136_v2, 5  ;;  %v467_v31 = vshrl.u32 %v4388_v0, 16  ;;  %v3904_v33 = vld [vmem:[%s5326_s1 + $0x1c8] sm:$0xff]  }
  0x48   : > { %3414 = vmatpush3.bf16.msra.mxu1 %v3892_v39  ;;  %v695_v43 = vsel %vm4097_vm2, %v690_v16, %v694_v42  ;;  %v705_v28 = vsel %vm4097_vm2, %v700_v10, %v704_v58  ;;  %v4375_v39 = vld [vmem:[%s4052_s14 + $0x44] sm:$0x1]  ;;  %v426_v41 = vrot.slane %v425_v5, 4  ;;  %v443_v42 = vshrl.u32 %v4369_v36, 16  ;;  %5350 = vst [vmem:[#allocation7_spill] sm:$0xff] %v4383_v54 }
  0x49   : > { %3415 = vmatprep.subr.bf16.mxu1 %v3894_v51  ;;  %v4362_v29 = vcombine.low %v695_v43, %v705_v28  ;;  %v452_v51 = vshll.u32 %v4372_v38, 16  ;;  %v436_v53 = vrot.slane %v435_v19, 4  ;;  %v456_v58 = vshrl.u32 %v4372_v38, 16  ;;  %v4399_v10 = vld [vmem:[%s4052_s14 + $0x4c] sm:$0xf] }
  0x4a   : > { %v431_v1 = vsel %vm4097_vm2, %v426_v41, %v430_v32  ;;  %v445_v16 = vrot.slane %v443_v42, 4  ;;  %v470_v32 = vshll.u32 %v4388_v0, 16  ;;  %v476_v61 = vshll.u32 %v4399_v10, 16  ;;  %v3906_v19 = vld [vmem:[%s5326_s1 + $0x188] sm:$0xff]  }
  0x4b   : > { %5349 = vst [vmem:[#allocation6_spill] sm:$0xff] %v4362_v29  ;;  %1881 = vmatprep.mubr.bf16.mxu1 %v4362_v29  ;;  %v454_v18 = vrot.slane %v452_v51, 5  ;;  %v441_v20 = vsel %vm4097_vm2, %v436_v53, %v440_v34  ;;  %v458_v13 = vrot.slane %v456_v58, 4  ;;  %v767_v62 = vsel %vm4290_vm5, %v2984_v22, %v766_v25  ;;  %v3909_v41 = vld [vmem:[%s5326_s1 + $0x128] sm:$0xff]  }
  0x4c   : > { %3416 = vmatpush3.bf16.msra.mxu1 %v3895_v60  ;;  %v462_v60 = vshll.u32 %v4375_v39, 16  ;;  %v4410_v24 = vcombine.low %v431_v1, %v441_v20  ;;  %v449_v28 = vor.u32 %v448_v17, %v445_v16  ;;  %v768_v5 = vrot.slane %v766_v25, 4  ;;  %v4449_v20 = vld [vmem:[%s4052_s14 + $0x58] sm:$0xf]  ;;  %v4458_v25 = vld [vmem:[%s4052_s14 + $0x5c] sm:$0x1] }
  0x4d   : > { %3625 = vmatprep.subr.bf16.mxu1 %v3897_v6  ;;  %1882 = vmatmul.mubr.bf16.gmra.mrb[12].mxu1 %v4358_v23  ;;  %v3898_v6 = vld [vmem:[%s5326_s1 + $0x180] sm:$0xff]   ;;  %v459_v30 = vor.u32 %v458_v13, %v454_v18  ;;  %v480_v2 = vshrl.u32 %v4399_v10, 16  ;;  %v469_v44 = vrot.slane %v467_v31, 4  ;;  %v472_v51 = vrot.slane %v470_v32, 5  ;;  %v3911_v13 = vld [vmem:[%s5326_s1 + $0x1d0] sm:$0xff]  }
  0x4e   : > { %1922 = vmatprep.mubr.bf16.mxu1 %v4173_v50  ;;  %v3905_v50 = vld [vmem:[%s5326_s1 + $0x120] sm:$0xff]   ;;  %v464_v43 = vrot.slane %v462_v60, 5  ;;  %1793 = vmatprep.mubr.bf16.mxu0 %v4410_v24  ;;  %v450_v34 = vrot.slane %v449_v28, 4  ;;  %v478_v53 = vrot.slane %v476_v61, 5  ;;  %v770_v60 = vsel %vm4290_vm5, %v768_v5, %v769_v27 }
  0x4f   : > { %3522 = vmatpush3.bf16.msra.mxu0 %v3905_v50  ;;  %v460_v42 = vrot.slane %v459_v30, 4  ;;  %v482_v50 = vrot.slane %v480_v2, 4  ;;  %v486_v1 = vshll.u32 %v4405_v12, 16  ;;  %v4441_v16 = vcombine.low %v4369_v36, %v4372_v38  ;;  %v4470_v2 = vld [vmem:[%s4052_s14 + $0x60] sm:$0xf] }
  0x50   : > { %3523 = vmatprep.subr.bf16.mxu0 %v3908_v11  ;;  %1794 = vmatmul.mubr.bf16.gmra.mrb[16].mxu0 %v4383_v54  ;;  %v455_v58 = vsel %vm4097_vm2, %v450_v34, %v454_v18  ;;  %v473_v17 = vor.u32 %v472_v51, %v469_v44  ;;  %v4446_v18 = vld [vmem:[%s4052_s14 + $0x54] sm:$0xf]  ;;  %v2985_v28 = vrot.slane %v4184_v55, 9  ;;  %v773_v30 = vrot.slane %v4187_v56, 5  ;;  %v4475_v44 = vld [vmem:[%s4052_s14 + $0x64] sm:$0xf] }
  0x51   : > { %5351 = vst [vmem:[#allocation8_spill] sm:$0xff] %v4441_v16  ;;  %v483_v11 = vor.u32 %v482_v50, %v478_v53  ;;  %v776_v31 = vrot.slane %v4195_v59, 5  ;;  %v491_v32 = vshrl.u32 %v4446_v18, 16  ;;  %v500_v55 = vshll.u32 %v4449_v20, 16  ;;  %v3912_v51 = vld [vmem:[%s5326_s1 + $0x190] sm:$0xff]  }
  0x52   : > { %v474_v27 = vrot.slane %v473_v17, 4  ;;  %v504_v34 = vshrl.u32 %v4449_v20, 16  ;;  %v775_v5 = vrot.slane %v773_v30, 4  ;;  %v510_v50 = vshll.u32 %v4458_v25, 16 }
  0x53   : > { %3524 = vmatpush3.bf16.msra.mxu0 %v3909_v41  ;;  %v484_v61 = vrot.slane %v483_v11, 4  ;;  %v493_v56 = vrot.slane %v491_v32, 4  ;;  %v2986_v11 = vrot.slane %v4236_v48, 9  ;;  %v4506_v48 = vld [vmem:[%s4052_s14 + $0x68] sm:$0x1] }
  0x55   : > { %1923 = vmatmul.mubr.bf16.vlgmr.msra.gmra.mrb[16].mxu1 %v3033_v35  ;;  %v465_v35 = vsel %vm4097_vm2, %v460_v42, %v464_v43  ;;  %v488_v43 = vrot.slane %v486_v1, 5  ;;  %v502_v42 = vrot.slane %v500_v55, 5  ;;  %v3914_v1 = vld [vmem:[%s5326_s1 + $0x170] sm:$0xff]   ;;  %v524_v55 = vshll.u32 %v4475_v44, 16 }
  0x56   : > { %3626 = vmatpush3.bf16.msra.mxu1 %v3898_v6  ;;  %1930 = vmatprep.mubr.bf16.mxu1 %v4231_v45  ;;  %v4443_v6 = vcombine.low %v767_v62, %v770_v60  ;;  %v4454_v22 = vcombine.low %v455_v58, %v465_v35  ;;  %v479_v62 = vsel %vm4097_vm2, %v474_v27, %v478_v53  ;;  %v780_v27 = vrot.slane %v4239_v49, 5 }
  0x57   : > { %3627 = vmatprep.subr.bf16.mxu1 %v3904_v33  ;;  %v494_v33 = vshll.u32 %v4446_v18, 16  ;;  %v489_v59 = vsel %vm4097_vm2, %v484_v61, %v488_v43  ;;  %v4486_v58 = vcombine.low %v4388_v0, %v4399_v10  ;;  %v774_v60 = vsel %vm4290_vm5, %v2985_v28, %v773_v30  ;;  %v3915_v43 = vld [vmem:[%s5326_s1 + $0x130] sm:$0xff]   ;;  %3525 = vmatprep.subr.bf16.mxu0 %v3914_v1 }
  0x58   : > { %1801 = vmatprep.mubr.bf16.mxu0 %v4454_v22  ;;  %v4482_v53 = vcombine.low %v479_v62, %v489_v59  ;;  %v777_v35 = vsel %vm4290_vm5, %v775_v5, %v776_v31  ;;  %v512_v28 = vrot.slane %v510_v50, 5  ;;  %v783_v30 = vrot.slane %v4247_v57, 5  ;;  %3526 = vmatpush3.bf16.msra.mxu0 %v3915_v43  ;;  %v4517_v57 = vld [vmem:[%s4052_s14 + $0x70] sm:$0xf]  ;;  %v3917_v59 = vld [vmem:[%s5326_s1 + $0x1d8] sm:$0xff]  }
  0x59   : > { %v496_v41 = vrot.slane %v494_v33, 5  ;;  %1802 = vmatmul.mubr.bf16.gmra.mrb[20].mxu0 %v4441_v16  ;;  %v515_v31 = vshrl.u32 %v4470_v2, 16  ;;  %v518_v33 = vshll.u32 %v4470_v2, 16  ;;  %v782_v62 = vrot.slane %v780_v27, 4 }
  0x5a   : > { %3628 = vmatpush3.bf16.msra.mxu1 %v3906_v19  ;;  %v506_v19 = vrot.slane %v504_v34, 4  ;;  %1809 = vmatprep.mubr.bf16.mxu0 %v4482_v53  ;;  %v4510_v34 = vcombine.low %v774_v60, %v777_v35  ;;  %v528_v49 = vshrl.u32 %v4475_v44, 16  ;;  %v526_v60 = vrot.slane %v524_v55, 5 }
  0x5b   : > { %3629 = vmatprep.subr.bf16.mxu1 %v3911_v13  ;;  %v497_v17 = vor.u32 %v496_v41, %v493_v56  ;;  %v517_v5 = vrot.slane %v515_v31, 4  ;;  %v4514_v56 = vld [vmem:[%s4052_s14 + $0x6c] sm:$0xf]  ;;  %v534_v35 = vshll.u32 %v4506_v48, 16 }
  0x5c   : > { %v507_v13 = vor.u32 %v506_v19, %v502_v42  ;;  %v530_v1 = vrot.slane %v528_v49, 4  ;;  %v542_v55 = vshll.u32 %v4514_v56, 16  ;;  %v552_v49 = vshrl.u32 %v4517_v57, 16 }
  0x5d   : > { %1931 = vmatmul.mubr.bf16.gmra.mrb[20].mxu1 %v4443_v6  ;;  %v498_v32 = vrot.slane %v497_v17, 4  ;;  %v781_v17 = vsel %vm4290_vm5, %v2986_v11, %v780_v27  ;;  %v790_v11 = vrot.slane %v4345_v47, 5  ;;  %v4542_v27 = vld [vmem:[%s4052_s14 + $0x74] sm:$0x1]  ;;  %v4554_v47 = vcombine.low %v4446_v18, %v4449_v20 }
  0x5e   : > { %1938 = vmatprep.mubr.bf16.mxu1 %v4307_v4  ;;  %3630 = vmatpush3.bf16.msra.mxu1 %v3912_v51  ;;  %v508_v61 = vrot.slane %v507_v13, 4  ;;  %v520_v51 = vrot.slane %v518_v33, 5  ;;  %v784_v13 = vsel %vm4290_vm5, %v782_v62, %v783_v30  ;;  %v531_v31 = vor.u32 %v530_v1, %v526_v60 }
  0x5f   : > { %v503_v41 = vsel %vm4097_vm2, %v498_v32, %v502_v42  ;;  %3631 = vmatprep.subr.bf16.mxu1 %v3917_v59  ;;  %v2987_v42 = vrot.slane %v4325_v14, 9  ;;  %v536_v32 = vrot.slane %v534_v35, 5  ;;  %v3919_v14 = vld [vmem:[%s5326_s1 + $0x178] sm:$0xff]   ;;  %v539_v33 = vshrl.u32 %v4514_v56, 16 }
  0x60   : > { %v513_v19 = vsel %vm4097_vm2, %v508_v61, %v512_v28  ;;  %v521_v43 = vor.u32 %v520_v51, %v517_v5  ;;  %v3918_v28 = vld [vmem:[%s5326_s1 + $0x198] sm:$0xff]   ;;  %v787_v61 = vrot.slane %v4328_v21, 5  ;;  %v548_v21 = vshll.u32 %v4517_v57, 16  ;;  %3527 = vmatprep.subr.bf16.mxu0 %v3919_v14 }
  0x61   : > { %v4526_v50 = vcombine.low %v503_v41, %v513_v19  ;;  %1810 = vmatmul.mubr.bf16.gmra.mrb[24].mxu0 %v4486_v58  ;;  %v532_v62 = vrot.slane %v531_v31, 4  ;;  %v4558_v59 = vld [vmem:[%s4052_s14 + $0x78] sm:$0xf]  ;;  %v541_v51 = vrot.slane %v539_v33, 4  ;;  %v544_v1 = vrot.slane %v542_v55, 5  ;;  %v3922_v31 = vld [vmem:[%s5326_s1 + $0x1e0] sm:$0xff]  }
  0x62   : > { %v522_v30 = vrot.slane %v521_v43, 4  ;;  %v789_v5 = vrot.slane %v787_v61, 4  ;;  %3632 = vmatpush3.bf16.msra.mxu1 %v3918_v28  ;;  %v3920_v41 = vld [vmem:[%s5326_s1 + $0x138] sm:$0xff]   ;;  %v550_v35 = vrot.slane %v548_v21, 5  ;;  %v4571_v29 = vcombine.low %v781_v17, %v784_v13  ;;  %v4581_v21 = vld [vmem:[%s5326_s1 + $0x200] sm:$0xff]  }
  0x63   : > { %1817 = vmatprep.mubr.bf16.mxu0 %v4526_v50  ;;  %v4566_v43 = vld [vmem:[%s4052_s14 + $0x7c] sm:$0xf]  ;;  %v537_v28 = vsel %vm4097_vm2, %v532_v62, %v536_v32  ;;  %v554_v14 = vrot.slane %v552_v49, 4  ;;  %v558_v26 = vshll.u32 %v4542_v27, 16  ;;  %3528 = vmatpush3.bf16.msra.mxu0 %v3920_v41  ;;  %v4584_v13 = vld [vmem:[%s4052_s14 + $0x80] sm:$0x1] }
  0x64   : > { %v527_v19 = vsel %vm4097_vm2, %v522_v30, %v526_v60  ;;  %v545_v30 = vor.u32 %v544_v1, %v541_v51  ;;  %3633 = vmatprep.subr.bf16.mxu1 %v3922_v31  ;;  %v563_v32 = vshrl.u32 %v4558_v59, 16  ;;  %v566_v62 = vshll.u32 %v4558_v59, 16  ;;  %v4595_v51 = vld [vmem:[%s4052_s14 + $0x84] sm:$0xf]  ;;  %3761 = vmatprep.subr.bf16.mxu0 %v4581_v21 }
  0x65   : > { %1939 = vmatmul.mubr.bf16.gmra.mrb[24].mxu1 %v4510_v34  ;;  %v4576_v60 = vcombine.low %v527_v19, %v537_v28  ;;  %v555_v33 = vor.u32 %v554_v14, %v550_v35  ;;  %v560_v55 = vrot.slane %v558_v26, 5  ;;  %v788_v26 = vsel %vm4290_vm5, %v2987_v42, %v787_v61  ;;  %v3924_v1 = vld [vmem:[%s5326_s1 + $0x1a0] sm:$0xff]   ;;  %v3925_v14 = vld [vmem:[%s5326_s1 + $0x1e8] sm:$0xff]  }
  0x66   : > { %1946 = vmatprep.mubr.bf16.mxu1 %v4383_v54  ;;  %v546_v17 = vrot.slane %v545_v30, 4  ;;  %v794_v41 = vrot.slane %v4372_v38, 5  ;;  %v572_v19 = vshll.u32 %v4566_v43, 16  ;;  %v791_v31 = vsel %vm4290_vm5, %v789_v5, %v790_v11  ;;  %v4606_v38 = vld [vmem:[%s4052_s14 + $0x88] sm:$0xf]  ;;  %3634 = vmatpush3.bf16.msra.mxu1 %v3924_v1 }
  0x67   : > { %v556_v49 = vrot.slane %v555_v33, 4  ;;  %v565_v28 = vrot.slane %v563_v32, 4  ;;  %v568_v42 = vrot.slane %v566_v62, 5  ;;  %v576_v61 = vshrl.u32 %v4566_v43, 16  ;;  %3635 = vmatprep.subr.bf16.mxu1 %v3925_v14 }
  0x68   : > { %v551_v30 = vsel %vm4097_vm2, %v546_v17, %v550_v35  ;;  %v574_v9 = vrot.slane %v572_v19, 5  ;;  %v582_v11 = vshll.u32 %v4584_v13, 16  ;;  %v4619_v5 = vcombine.low %v4470_v2, %v4475_v44 }
  0x69   : > { %1818 = vmatmul.mubr.bf16.gmra.mrb[28].mxu0 %v4554_v47  ;;  %v561_v33 = vsel %vm4097_vm2, %v556_v49, %v560_v55  ;;  %v569_v32 = vor.u32 %v568_v42, %v565_v28  ;;  %v578_v62 = vrot.slane %v576_v61, 4  ;;  %v2988_v35 = vrot.slane %v4369_v36, 9  ;;  %v3927_v49 = vld [vmem:[%s5326_s1 + $0x1a8] sm:$0xff]  }
  0x6a   : > { %1825 = vmatprep.mubr.bf16.mxu0 %v4576_v60  ;;  %v796_v17 = vrot.slane %v794_v41, 4  ;;  %v797_v55 = vrot.slane %v4375_v39, 5  ;;  %v4628_v19 = vcombine.low %v551_v30, %v561_v33  ;;  %v587_v28 = vshrl.u32 %v4595_v51, 16  ;;  %3636 = vmatpush3.bf16.msra.mxu1 %v3927_v49  ;;  %v3930_v33 = vld [vmem:[%s5326_s1 + $0x1b0] sm:$0xff]   ;;  %v3931_v49 = vld [vmem:[%s5326_s1 + $0x1f8] sm:$0xff]  }
  0x6b   : > { %v579_v1 = vor.u32 %v578_v62, %v574_v9  ;;  %v584_v36 = vrot.slane %v582_v11, 5  ;;  %v590_v42 = vshll.u32 %v4595_v51, 16  ;;  %v596_v39 = vshll.u32 %v4606_v38, 16 }
  0x6c   : > { %v589_v14 = vrot.slane %v587_v28, 4  ;;  %v600_v30 = vshrl.u32 %v4606_v38, 16  ;;  %v801_v11 = vrot.slane %v4399_v10, 5  ;;  %v798_v28 = vsel %vm4290_vm5, %v796_v17, %v797_v55 }
  0x6d   : > { %1947 = vmatmul.mubr.bf16.gmra.mrb[28].mxu1 %v4571_v29  ;;  %v580_v61 = vrot.slane %v579_v1, 4  ;;  %v598_v62 = vrot.slane %v596_v39, 5  ;;  %v795_v1 = vsel %vm4290_vm5, %v2988_v35, %v794_v41  ;;  %v606_v54 = vshll.u32 %v4631_v15, 16  ;;  %v3933_v41 = vld [vmem:[%s5326_s1 + $0x1b8] sm:$0xff]  }
  0x6e   : > { %1954 = vmatprep.mubr.bf16.mxu1 %v4441_v16  ;;  %v4621_v16 = vcombine.low %v788_v26, %v791_v31  ;;  %v3928_v26 = vld [vmem:[%s5326_s1 + $0x1f0] sm:$0xff]   ;;  %v570_v31 = vrot.slane %v569_v32, 4  ;;  %v592_v32 = vrot.slane %v590_v42, 5  ;;  %v4665_v35 = vcombine.low %v4514_v56, %v4517_v57 }
  0x6f   : > { %3637 = vmatprep.subr.bf16.mxu1 %v3928_v26  ;;  %v602_v26 = vrot.slane %v600_v30, 4  ;;  %v585_v42 = vsel %vm4097_vm2, %v580_v61, %v584_v36  ;;  %v4667_v17 = vcombine.low %v795_v1, %v798_v28  ;;  %v2989_v55 = vrot.slane %v4388_v0, 9 }
  0x70   : > { %v575_v10 = vsel %vm4097_vm2, %v570_v31, %v574_v9  ;;  %v593_v39 = vor.u32 %v592_v32, %v589_v14  ;;  %3638 = vmatpush3.bf16.msra.mxu1 %v3930_v33  ;;  %v803_v31 = vrot.slane %v801_v11, 4  ;;  %v804_v36 = vrot.slane %v4405_v12, 5 }
  0x71   : > { %1826 = vmatmul.mubr.bf16.gmra.mrb[32].mxu0 %v4619_v5  ;;  %v603_v4 = vor.u32 %v602_v26, %v598_v62  ;;  %3639 = vmatprep.subr.bf16.mxu1 %v3931_v49  ;;  %v4670_v9 = vcombine.low %v575_v10, %v585_v42  ;;  %v608_v61 = vrot.slane %v606_v54, 5  ;;  %v802_v0 = vsel %vm4290_vm5, %v2989_v55, %v801_v11 }
  0x72   : > { %1833 = vmatprep.mubr.bf16.mxu0 %v4628_v19  ;;  %v594_v14 = vrot.slane %v593_v39, 4  ;;  %v805_v33 = vsel %vm4290_vm5, %v803_v31, %v804_v36  ;;  %v808_v12 = vrot.slane %v4449_v20, 5  ;;  %v4688_v32 = vcombine.low %v4558_v59, %v4566_v43 }
  0x73   : > { %v604_v30 = vrot.slane %v603_v4, 4  ;;  %v4690_v49 = vcombine.low %v802_v0, %v805_v33  ;;  %v2990_v1 = vrot.slane %v4446_v18, 9  ;;  %v811_v26 = vrot.slane %v4458_v25, 5 }
  0x74   : > { %3640 = vmatpush3.bf16.msra.mxu1 %v3933_v41  ;;  %v599_v4 = vsel %vm4097_vm2, %v594_v14, %v598_v62  ;;  %v810_v28 = vrot.slane %v808_v12, 4  ;;  %v815_v18 = vrot.slane %v4475_v44, 5  ;;  %v4707_v10 = vcombine.low %v4595_v51, %v4606_v38  ;;  %v3926_v14 = vld [vmem:[%s5326_s1 + $0x208] sm:$0xff]  }
  0x75   : > { %1955 = vmatmul.mubr.bf16.gmra.mrb[32].mxu1 %v4621_v16  ;;  %v609_v54 = vsel %vm4097_vm2, %v604_v30, %v608_v61  ;;  %v809_v20 = vsel %vm4290_vm5, %v2990_v1, %v808_v12  ;;  %v2991_v42 = vrot.slane %v4470_v2, 9  ;;  %v818_v41 = vrot.slane %v4506_v48, 5  ;;  %v3935_v12 = vld [vmem:[%s5326_s1 + $0x220] sm:$0xff]  }
  0x76   : > { %1962 = vmatprep.mubr.bf16.mxu1 %v4486_v58  ;;  %v4693_v11 = vcombine.low %v599_v4, %v609_v54  ;;  %v812_v62 = vsel %vm4290_vm5, %v810_v28, %v811_v26  ;;  %v817_v39 = vrot.slane %v815_v18, 4  ;;  %v822_v31 = vrot.slane %v4517_v57, 5  ;;  %v3940_v26 = vld [vmem:[%s4052_s14 + $0x94] sm:$0xf] }
  0x77   : > { %v4709_v25 = vcombine.low %v809_v20, %v812_v62  ;;  %v816_v44 = vsel %vm4290_vm5, %v2991_v42, %v815_v18  ;;  %v2992_v48 = vrot.slane %v4514_v56, 9  ;;  %v825_v61 = vrot.slane %v4542_v27, 5  ;;  %v3929_v27 = vld [vmem:[%s5326_s1 + $0x210] sm:$0xff]  }
  0x78   : > { %v819_v55 = vsel %vm4290_vm5, %v817_v39, %v818_v41  ;;  %v824_v36 = vrot.slane %v822_v31, 4  ;;  %v829_v57 = vrot.slane %v4566_v43, 5  ;;  %v832_v0 = vrot.slane %v4584_v13, 5  ;;  %v3932_v43 = vld [vmem:[%s5326_s1 + $0x218] sm:$0xff]   ;;  %v3937_v62 = vld [vmem:[%s5326_s1 + $0x230] sm:$0xff]  }
  0x79   : > { %1834 = vmatmul.mubr.bf16.gmra.mrb[36].mxu0 %v4665_v35  ;;  %v4722_v2 = vcombine.low %v816_v44, %v819_v55  ;;  %v836_v33 = vrot.slane %v4606_v38, 5  ;;  %v2994_v54 = vrot.slane %v4595_v51, 9  ;;  %v839_v28 = vrot.slane %v4631_v15, 5  ;;  %v3936_v38 = vld [vmem:[%s5326_s1 + $0x228] sm:$0xff]   ;;  %v3941_v42 = vld [vmem:[%s4052_s14 + $0x90] sm:$0xf] }
  0x7a   : > { %1841 = vmatprep.mubr.bf16.mxu0 %v4670_v9  ;;  %v826_v56 = vsel %vm4290_vm5, %v824_v36, %v825_v61  ;;  %v831_v30 = vrot.slane %v829_v57, 4  ;;  %v843_v20 = vrot.slane %v3940_v26, 5  ;;  %v2995_v39 = vrot.slane %v3941_v42, 9  ;;  %v3942_v44 = vld [vmem:[%s4052_s14 + $0x98] sm:$0x1] }
  0x7b   : > { %v838_v1 = vrot.slane %v836_v33, 4  ;;  %v837_v51 = vsel %vm4290_vm5, %v2994_v54, %v836_v33  ;;  %v846_v55 = vrot.slane %v3942_v44, 5  ;;  %v3943_v61 = vld [vmem:[%s4052_s14 + $0xa0] sm:$0xf]  ;;  %v3949_v26 = vld [vmem:[%s4052_s14 + $0xb8] sm:$0xf] }
  0x7c   : > { %v833_v13 = vsel %vm4290_vm5, %v831_v30, %v832_v0  ;;  %v845_v41 = vrot.slane %v843_v20, 4  ;;  %v314_v42 = vld [vmem:[%s4052_s14 + $0xc4] sm:$0xf]  ;;  %v3950_v44 = vld [vmem:[%s4052_s14 + $0xb4] sm:$0xf] }
  0x7d   : > { %1963 = vmatmul.mubr.bf16.gmra.mrb[36].mxu1 %v4667_v17  ;;  %v840_v15 = vsel %vm4290_vm5, %v838_v1, %v839_v28  ;;  %v3948_v28 = vld [vmem:[%s4052_s14 + $0xb0] sm:$0x1] }
  0x7e   : > { %1970 = vmatprep.mubr.bf16.mxu1 %v4554_v47  ;;  %v4780_v18 = vcombine.low %v837_v51, %v840_v15  ;;  %v847_v36 = vsel %vm4290_vm5, %v845_v41, %v846_v55  ;;  %v2998_v55 = vrot.slane %v3950_v44, 9 }
  0x81   : > { %1842 = vmatmul.mubr.bf16.gmra.mrb[40].mxu0 %v4688_v32 }
  0x82   : > { %1849 = vmatprep.mubr.bf16.mxu0 %v4693_v11 }
  0x85   : > { %1971 = vmatmul.mubr.bf16.gmra.mrb[40].mxu1 %v4690_v49 }
  0x86   : > { %1978 = vmatprep.mubr.bf16.mxu1 %v4619_v5 }
  0x89   : > { %1850 = vmatmul.mubr.bf16.gmra.mrb[44].mxu0 %v4707_v10 }
  0x8a   : > { %2083 = vmatprep.mubr.bf16.mxu0 %v4443_v6  ;;  %v823_v6 = vsel %vm4290_vm5, %v2992_v48, %v822_v31  ;;  %v3938_v31 = vld [vmem:[%s5326_s1 + $0x238] sm:$0xff]   ;;  %v844_v48 = vsel %vm4290_vm5, %v2995_v39, %v843_v20  ;;  %v864_v20 = vrot.slane %v3949_v26, 5 }
  0x8d   : > { %1979 = vmatmul.mubr.bf16.gmra.mrb[44].mxu1 %v4709_v25 }
  0x8e   : > { %1986 = vmatprep.mubr.bf16.mxu1 %v4665_v35 }
  0x91   : > { %2084 = vmatmul.mubr.bf16.vlgmr.msra.gmra.mrb[48].mxu0 %v4178_v52  ;;  %v4742_v52 = vcombine.low %v823_v6, %v826_v56  ;;  %v4796_v6 = vcombine.low %v844_v48, %v847_v36  ;;  %v3944_v56 = vld [vmem:[%s4052_s14 + $0x9c] sm:$0xf] }
  0x92   : > { %3762 = vmatpush3.bf16.msra.mxu0 %v4581_v21  ;;  %2091 = vmatprep.mubr.bf16.mxu0 %v4510_v34  ;;  %v2993_v21 = vrot.slane %v4558_v59, 9  ;;  %v3951_v48 = vld [vmem:[%s4052_s14 + $0xbc] sm:$0x1] }
  0x93   : > { %3763 = vmatprep.subr.bf16.mxu0 %v3926_v14  ;;  %v867_v36 = vrot.slane %v3951_v48, 5 }
  0x94   : > { %v830_v59 = vsel %vm4290_vm5, %v2993_v21, %v829_v57  ;;  %v2996_v57 = vrot.slane %v3944_v56, 9  ;;  %v3945_v21 = vld [vmem:[%s4052_s14 + $0xa4] sm:$0x1] }
  0x95   : > { %1987 = vmatmul.mubr.bf16.gmra.mrb[48].mxu1 %v4722_v2  ;;  %v4761_v4 = vcombine.low %v830_v59, %v833_v13  ;;  %v853_v30 = vrot.slane %v3945_v21, 5  ;;  %v3946_v59 = vld [vmem:[%s4052_s14 + $0xac] sm:$0xf] }
  0x96   : > { %1994 = vmatprep.mubr.bf16.mxu1 %v4688_v32  ;;  %3764 = vmatpush3.bf16.msra.mxu0 %v3926_v14  ;;  %v850_v14 = vrot.slane %v3943_v61, 5  ;;  %v857_v13 = vrot.slane %v3946_v59, 5  ;;  %v865_v61 = vsel %vm4290_vm5, %v2998_v55, %v864_v20 }
  0x97   : > { %3765 = vmatprep.subr.bf16.mxu0 %v3929_v27 }
  0x98   : > { %v851_v0 = vsel %vm4290_vm5, %v2996_v57, %v850_v14  ;;  %v859_v1 = vrot.slane %v857_v13, 4  ;;  %v5352_v57 = vld [vmem:[#allocation5_spill] sm:$0xff] }
  0x99   : > { %2092 = vmatmul.mubr.bf16.gmra.mrb[52].mxu0 %v4251_v63 }
  0x9a   : > { %2099 = vmatprep.mubr.bf16.mxu0 %v4571_v29  ;;  %3766 = vmatpush3.bf16.msra.mxu0 %v3929_v27  ;;  %v852_v27 = vrot.slane %v850_v14, 4 }
  0x9b   : > { %3767 = vmatprep.subr.bf16.mxu0 %v3932_v43 }
  0x9d   : > { %1995 = vmatmul.mubr.bf16.gmra.mrb[52].mxu1 %v4742_v52 }
  0x9e   : > { %2002 = vmatprep.mubr.bf16.mxu1 %v4707_v10  ;;  %3768 = vmatpush3.bf16.msra.mxu0 %v3932_v43  ;;  %v854_v43 = vsel %vm4290_vm5, %v852_v27, %v853_v30  ;;  %v5353_v27 = vld [vmem:[#allocation7_spill] sm:$0xff]  ;;  %v883_v30 = vshrl.u32 %v314_v42, 16 }
  0x9f   : > { %3769 = vmatprep.subr.bf16.mxu0 %v3935_v12  ;;  %v4809_v33 = vcombine.low %v851_v0, %v854_v43  ;;  %v879_v0 = vshll.u32 %v314_v42, 16  ;;  %v315_v43 = vld [vmem:[%s4052_s14 + $0xc8] sm:$0x1] }
  0xa0   : > { %v889_v26 = vshll.u32 %v315_v43, 16 }
  0xa1   : > { %2100 = vmatmul.mubr.bf16.gmra.mrb[56].mxu0 %v4312_v8 }
  0xa2   : > { %2107 = vmatprep.mubr.bf16.mxu0 %v4621_v16  ;;  %3770 = vmatpush3.bf16.msra.mxu0 %v3935_v12  ;;  %v3947_v12 = vld [vmem:[%s4052_s14 + $0xa8] sm:$0xf] }
  0xa3   : > { %3771 = vmatprep.subr.bf16.mxu0 %v3936_v38  ;;  %v2997_v54 = vrot.slane %v3947_v12, 9 }
  0xa5   : > { %2003 = vmatmul.mubr.bf16.gmra.mrb[56].mxu1 %v4761_v4  ;;  %v858_v51 = vsel %vm4290_vm5, %v2997_v54, %v857_v13 }
  0xa6   : > { %2010 = vmatprep.mubr.bf16.mxu1 %v4144_v7  ;;  %3772 = vmatpush3.bf16.msra.mxu0 %v3936_v38  ;;  %v860_v38 = vrot.slane %v3948_v28, 5  ;;  %v885_v28 = vrot.slane %v883_v30, 4 }
  0xa7   : > { %3773 = vmatprep.subr.bf16.mxu0 %v3937_v62 }
  0xa8   : > { %v861_v15 = vsel %vm4290_vm5, %v859_v1, %v860_v38  ;;  %v901_v1 = vrot.slane %v315_v43, 5  ;;  %v5357_v38 = vld [vmem:[#allocation4_spill] sm:$0xff] }
  0xa9   : > { %2108 = vmatmul.mubr.bf16.gmra.mrb[60].mxu0 %v4410_v24  ;;  %v4824_v39 = vcombine.low %v858_v51, %v861_v15 }
  0xaa   : > { %2115 = vmatprep.mubr.bf16.mxu0 %v4667_v17  ;;  %3774 = vmatpush3.bf16.msra.mxu0 %v3937_v62  ;;  %v313_v62 = vld [vmem:[%s4052_s14 + $0xc0] sm:$0xf] }
  0xab   : > { %3775 = vmatprep.subr.bf16.mxu0 %v3938_v31  ;;  %v4826_v41 = vcombine.low %v313_v62, %v314_v42  ;;  %v873_v21 = vshll.u32 %v313_v62, 16  ;;  %v2999_v59 = vrot.slane %v313_v62, 9 }
  0xad   : > { %2011 = vmatmul.mubr.bf16.gmra.mrb[60].mxu1 %v4780_v18  ;;  %v875_v12 = vrot.slane %v873_v21, 5  ;;  %v5358_v21 = vld [vmem:[#allocation6_spill] sm:$0xff] }
  0xae   : > { %2018 = vmatprep.mubr.bf16.mxu1 %v4203_v3  ;;  %3776 = vmatpush3.bf16.msra.mxu0 %v3938_v31  ;;  %v866_v31 = vrot.slane %v864_v20, 4 }
  0xb0   : > { %v868_v14 = vsel %vm4290_vm5, %v866_v31, %v867_v36 }
  0xb1   : > { %2116 = vmatmul.mubr.bf16.gmra.mrb[64].mxu0 %v4454_v22  ;;  %v4838_v56 = vcombine.low %v865_v61, %v868_v14  ;;  %v891_v14 = vrot.slane %v889_v26, 5 }
  0xb2   : > { %2123 = vmatprep.mubr.bf16.mxu0 %v4690_v49 }
  0xb5   : > { %2019 = vmatmul.mubr.bf16.gmra.mrb[64].mxu1 %v4796_v6 }
  0xb6   : > { %2026 = vmatprep.mubr.bf16.mxu1 %v4233_v46 }
  0xb9   : > { %2124 = vmatmul.mubr.bf16.gmra.mrb[68].mxu0 %v4482_v53 }
  0xba   : > { %2131 = vmatprep.mubr.bf16.mxu0 %v4709_v25 }
  0xbd   : > { %2027 = vmatmul.mubr.bf16.gmra.mrb[68].mxu1 %v4809_v33 }
  0xbe   : > { %2034 = vmatprep.mubr.bf16.mxu1 %v4358_v23 }
  0xc1   : > { %2132 = vmatmul.mubr.bf16.gmra.mrb[72].mxu0 %v4526_v50 }
  0xc2   : > { %2139 = vmatprep.mubr.bf16.mxu0 %v4722_v2 }
  0xc5   : > { %2035 = vmatmul.mubr.bf16.gmra.mrb[72].mxu1 %v4824_v39 }
  0xc6   : > { %2042 = vmatprep.mubr.bf16.mxu1 %v4826_v41 }
  0xc9   : > { %2140 = vmatmul.mubr.bf16.gmra.mrb[76].mxu0 %v4576_v60 }
  0xca   : > { %2147 = vmatprep.mubr.bf16.mxu0 %v4742_v52 }
  0xcd   : > { %2043 = vmatmul.mubr.bf16.gmra.mrb[76].mxu1 %v4838_v56 }
  0xce   : > { %2244 = vmatprep.mubr.bf16.mxu1 %v4251_v63  ;;  %v5355_v63 = vld [vmem:[#allocation8_spill] sm:$0xff] }
  0xd1   : > { %2148 = vmatmul.mubr.bf16.gmra.mrb[80].mxu0 %v4628_v19 }
  0xd2   : > { %2155 = vmatprep.mubr.bf16.mxu0 %v4761_v4 }
  0xd5   : > { %2245 = vmatmul.mubr.bf16.vlgmr.msra.gmra.mrb[80].mxu1 %v4231_v45  ;;  %v5354_v45 = vld [vmem:[#allocation2_spill] sm:$0xff] }
  0xd6   : > { %2252 = vmatprep.mubr.bf16.mxu1 %v4312_v8  ;;  %v870_v8 = vshrl.u32 %v313_v62, 16 }
  0xd8   : > { %v872_v13 = vrot.slane %v870_v8, 4 }
  0xd9   : > { %2156 = vmatmul.mubr.bf16.gmra.mrb[84].mxu0 %v4670_v9 }
  0xda   : > { %2163 = vmatprep.mubr.bf16.mxu0 %v4780_v18 }
  0xdd   : > { %2253 = vmatmul.mubr.bf16.gmra.mrb[84].mxu1 %v5352_v57 }
  0xde   : > { %2260 = vmatprep.mubr.bf16.mxu1 %v4410_v24  ;;  %v5356_v24 = vld [vmem:[#allocation3_spill] sm:$0xff] }
  0xe1   : > { %2164 = vmatmul.mubr.bf16.gmra.mrb[88].mxu0 %v4693_v11 }
  0xe2   : > { %2171 = vmatprep.mubr.bf16.mxu0 %v4796_v6 }
  0xe5   : > { %2261 = vmatmul.mubr.bf16.gmra.mrb[88].mxu1 %v5353_v27 }
  0xe6   : > { %2268 = vmatprep.mubr.bf16.mxu1 %v4454_v22  ;;  %v898_v22 = vrot.slane %v314_v42, 5 }
  0xe8   : > { %v900_v54 = vrot.slane %v898_v22, 4 }
  0xe9   : > { %2172 = vmatmul.mubr.bf16.gmra.mrb[92].mxu0 %v5354_v45 }
  0xea   : > { %2179 = vmatprep.mubr.bf16.mxu0 %v4809_v33  ;;  %v902_v51 = vsel %vm4290_vm5, %v900_v54, %v901_v1 }
  0xed   : > { %2269 = vmatmul.mubr.bf16.gmra.mrb[92].mxu1 %v5355_v63 }
  0xee   : > { %2276 = vmatprep.mubr.bf16.mxu1 %v4482_v53  ;;  %v881_v53 = vrot.slane %v879_v0, 5 }
  0xf0   : > { %v886_v15 = vor.u32 %v885_v28, %v881_v53 }
  0xf1   : > { %2180 = vmatmul.mubr.bf16.gmra.mrb[96].mxu0 %v5356_v24 }
  0xf2   : > { %2187 = vmatprep.mubr.bf16.mxu0 %v4824_v39  ;;  %v887_v61 = vrot.slane %v886_v15, 4 }
  0xf5   : > { %2277 = vmatmul.mubr.bf16.gmra.mrb[96].mxu1 %v4486_v58  ;;  %v876_v58 = vor.u32 %v875_v12, %v872_v13 }
  0xf6   : > { %2284 = vmatprep.mubr.bf16.mxu1 %v4526_v50  ;;  %v899_v50 = vsel %vm4290_vm5, %v2999_v59, %v898_v22  ;;  %v892_v22 = vsel %vm4097_vm2, %v887_v61, %v891_v14 }
  0xf7   : > { %v4873_v55 = vcombine.low %v899_v50, %v902_v51 }
  0xf9   : > { %2188 = vmatmul.mubr.bf16.gmra.mrb[100].mxu0 %v5357_v38 }
  0xfa   : > { %2195 = vmatprep.mubr.bf16.mxu0 %v4838_v56 }
  0xfd   : > { %2285 = vmatmul.mubr.bf16.gmra.mrb[100].mxu1 %v4554_v47  ;;  %v877_v47 = vrot.slane %v876_v58, 4 }
  0xfe   : > { %2292 = vmatprep.mubr.bf16.mxu1 %v4576_v60 }
  0xff   : > { %v882_v30 = vsel %vm4097_vm2, %v877_v47, %v881_v53 }
 0x100   : > { %v4891_v43 = vcombine.low %v882_v30, %v892_v22 }
 0x101   : > { %2196 = vmatmul.mubr.bf16.gmra.mrb[104].mxu0 %v5358_v21 }
 0x102   : > { %v3305_v20 = vpop.f32.mrb[0].mxu0  ;;  %v3377_v62 = vpop.f32.mrb[0].mxu1  ;;  %2203 = vmatprep.mubr.bf16.mxu0 %v4873_v55 }
 0x103   : > { %v3306_v42 = vpop.f32.mrb[1].mxu0  ;;  %v3378_v44 = vpop.f32.mrb[1].mxu1 }
 0x104   : > { %v4875_v31 = vadd.f32 %v3306_v42, %v3305_v20  ;;  %v4877_v48 = vadd.f32 %v3378_v44, %v3377_v62  ;;  %v3308_v60 = vpop.f32.mrb[2].mxu0  ;;  %v3380_v36 = vpop.f32.mrb[2].mxu1 }
 0x105   : > { %v3309_v57 = vpop.f32.mrb[3].mxu0  ;;  %v3381_v27 = vpop.f32.mrb[3].mxu1  ;;  %2293 = vmatmul.mubr.bf16.gmra.mrb[104].mxu1 %v4619_v5 }
 0x106   : > { %v4879_v63 = vadd.f32 %v3309_v57, %v3308_v60  ;;  %v4881_v8 = vadd.f32 %v3381_v27, %v3380_v36  ;;  %2300 = vmatprep.mubr.bf16.mxu1 %v4628_v19 }
 0x109   : > { %2204 = vmatmul.mubr.bf16.gmra.mrb[108].mxu0 %v4891_v43 }
 0x10a   : > { %v3311_v0 = vpop.f32.mrb[4].mxu0  ;;  %v3383_v54 = vpop.f32.mrb[4].mxu1  ;;  %3777 = vmatprep.mubr.bf16.mxu0 %v4510_v34 }
 0x10b   : > { %v3312_v59 = vpop.f32.mrb[5].mxu0  ;;  %v3384_v5 = vpop.f32.mrb[5].mxu1 }
 0x10c   : > { %v4893_v13 = vadd.f32 %v3312_v59, %v3311_v0  ;;  %v3314_v12 = vpop.f32.mrb[6].mxu0  ;;  %v4899_v19 = vadd.f32 %v3384_v5, %v3383_v54  ;;  %v3386_v53 = vpop.f32.mrb[6].mxu1 }
 0x10d   : > { %v3315_v1 = vpop.f32.mrb[7].mxu0  ;;  %2301 = vmatmul.mubr.bf16.gmra.mrb[108].mxu1 %v4665_v35  ;;  %v3387_v58 = vpop.f32.mrb[7].mxu1 }
 0x10e   : > { %v4895_v28 = vadd.f32 %v3315_v1, %v3314_v12  ;;  %2308 = vmatprep.mubr.bf16.mxu1 %v4670_v9  ;;  %v4903_v50 = vadd.f32 %v3387_v58, %v3386_v53  ;;  %v4941_v58 = vld [vmem:[%s4052_s14 + $0xcc] sm:$0xf] }
 0x111   : > { %3778 = vmatmul.mubr.bf16.vlgmr.msra.gmra.mrb[112].mxu0 %v4571_v29 }
 0x112   : > { %v3317_v51 = vpop.f32.mrb[8].mxu0  ;;  %3781 = vmatprep.mubr.bf16.mxu0 %v4621_v16 }
 0x113   : > { %v3318_v15 = vpop.f32.mrb[9].mxu0 }
 0x114   : > { %v4907_v26 = vadd.f32 %v3318_v15, %v3317_v51  ;;  %v3320_v20 = vpop.f32.mrb[10].mxu0  ;;  %v3389_v35 = vpop.f32.mrb[8].mxu1  ;;  %v907_v15 = vshll.u32 %v4941_v58, 16 }
 0x115   : > { %2309 = vmatmul.mubr.bf16.gmra.mrb[112].mxu1 %v4688_v32  ;;  %v3321_v62 = vpop.f32.mrb[11].mxu0  ;;  %v3390_v9 = vpop.f32.mrb[9].mxu1 }
 0x116   : > { %2316 = vmatprep.mubr.bf16.mxu1 %v4693_v11  ;;  %v4911_v42 = vadd.f32 %v3321_v62, %v3320_v20  ;;  %v4913_v34 = vadd.f32 %v3390_v9, %v3389_v35  ;;  %v3392_v44 = vpop.f32.mrb[10].mxu1 }
 0x117   : > { %v3393_v47 = vpop.f32.mrb[11].mxu1 }
 0x118   : > { %v4915_v60 = vadd.f32 %v3393_v47, %v3392_v44 }
 0x119   : > { %3782 = vmatmul.mubr.bf16.gmra.mrb[116].mxu0 %v4667_v17 }
 0x11a   : > { %v3323_v32 = vpop.f32.mrb[12].mxu0  ;;  %3785 = vmatprep.mubr.bf16.mxu0 %v4690_v49 }
 0x11b   : > { %v3324_v29 = vpop.f32.mrb[13].mxu0 }
 0x11c   : > { %v4919_v36 = vadd.f32 %v3324_v29, %v3323_v32  ;;  %v3326_v11 = vpop.f32.mrb[14].mxu0 }
 0x11d   : > { %2317 = vmatmul.mubr.bf16.gmra.mrb[116].mxu1 %v4707_v10  ;;  %v3327_v16 = vpop.f32.mrb[15].mxu0 }
 0x11e   : > { %2324 = vmatprep.mubr.bf16.mxu1 %v5354_v45  ;;  %v4923_v14 = vadd.f32 %v3327_v16, %v3326_v11  ;;  %v909_v11 = vrot.slane %v907_v15, 5 }
 0x120   : > { %v3395_v61 = vpop.f32.mrb[12].mxu1 }
 0x121   : > { %v3396_v57 = vpop.f32.mrb[13].mxu1  ;;  %3786 = vmatmul.mubr.bf16.gmra.mrb[120].mxu0 %v4709_v25 }
 0x122   : > { %v4925_v27 = vadd.f32 %v3396_v57, %v3395_v61  ;;  %v3398_v30 = vpop.f32.mrb[14].mxu1  ;;  %3789 = vmatprep.mubr.bf16.mxu0 %v4722_v2  ;;  %v4944_v2 = vld [vmem:[%s4052_s14 + $0xd0] sm:$0xf] }
 0x123   : > { %v3399_v22 = vpop.f32.mrb[15].mxu1  ;;  %v3329_v17 = vpop.f32.mrb[16].mxu0  ;;  %v913_v20 = vshll.u32 %v4944_v2, 16  ;;  %v917_v35 = vshrl.u32 %v4944_v2, 16 }
 0x124   : > { %v4927_v10 = vadd.f32 %v3399_v22, %v3398_v30  ;;  %v3330_v45 = vpop.f32.mrb[17].mxu0 }
 0x125   : > { %2325 = vmatmul.mubr.bf16.gmra.mrb[120].mxu1 %v4144_v7  ;;  %v4933_v59 = vadd.f32 %v3330_v45, %v3329_v17  ;;  %v3332_v54 = vpop.f32.mrb[18].mxu0  ;;  %v915_v16 = vrot.slane %v913_v20, 5  ;;  %v919_v61 = vrot.slane %v917_v35, 4  ;;  %v318_v17 = vld [vmem:[%s4052_s14 + $0xd4] sm:$0x1]  ;;  %s3161_s14 = sshll.u32 %s5364_s15, 7 }
 0x126   : > { %2332 = vmatprep.mubr.bf16.mxu1 %v5356_v24  ;;  %v3333_v5 = vpop.f32.mrb[19].mxu0  ;;  %s5244_s21 = scalar_lea.vmem %s5327_s2, %s3161_s14 }
 0x127   : > { %v4938_v25 = vadd.f32 %v3333_v5, %v3332_v54 }
 0x128   : > { %v3417_v49 = vpop.f32.mrb[16].mxu1 }
 0x129   : > { %v3418_v0 = vpop.f32.mrb[17].mxu1  ;;  %3790 = vmatmul.mubr.bf16.gmra.mrb[124].mxu0 %v4742_v52 }
 0x12a   : > { %v3419_v12 = vadd.f32 %v3418_v0, %v3417_v49  ;;  %v3420_v1 = vpop.f32.mrb[18].mxu1  ;;  %3793 = vmatprep.mubr.bf16.mxu0 %v4761_v4  ;;  %v920_v0 = vor.u32 %v919_v61, %v915_v16 }
 0x12b   : > { %v3421_v53 = vpop.f32.mrb[19].mxu1 }
 0x12c   : > { %v4936_v7 = vadd.f32 %v3419_v12, %v4875_v31  ;;  %v3422_v24 = vadd.f32 %v3421_v53, %v3420_v1  ;;  %v904_v31 = vshrl.u32 %v4941_v58, 16  ;;  %v3335_v62 = vpop.f32.mrb[20].mxu0  ;;  %v923_v12 = vshll.u32 %v318_v17, 16 }
 0x12d   : > { %2333 = vmatmul.mubr.bf16.gmra.mrb[124].mxu1 %v4203_v3  ;;  %v3336_v3 = vpop.f32.mrb[21].mxu0  ;;  %v921_v20 = vrot.slane %v920_v0, 4 }
 0x12e   : > { %v4949_v51 = vadd.f32 %v3422_v24, %v4879_v63  ;;  %2340 = vmatprep.mubr.bf16.mxu1 %v5357_v38  ;;  %v4957_v44 = vadd.f32 %v3336_v3, %v3335_v62  ;;  %v3338_v47 = vpop.f32.mrb[22].mxu0  ;;  %v906_v29 = vrot.slane %v904_v31, 4  ;;  %v925_v35 = vrot.slane %v923_v12, 5 }
 0x12f   : > { %v3339_v32 = vpop.f32.mrb[23].mxu0 }
 0x130   : > { %v3423_v9 = vpop.f32.mrb[20].mxu1  ;;  %v4962_v30 = vadd.f32 %v3339_v32, %v3338_v47  ;;  %v910_v45 = vor.u32 %v909_v11, %v906_v29 }
 0x131   : > { %v3424_v52 = vpop.f32.mrb[21].mxu1  ;;  %3794 = vmatmul.mubr.bf16.gmra.mrb[128].mxu0 %v4780_v18 }
 0x132   : > { %v3425_v63 = vadd.f32 %v3424_v52, %v3423_v9  ;;  %v3426_v38 = vpop.f32.mrb[22].mxu1  ;;  %3797 = vmatprep.mubr.bf16.mxu0 %v4796_v6  ;;  %v932_v9 = vrot.slane %v4944_v2, 5  ;;  %v926_v52 = vsel %vm4097_vm2, %v921_v20, %v925_v35 }
 0x133   : > { %v3427_v4 = vpop.f32.mrb[23].mxu1 }
 0x134   : > { %v4960_v57 = vadd.f32 %v3425_v63, %v4893_v13  ;;  %v3428_v22 = vadd.f32 %v3427_v4, %v3426_v38  ;;  %v3341_v13 = vpop.f32.mrb[24].mxu0  ;;  %v934_v32 = vrot.slane %v932_v9, 4 }
 0x135   : > { %2341 = vmatmul.mubr.bf16.gmra.mrb[128].mxu1 %v4233_v46  ;;  %v3342_v1 = vpop.f32.mrb[25].mxu0 }
 0x136   : > { %v4968_v49 = vadd.f32 %v3428_v22, %v4895_v28  ;;  %2348 = vmatprep.mubr.bf16.mxu1 %v5358_v21  ;;  %v4972_v53 = vadd.f32 %v3342_v1, %v3341_v13  ;;  %v3344_v46 = vpop.f32.mrb[26].mxu0  ;;  %v911_v28 = vrot.slane %v910_v45, 4 }
 0x137   : > { %v3345_v18 = vpop.f32.mrb[27].mxu0 }
 0x138   : > { %v3429_v54 = vpop.f32.mrb[24].mxu1  ;;  %v4977_v6 = vadd.f32 %v3345_v18, %v3344_v46 }
 0x139   : > { %v3430_v5 = vpop.f32.mrb[25].mxu1  ;;  %3798 = vmatmul.mubr.bf16.gmra.mrb[132].mxu0 %v4809_v33  ;;  %v3000_v33 = vrot.slane %v4941_v58, 9 }
 0x13a   : > { %v3431_v24 = vadd.f32 %v3430_v5, %v3429_v54  ;;  %v3432_v31 = vpop.f32.mrb[26].mxu1  ;;  %3801 = vmatprep.mubr.bf16.mxu0 %v4824_v39  ;;  %v935_v39 = vrot.slane %v318_v17, 5 }
 0x13b   : > { %v3433_v15 = vpop.f32.mrb[27].mxu1  ;;  %v933_v17 = vsel %vm4290_vm5, %v3000_v33, %v932_v9 }
 0x13c   : > { %v4975_v21 = vadd.f32 %v3431_v24, %v4907_v26  ;;  %v3434_v62 = vadd.f32 %v3433_v15, %v3432_v31  ;;  %v916_v26 = vsel %vm4097_vm2, %v911_v28, %v915_v16  ;;  %v3347_v63 = vpop.f32.mrb[28].mxu0 }
 0x13d   : > { %2349 = vmatmul.mubr.bf16.gmra.mrb[132].mxu1 %v4358_v23  ;;  %v3348_v23 = vpop.f32.mrb[29].mxu0  ;;  %v3053_v11 = vcombine.low %v916_v26, %v926_v52 }
 0x13e   : > { %v4983_v3 = vadd.f32 %v3434_v62, %v4911_v42  ;;  %2356 = vmatprep.mubr.bf16.mxu1 %v4891_v43  ;;  %v4992_v4 = vadd.f32 %v3348_v23, %v3347_v63  ;;  %v3350_v29 = vpop.f32.mrb[30].mxu0 }
 0x13f   : > { %v3351_v61 = vpop.f32.mrb[31].mxu0 }
 0x140   : > { %v3435_v47 = vpop.f32.mrb[28].mxu1  ;;  %v4997_v37 = vadd.f32 %v3351_v61, %v3350_v29 }
 0x141   : > { %v3436_v38 = vpop.f32.mrb[29].mxu1  ;;  %3802 = vmatmul.mubr.bf16.gmra.mrb[136].mxu0 %v4838_v56 }
 0x142   : > { %v3437_v42 = vadd.f32 %v3436_v38, %v3435_v47  ;;  %v3438_v43 = vpop.f32.mrb[30].mxu1  ;;  %3805 = vmatprep.mubr.bf16.mxu0 %v4873_v55 }
 0x143   : > { %v3439_v22 = vpop.f32.mrb[31].mxu1 }
 0x144   : > { %v4995_v16 = vadd.f32 %v3437_v42, %v4919_v36  ;;  %v3440_v45 = vadd.f32 %v3439_v22, %v3438_v43  ;;  %v936_v36 = vsel %vm4290_vm5, %v934_v32, %v935_v39  ;;  %v3353_v12 = vpop.f32.mrb[32].mxu0 }
 0x145   : > { %2357 = vmatmul.mubr.bf16.gmra.mrb[136].mxu1 %v4826_v41  ;;  %v3354_v54 = vpop.f32.mrb[33].mxu0  ;;  %v3052_v41 = vcombine.low %v4941_v58, %v4944_v2  ;;  %v3054_v56 = vcombine.low %v933_v17, %v936_v36 }
 0x146   : > { %v5002_v0 = vadd.f32 %v3440_v45, %v4923_v14  ;;  %2364 = vmatprep.mubr.bf16.mxu1 %v3053_v11  ;;  %v5011_v5 = vadd.f32 %v3354_v54, %v3353_v12  ;;  %v3356_v24 = vpop.f32.mrb[34].mxu0 }
 0x147   : > { %v3357_v55 = vpop.f32.mrb[35].mxu0 }
 0x148   : > { %v3441_v13 = vpop.f32.mrb[32].mxu1  ;;  %v3358_v40 = vadd.f32 %v3357_v55, %v3356_v24 }
 0x149   : > { %v3442_v1 = vpop.f32.mrb[33].mxu1  ;;  %3806 = vmatmul.mubr.bf16.gmra.mrb[140].mxu0 %v3054_v56 }
 0x14a   : > { %v3443_v14 = vadd.f32 %v3442_v1, %v3441_v13  ;;  %v3444_v46 = vpop.f32.mrb[34].mxu1 }
 0x14b   : > { %v3445_v31 = vpop.f32.mrb[35].mxu1 }
 0x14c   : > { %v5014_v18 = vadd.f32 %v3443_v14, %v4933_v59  ;;  %v3446_v15 = vadd.f32 %v3445_v31, %v3444_v46  ;;  %v3359_v20 = vpop.f32.mrb[36].mxu0 }
 0x14d   : > { %2365 = vmatmul.mubr.bf16.gmra.mrb[140].mxu1 %v3052_v41  ;;  %v3360_v2 = vpop.f32.mrb[37].mxu0 }
 0x14e   : > { %v5017_v28 = vadd.f32 %v3446_v15, %v4938_v25  ;;  %v5019_v62 = vadd.f32 %v3360_v2, %v3359_v20  ;;  %v3362_v26 = vpop.f32.mrb[38].mxu0 }
 0x14f   : > { %v3363_v63 = vpop.f32.mrb[39].mxu0 }
 0x150   : > { %v3447_v58 = vpop.f32.mrb[36].mxu1  ;;  %v3364_v23 = vadd.f32 %v3363_v63, %v3362_v26 }
 0x151   : > { %v3448_v35 = vpop.f32.mrb[37].mxu1 }
 0x152   : > { %v3449_v9 = vadd.f32 %v3448_v35, %v3447_v58  ;;  %v3450_v52 = vpop.f32.mrb[38].mxu1 }
 0x153   : > { %v3451_v47 = vpop.f32.mrb[39].mxu1 }
 0x154   : > { %v5022_v59 = vadd.f32 %v3449_v9, %v4957_v44  ;;  %v3452_v38 = vadd.f32 %v3451_v47, %v3450_v52  ;;  %v3365_v25 = vpop.f32.mrb[40].mxu0 }
 0x155   : > { %v3366_v42 = vpop.f32.mrb[41].mxu0 }
 0x156   : > { %v5025_v33 = vadd.f32 %v3452_v38, %v4962_v30  ;;  %v5027_v43 = vadd.f32 %v3366_v42, %v3365_v25  ;;  %v3368_v39 = vpop.f32.mrb[42].mxu0 }
 0x157   : > { %v3369_v22 = vpop.f32.mrb[43].mxu0 }
 0x158   : > { %v3453_v32 = vpop.f32.mrb[40].mxu1  ;;  %v5032_v44 = vadd.f32 %v3369_v22, %v3368_v39 }
 0x159   : > { %v3454_v29 = vpop.f32.mrb[41].mxu1 }
 0x15a   : > { %v3455_v11 = vadd.f32 %v3454_v29, %v3453_v32  ;;  %v3456_v61 = vpop.f32.mrb[42].mxu1 }
 0x15b   : > { %v3457_v45 = vpop.f32.mrb[43].mxu1 }
 0x15c   : > { %v5030_v17 = vadd.f32 %v3455_v11, %v4972_v53  ;;  %v3458_v36 = vadd.f32 %v3457_v45, %v3456_v61  ;;  %v3371_v12 = vpop.f32.mrb[44].mxu0 }
 0x15d   : > { %v3372_v54 = vpop.f32.mrb[45].mxu0 }
 0x15e   : > { %v5035_v30 = vadd.f32 %v3458_v36, %v4977_v6  ;;  %v5037_v41 = vadd.f32 %v3372_v54, %v3371_v12  ;;  %v3374_v14 = vpop.f32.mrb[46].mxu0 }
 0x15f   : > { %v3375_v46 = vpop.f32.mrb[47].mxu0 }
 0x160   : > { %v3459_v13 = vpop.f32.mrb[44].mxu1  ;;  %v5042_v31 = vadd.f32 %v3375_v46, %v3374_v14 }
 0x161   : > { %v3460_v1 = vpop.f32.mrb[45].mxu1 }
 0x162   : > { %v3461_v56 = vadd.f32 %v3460_v1, %v3459_v13  ;;  %v3462_v24 = vpop.f32.mrb[46].mxu1 }
 0x163   : > { %v3463_v55 = vpop.f32.mrb[47].mxu1 }
 0x164   : > { %v5040_v53 = vadd.f32 %v3461_v56, %v4992_v4  ;;  %v3464_v15 = vadd.f32 %v3463_v55, %v3462_v24  ;;  %v3529_v58 = vpop.f32.mrb[48].mxu0 }
 0x165   : > { %v3530_v35 = vpop.f32.mrb[49].mxu0 }
 0x166   : > { %v5045_v6 = vadd.f32 %v3464_v15, %v4997_v37  ;;  %v3531_v26 = vadd.f32 %v3530_v35, %v3529_v58  ;;  %v3532_v63 = vpop.f32.mrb[50].mxu0 }
 0x167   : > { %v3533_v38 = vpop.f32.mrb[51].mxu0 }
 0x168   : > { %v3465_v20 = vpop.f32.mrb[48].mxu1  ;;  %v5051_v4 = vadd.f32 %v3531_v26, %v4936_v7  ;;  %v3534_v42 = vadd.f32 %v3533_v38, %v3532_v63 }
 0x169   : > { %v3466_v2 = vpop.f32.mrb[49].mxu1 }
 0x16a   : > { %v3467_v9 = vadd.f32 %v3466_v2, %v3465_v20  ;;  %v3468_v52 = vpop.f32.mrb[50].mxu1  ;;  %v5056_v29 = vadd.f32 %v3534_v42, %v4949_v51 }
 0x16b   : > { %v3469_v47 = vpop.f32.mrb[51].mxu1 }
 0x16c   : > { %v5048_v25 = vadd.f32 %v3467_v9, %v5011_v5  ;;  %v3470_v32 = vadd.f32 %v3469_v47, %v3468_v52  ;;  %v3535_v39 = vpop.f32.mrb[52].mxu0 }
 0x16d   : > { %v3536_v22 = vpop.f32.mrb[53].mxu0 }
 0x16e   : > { %v5053_v37 = vadd.f32 %v3470_v32, %v3358_v40  ;;  %v3537_v36 = vadd.f32 %v3536_v22, %v3535_v39  ;;  %v3538_v13 = vpop.f32.mrb[54].mxu0 }
 0x16f   : > { %v3539_v54 = vpop.f32.mrb[55].mxu0 }
 0x170   : > { %v3471_v11 = vpop.f32.mrb[52].mxu1  ;;  %v5062_v1 = vadd.f32 %v3537_v36, %v4960_v57  ;;  %v3540_v56 = vadd.f32 %v3539_v54, %v3538_v13 }
 0x171   : > { %v3472_v61 = vpop.f32.mrb[53].mxu1 }
 0x172   : > { %v3473_v45 = vadd.f32 %v3472_v61, %v3471_v11  ;;  %v3474_v12 = vpop.f32.mrb[54].mxu1  ;;  %v5067_v14 = vadd.f32 %v3540_v56, %v4968_v49 }
 0x173   : > { %v3475_v5 = vpop.f32.mrb[55].mxu1 }
 0x174   : > { %v5059_v7 = vadd.f32 %v3473_v45, %v5019_v62  ;;  %v3476_v40 = vadd.f32 %v3475_v5, %v3474_v12  ;;  %v3541_v46 = vpop.f32.mrb[56].mxu0 }
 0x175   : > { %v3542_v15 = vpop.f32.mrb[57].mxu0 }
 0x176   : > { %v5064_v51 = vadd.f32 %v3476_v40, %v3364_v23  ;;  %v3543_v58 = vadd.f32 %v3542_v15, %v3541_v46  ;;  %v3544_v35 = vpop.f32.mrb[58].mxu0 }
 0x177   : > { %v3545_v9 = vpop.f32.mrb[59].mxu0 }
 0x178   : > { %v3477_v24 = vpop.f32.mrb[56].mxu1  ;;  %v5073_v26 = vadd.f32 %v3543_v58, %v4975_v21  ;;  %v3546_v52 = vadd.f32 %v3545_v9, %v3544_v35 }
 0x179   : > { %v3478_v55 = vpop.f32.mrb[57].mxu1 }
 0x17a   : > { %v3479_v20 = vadd.f32 %v3478_v55, %v3477_v24  ;;  %v3480_v2 = vpop.f32.mrb[58].mxu1  ;;  %v5079_v63 = vadd.f32 %v3546_v52, %v4983_v3 }
 0x17b   : > { %v3481_v62 = vpop.f32.mrb[59].mxu1 }
 0x17c   : > { %v5070_v57 = vadd.f32 %v3479_v20, %v5027_v43  ;;  %v3482_v23 = vadd.f32 %v3481_v62, %v3480_v2  ;;  %v3547_v38 = vpop.f32.mrb[60].mxu0 }
 0x17d   : > { %v3548_v42 = vpop.f32.mrb[61].mxu0 }
 0x17e   : > { %v5076_v49 = vadd.f32 %v3482_v23, %v5032_v44  ;;  %v3549_v39 = vadd.f32 %v3548_v42, %v3547_v38  ;;  %v3550_v43 = vpop.f32.mrb[62].mxu0 }
 0x17f   : > { %v3551_v45 = vpop.f32.mrb[63].mxu0 }
 0x180   : > { %v3483_v47 = vpop.f32.mrb[60].mxu1  ;;  %v5085_v36 = vadd.f32 %v3549_v39, %v4995_v16  ;;  %v3552_v12 = vadd.f32 %v3551_v45, %v3550_v43 }
 0x181   : > { %v3484_v32 = vpop.f32.mrb[61].mxu1 }
 0x182   : > { %v3485_v11 = vadd.f32 %v3484_v32, %v3483_v47  ;;  %v3486_v61 = vpop.f32.mrb[62].mxu1  ;;  %v5091_v13 = vadd.f32 %v3552_v12, %v5002_v0 }
 0x183   : > { %v3487_v22 = vpop.f32.mrb[63].mxu1 }
 0x184   : > { %v5082_v21 = vadd.f32 %v3485_v11, %v5037_v41  ;;  %v3488_v44 = vadd.f32 %v3487_v22, %v3486_v61  ;;  %v3553_v54 = vpop.f32.mrb[64].mxu0 }
 0x185   : > { %v3554_v56 = vpop.f32.mrb[65].mxu0 }
 0x186   : > { %v5088_v3 = vadd.f32 %v3488_v44, %v5042_v31  ;;  %v3555_v46 = vadd.f32 %v3554_v56, %v3553_v54  ;;  %v3556_v41 = vpop.f32.mrb[66].mxu0 }
 0x187   : > { %v3557_v20 = vpop.f32.mrb[67].mxu0 }
 0x188   : > { %v3489_v5 = vpop.f32.mrb[64].mxu1  ;;  %v5097_v58 = vadd.f32 %v3555_v46, %v5014_v18  ;;  %v3558_v2 = vadd.f32 %v3557_v20, %v3556_v41 }
 0x189   : > { %v3490_v40 = vpop.f32.mrb[65].mxu1 }
 0x18a   : > { %v3491_v24 = vadd.f32 %v3490_v40, %v3489_v5  ;;  %v3492_v55 = vpop.f32.mrb[66].mxu1  ;;  %v5103_v35 = vadd.f32 %v3558_v2, %v5017_v28 }
 0x18b   : > { %v3493_v15 = vpop.f32.mrb[67].mxu1 }
 0x18c   : > { %v5094_v16 = vadd.f32 %v3491_v24, %v4877_v48  ;;  %v3494_v31 = vadd.f32 %v3493_v15, %v3492_v55  ;;  %v3559_v9 = vpop.f32.mrb[68].mxu0 }
 0x18d   : > { %v3560_v52 = vpop.f32.mrb[69].mxu0 }
 0x18e   : > { %v5100_v0 = vadd.f32 %v3494_v31, %v4881_v8  ;;  %v3561_v38 = vadd.f32 %v3560_v52, %v3559_v9  ;;  %v3562_v48 = vpop.f32.mrb[70].mxu0 }
 0x18f   : > { %v3563_v11 = vpop.f32.mrb[71].mxu0 }
 0x190   : > { %v3495_v62 = vpop.f32.mrb[68].mxu1  ;;  %v5109_v39 = vadd.f32 %v3561_v38, %v5022_v59  ;;  %v3564_v61 = vadd.f32 %v3563_v11, %v3562_v48 }
 0x191   : > { %v3496_v23 = vpop.f32.mrb[69].mxu1 }
 0x192   : > { %v3497_v47 = vadd.f32 %v3496_v23, %v3495_v62  ;;  %v3498_v32 = vpop.f32.mrb[70].mxu1  ;;  %v5115_v43 = vadd.f32 %v3564_v61, %v5025_v33 }
 0x193   : > { %v3499_v42 = vpop.f32.mrb[71].mxu1 }
 0x194   : > { %v5106_v18 = vadd.f32 %v3497_v47, %v4899_v19  ;;  %v3500_v8 = vadd.f32 %v3499_v42, %v3498_v32  ;;  %v3565_v45 = vpop.f32.mrb[72].mxu0 }
 0x195   : > { %v3566_v12 = vpop.f32.mrb[73].mxu0 }
 0x196   : > { %v5112_v28 = vadd.f32 %v3500_v8, %v4903_v50  ;;  %v3567_v54 = vadd.f32 %v3566_v12, %v3565_v45  ;;  %v3568_v19 = vpop.f32.mrb[74].mxu0 }
 0x197   : > { %v3569_v24 = vpop.f32.mrb[75].mxu0 }
 0x198   : > { %v3501_v22 = vpop.f32.mrb[72].mxu1  ;;  %v5121_v46 = vadd.f32 %v3567_v54, %v5030_v17  ;;  %v3570_v55 = vadd.f32 %v3569_v24, %v3568_v19 }
 0x199   : > { %v3502_v44 = vpop.f32.mrb[73].mxu1 }
 0x19a   : > { %v3503_v5 = vadd.f32 %v3502_v44, %v3501_v22  ;;  %v3504_v40 = vpop.f32.mrb[74].mxu1  ;;  %v5127_v41 = vadd.f32 %v3570_v55, %v5035_v30 }
 0x19b   : > { %v3505_v56 = vpop.f32.mrb[75].mxu1 }
 0x19c   : > { %v5118_v59 = vadd.f32 %v3503_v5, %v4913_v34  ;;  %v3506_v50 = vadd.f32 %v3505_v56, %v3504_v40  ;;  %v3571_v20 = vpop.f32.mrb[76].mxu0 }
 0x19d   : > { %v3572_v2 = vpop.f32.mrb[77].mxu0 }
 0x19e   : > { %v5124_v33 = vadd.f32 %v3506_v50, %v4915_v60  ;;  %v3573_v9 = vadd.f32 %v3572_v2, %v3571_v20  ;;  %v3574_v34 = vpop.f32.mrb[78].mxu0 }
 0x19f   : > { %v3575_v47 = vpop.f32.mrb[79].mxu0 }
 0x1a0   : > { %v3507_v15 = vpop.f32.mrb[76].mxu1  ;;  %v5133_v38 = vadd.f32 %v3573_v9, %v5040_v53  ;;  %v3576_v32 = vadd.f32 %v3575_v47, %v3574_v34 }
 0x1a1   : > { %v3508_v31 = vpop.f32.mrb[77].mxu1 }
 0x1a2   : > { %v3509_v62 = vadd.f32 %v3508_v31, %v3507_v15  ;;  %v3510_v23 = vpop.f32.mrb[78].mxu1  ;;  %v5139_v48 = vadd.f32 %v3576_v32, %v5045_v6 }
 0x1a3   : > { %v3511_v52 = vpop.f32.mrb[79].mxu1 }
 0x1a4   : > { %v5130_v17 = vadd.f32 %v3509_v62, %v4925_v27  ;;  %v3512_v60 = vadd.f32 %v3511_v52, %v3510_v23  ;;  %v3577_v42 = vpop.f32.mrb[80].mxu0 }
 0x1a5   : > { %v3578_v8 = vpop.f32.mrb[81].mxu0 }
 0x1a6   : > { %v5136_v30 = vadd.f32 %v3512_v60, %v4927_v10  ;;  %v3579_v22 = vadd.f32 %v3578_v8, %v3577_v42  ;;  %v3580_v44 = vpop.f32.mrb[82].mxu0 }
 0x1a7   : > { %v3581_v12 = vpop.f32.mrb[83].mxu0 }
 0x1a8   : > { %v3641_v11 = vpop.f32.mrb[80].mxu1  ;;  %v5142_v53 = vadd.f32 %v3579_v22, %v5048_v25  ;;  %v3582_v54 = vadd.f32 %v3581_v12, %v3580_v44 }
 0x1a9   : > { %v3642_v61 = vpop.f32.mrb[81].mxu1 }
 0x1aa   : > { %v3643_v45 = vadd.f32 %v3642_v61, %v3641_v11  ;;  %v3644_v27 = vpop.f32.mrb[82].mxu1  ;;  %v5148_v6 = vadd.f32 %v3582_v54, %v5053_v37 }
 0x1ab   : > { %v3645_v5 = vpop.f32.mrb[83].mxu1 }
 0x1ac   : > { %v3646_v40 = vadd.f32 %v3645_v5, %v3644_v27  ;;  %v5145_v10 = vadd.f32 %v3643_v45, %v5051_v4  ;;  %v3583_v56 = vpop.f32.mrb[84].mxu0 }
 0x1ad   : > { %v3584_v50 = vpop.f32.mrb[85].mxu0 }
 0x1ae   : > { %v5151_v19 = vadd.f32 %v3646_v40, %v5056_v29  ;;  %v3585_v15 = vadd.f32 %v3584_v50, %v3583_v56  ;;  %v3586_v31 = vpop.f32.mrb[86].mxu0 }
 0x1af   : > { %v3587_v2 = vpop.f32.mrb[87].mxu0 }
 0x1b0   : > { %v3647_v24 = vpop.f32.mrb[84].mxu1  ;;  %v5154_v9 = vadd.f32 %v3585_v15, %v5059_v7  ;;  %v3588_v4 = vadd.f32 %v3587_v2, %v3586_v31 }
 0x1b1   : > { %v3648_v55 = vpop.f32.mrb[85].mxu1 }
 0x1b2   : > { %v3649_v20 = vadd.f32 %v3648_v55, %v3647_v24  ;;  %v3650_v25 = vpop.f32.mrb[86].mxu1  ;;  %v5160_v29 = vadd.f32 %v3588_v4, %v5064_v51 }
 0x1b3   : > { %v3651_v62 = vpop.f32.mrb[87].mxu1 }
 0x1b4   : > { %v3652_v23 = vadd.f32 %v3651_v62, %v3650_v25  ;;  %v5157_v37 = vadd.f32 %v3649_v20, %v5062_v1  ;;  %v3589_v52 = vpop.f32.mrb[88].mxu0 }
 0x1b5   : > { %v3590_v60 = vpop.f32.mrb[89].mxu0 }
 0x1b6   : > { %v5163_v34 = vadd.f32 %v3652_v23, %v5067_v14  ;;  %v3591_v42 = vadd.f32 %v3590_v60, %v3589_v52  ;;  %v3592_v8 = vpop.f32.mrb[90].mxu0 }
 0x1b7   : > { %v3593_v61 = vpop.f32.mrb[91].mxu0 }
 0x1b8   : > { %v3653_v47 = vpop.f32.mrb[88].mxu1  ;;  %v5166_v45 = vadd.f32 %v3591_v42, %v5070_v57  ;;  %v3594_v1 = vadd.f32 %v3593_v61, %v3592_v8 }
 0x1b9   : > { %v3654_v32 = vpop.f32.mrb[89].mxu1 }
 0x1ba   : > { %v3655_v11 = vadd.f32 %v3654_v32, %v3653_v47  ;;  %v3656_v7 = vpop.f32.mrb[90].mxu1  ;;  %v5172_v14 = vadd.f32 %v3594_v1, %v5076_v49 }
 0x1bb   : > { %v3657_v22 = vpop.f32.mrb[91].mxu1 }
 0x1bc   : > { %v3658_v44 = vadd.f32 %v3657_v22, %v3656_v7  ;;  %v5169_v51 = vadd.f32 %v3655_v11, %v5073_v26  ;;  %v3595_v12 = vpop.f32.mrb[92].mxu0 }
 0x1bd   : > { %v3596_v54 = vpop.f32.mrb[93].mxu0 }
 0x1be   : > { %v5175_v27 = vadd.f32 %v3658_v44, %v5079_v63  ;;  %v3597_v56 = vadd.f32 %v3596_v54, %v3595_v12  ;;  %v3598_v50 = vpop.f32.mrb[94].mxu0 }
 0x1bf   : > { %v3599_v55 = vpop.f32.mrb[95].mxu0 }
 0x1c0   : > { %v3659_v5 = vpop.f32.mrb[92].mxu1  ;;  %v5178_v20 = vadd.f32 %v3597_v56, %v5082_v21  ;;  %v3600_v26 = vadd.f32 %v3599_v55, %v3598_v50 }
 0x1c1   : > { %v3660_v40 = vpop.f32.mrb[93].mxu1 }
 0x1c2   : > { %v3661_v24 = vadd.f32 %v3660_v40, %v3659_v5  ;;  %v3662_v57 = vpop.f32.mrb[94].mxu1  ;;  %v5184_v63 = vadd.f32 %v3600_v26, %v5088_v3 }
 0x1c3   : > { %v3663_v15 = vpop.f32.mrb[95].mxu1 }
 0x1c4   : > { %v3664_v31 = vadd.f32 %v3663_v15, %v3662_v57  ;;  %v5181_v49 = vadd.f32 %v3661_v24, %v5085_v36  ;;  %v3601_v2 = vpop.f32.mrb[96].mxu0 }
 0x1c5   : > { %v3602_v4 = vpop.f32.mrb[97].mxu0 }
 0x1c6   : > { %v5187_v25 = vadd.f32 %v3664_v31, %v5091_v13  ;;  %v3603_v52 = vadd.f32 %v3602_v4, %v3601_v2  ;;  %v3604_v60 = vpop.f32.mrb[98].mxu0 }
 0x1c7   : > { %v3605_v32 = vpop.f32.mrb[99].mxu0 }
 0x1c8   : > { %v3665_v62 = vpop.f32.mrb[96].mxu1  ;;  %v5190_v11 = vadd.f32 %v3603_v52, %v5094_v16  ;;  %v3606_v36 = vadd.f32 %v3605_v32, %v3604_v60 }
 0x1c9   : > { %v3666_v23 = vpop.f32.mrb[97].mxu1 }
 0x1ca   : > { %v3667_v47 = vadd.f32 %v3666_v23, %v3665_v62  ;;  %v3668_v21 = vpop.f32.mrb[98].mxu1  ;;  %v5196_v13 = vadd.f32 %v3606_v36, %v5100_v0 }
 0x1cb   : > { %v3669_v42 = vpop.f32.mrb[99].mxu1 }
 0x1cc   : > { %v3670_v8 = vadd.f32 %v3669_v42, %v3668_v21  ;;  %v5193_v3 = vadd.f32 %v3667_v47, %v5097_v58  ;;  %v3607_v61 = vpop.f32.mrb[100].mxu0 }
 0x1cd   : > { %v3608_v1 = vpop.f32.mrb[101].mxu0 }
 0x1ce   : > { %v5199_v7 = vadd.f32 %v3670_v8, %v5103_v35  ;;  %v3609_v12 = vadd.f32 %v3608_v1, %v3607_v61  ;;  %v3610_v54 = vpop.f32.mrb[102].mxu0 }
 0x1cf   : > { %v3611_v40 = vpop.f32.mrb[103].mxu0 }
 0x1d0   : > { %v3671_v22 = vpop.f32.mrb[100].mxu1  ;;  %v5202_v24 = vadd.f32 %v3609_v12, %v5106_v18  ;;  %v3612_v58 = vadd.f32 %v3611_v40, %v3610_v54 }
 0x1d1   : > { %v3672_v44 = vpop.f32.mrb[101].mxu1 }
 0x1d2   : > { %v3673_v5 = vadd.f32 %v3672_v44, %v3671_v22  ;;  %v3674_v16 = vpop.f32.mrb[102].mxu1  ;;  %v5208_v35 = vadd.f32 %v3612_v58, %v5112_v28 }
 0x1d3   : > { %v3675_v56 = vpop.f32.mrb[103].mxu1 }
 0x1d4   : > { %v3676_v50 = vadd.f32 %v3675_v56, %v3674_v16  ;;  %v5205_v0 = vadd.f32 %v3673_v5, %v5109_v39  ;;  %v3613_v55 = vpop.f32.mrb[104].mxu0 }
 0x1d5   : > { %v3614_v26 = vpop.f32.mrb[105].mxu0 }
 0x1d6   : > { %v5211_v57 = vadd.f32 %v3676_v50, %v5115_v43  ;;  %v3615_v2 = vadd.f32 %v3614_v26, %v3613_v55  ;;  %v3616_v4 = vpop.f32.mrb[106].mxu0 }
 0x1d7   : > { %v3617_v23 = vpop.f32.mrb[107].mxu0 }
 0x1d8   : > { %v3677_v15 = vpop.f32.mrb[104].mxu1  ;;  %v5214_v47 = vadd.f32 %v3615_v2, %v5118_v59  ;;  %v3618_v39 = vadd.f32 %v3617_v23, %v3616_v4 }
 0x1d9   : > { %v3678_v31 = vpop.f32.mrb[105].mxu1 }
 0x1da   : > { %v3679_v62 = vadd.f32 %v3678_v31, %v3677_v15  ;;  %v3680_v18 = vpop.f32.mrb[106].mxu1  ;;  %v5220_v43 = vadd.f32 %v3618_v39, %v5124_v33 }
 0x1db   : > { %v3681_v52 = vpop.f32.mrb[107].mxu1 }
 0x1dc   : > { %v3682_v60 = vadd.f32 %v3681_v52, %v3680_v18  ;;  %v5217_v28 = vadd.f32 %v3679_v62, %v5121_v46  ;;  %v3619_v32 = vpop.f32.mrb[108].mxu0 }
 0x1dd   : > { %v3620_v36 = vpop.f32.mrb[109].mxu0 }
 0x1de   : > { %v5223_v21 = vadd.f32 %v3682_v60, %v5127_v41  ;;  %v3621_v61 = vadd.f32 %v3620_v36, %v3619_v32  ;;  %v3622_v59 = vpop.f32.mrb[110].mxu0 }
 0x1df   : > { %v3623_v44 = vpop.f32.mrb[111].mxu0 }
 0x1e0   : > { %v3683_v42 = vpop.f32.mrb[108].mxu1  ;;  %v5226_v46 = vadd.f32 %v3621_v61, %v5130_v17  ;;  %v3624_v5 = vadd.f32 %v3623_v44, %v3622_v59 }
 0x1e1   : > { %v3684_v8 = vpop.f32.mrb[109].mxu1 }
 0x1e2   : > { %v3685_v22 = vadd.f32 %v3684_v8, %v3683_v42  ;;  %v3686_v1 = vpop.f32.mrb[110].mxu1  ;;  %v5232_v41 = vadd.f32 %v3624_v5, %v5136_v30 }
 0x1e3   : > { %v3687_v12 = vpop.f32.mrb[111].mxu1 }
 0x1e4   : > { %v3688_v33 = vadd.f32 %v3687_v12, %v3686_v1  ;;  %v5229_v54 = vadd.f32 %v3685_v22, %v5133_v38  ;;  %v3779_v56 = vpop.f32.mrb[112].mxu0 }
 0x1e5   : > { %v2416_v58 = vadd.f32 %v3779_v56, %v5157_v37  ;;  %v2407_v55 = vpop.f32.mrb[113].mxu0 }
 0x1e6   : > { %v5235_v16 = vadd.f32 %v3688_v33, %v5139_v48  ;;  %v2408_v15 = vadd.f32 %v2407_v55, %v5145_v10  ;;  %v3780_v31 = vpop.f32.mrb[114].mxu0 }
 0x1e7   : > { %v2419_v38 = vadd.f32 %v3780_v31, %v5163_v34  ;;  %v2410_v30 = vpop.f32.mrb[115].mxu0  ;;  %v2734_v39 = vmul.f32 %v2416_v58, %v2416_v58 }
 0x1e8   : > { %v3689_v40 = vpop.f32.mrb[112].mxu1  ;;  %v2411_v37 = vadd.f32 %v2410_v30, %v5151_v19  ;;  %v2732_v10 = vmul.f32 %v2408_v15, %v2408_v15 }
 0x1e9   : > { %v3690_v50 = vpop.f32.mrb[113].mxu1  ;;  %v3202_v4 = vpack.c.bf16 %v2419_v38, %v2416_v58  ;;  %v2735_v8 = vmul.f32 %v2419_v38, %v2419_v38 }
 0x1ea   : > { %v3691_v17 = vadd.f32 %v3690_v50, %v3689_v40  ;;  %v3692_v26 = vpop.f32.mrb[114].mxu1  ;;  %v3197_v18 = vpack.c.bf16 %v2411_v37, %v2408_v15  ;;  %v2694_v23 = vadd.f32 %v2411_v37, %v2408_v15  ;;  %v2733_v34 = vmul.f32 %v2411_v37, %v2411_v37 }
 0x1eb   : > { %v3693_v2 = vpop.f32.mrb[115].mxu1  ;;  %3274 = vst [vmem:[%s5244_s21 + $0x8] sm:$0xff] %v3202_v4  }
 0x1ec   : > { %v3694_v48 = vadd.f32 %v3693_v2, %v3692_v26  ;;  %v5248_v62 = vadd.f32 %v3691_v17, %v5142_v53  ;;  %3198 = vst [vmem:[%s5244_s21] sm:$0xff] %v3197_v18   ;;  %v2695_v60 = vadd.f32 %v2694_v23, %v2416_v58  ;;  %v2764_v32 = vadd.f32 %v2733_v34, %v2732_v10  ;;  %v3783_v36 = vpop.f32.mrb[116].mxu0 }
 0x1ed   : > { %v2432_v19 = vadd.f32 %v3783_v36, %v5181_v49  ;;  %v2423_v61 = vpop.f32.mrb[117].mxu0 }
 0x1ee   : > { %v5251_v52 = vadd.f32 %v3694_v48, %v5148_v6  ;;  %v2765_v22 = vadd.f32 %v2764_v32, %v2734_v39  ;;  %v2424_v1 = vadd.f32 %v2423_v61, %v5169_v51  ;;  %v2696_v44 = vadd.f32 %v2695_v60, %v2419_v38  ;;  %v3784_v12 = vpop.f32.mrb[118].mxu0 }
 0x1ef   : > { %v2435_v5 = vadd.f32 %v3784_v12, %v5187_v25  ;;  %v2426_v40 = vpop.f32.mrb[119].mxu0  ;;  %v2738_v48 = vmul.f32 %v2432_v19, %v2432_v19 }
 0x1f0   : > { %v3695_v42 = vpop.f32.mrb[116].mxu1  ;;  %v2697_v56 = vadd.f32 %v2696_v44, %v2424_v1  ;;  %v2736_v58 = vmul.f32 %v2424_v1, %v2424_v1  ;;  %v2766_v50 = vadd.f32 %v2765_v22, %v2735_v8  ;;  %v2427_v17 = vadd.f32 %v2426_v40, %v5175_v27 }
 0x1f1   : > { %v3696_v53 = vpop.f32.mrb[117].mxu1  ;;  %v3212_v49 = vpack.c.bf16 %v2435_v5, %v2432_v19  ;;  %v2739_v39 = vmul.f32 %v2435_v5, %v2435_v5 }
 0x1f2   : > { %v3697_v59 = vadd.f32 %v3696_v53, %v3695_v42  ;;  %v3698_v6 = vpop.f32.mrb[118].mxu1  ;;  %v2767_v51 = vadd.f32 %v2766_v50, %v2736_v58  ;;  %v3207_v31 = vpack.c.bf16 %v2427_v17, %v2424_v1  ;;  %v2698_v25 = vadd.f32 %v2697_v56, %v2427_v17 }
 0x1f3   : > { %v3699_v33 = vpop.f32.mrb[119].mxu1  ;;  %3276 = vst [vmem:[%s5244_s21 + $0x18] sm:$0xff] %v3212_v49   ;;  %v2737_v38 = vmul.f32 %v2427_v17, %v2427_v17 }
 0x1f4   : > { %v3700_v55 = vadd.f32 %v3699_v33, %v3698_v6  ;;  %v5260_v15 = vadd.f32 %v3697_v59, %v5154_v9  ;;  %v3787_v30 = vpop.f32.mrb[120].mxu0  ;;  %3275 = vst [vmem:[%s5244_s21 + $0x10] sm:$0xff] %v3207_v31   ;;  %v2699_v37 = vadd.f32 %v2698_v25, %v2432_v19 }
 0x1f5   : > { %v2768_v10 = vadd.f32 %v2767_v51, %v2737_v38  ;;  %v2448_v4 = vadd.f32 %v3787_v30, %v5205_v0  ;;  %v2439_v18 = vpop.f32.mrb[121].mxu0 }
 0x1f6   : > { %v5263_v26 = vadd.f32 %v3700_v55, %v5160_v29  ;;  %v2440_v23 = vadd.f32 %v2439_v18, %v5193_v3  ;;  %v3788_v29 = vpop.f32.mrb[122].mxu0  ;;  %v2700_v32 = vadd.f32 %v2699_v37, %v2435_v5 }
 0x1f7   : > { %v2769_v60 = vadd.f32 %v2768_v10, %v2738_v48  ;;  %v2451_v42 = vadd.f32 %v3788_v29, %v5211_v57  ;;  %v2442_v8 = vpop.f32.mrb[123].mxu0  ;;  %v2742_v40 = vmul.f32 %v2448_v4, %v2448_v4 }
 0x1f8   : > { %v3701_v2 = vpop.f32.mrb[120].mxu1  ;;  %v2740_v19 = vmul.f32 %v2440_v23, %v2440_v23  ;;  %v2443_v0 = vadd.f32 %v2442_v8, %v5199_v7  ;;  %v2701_v22 = vadd.f32 %v2700_v32, %v2440_v23 }
 0x1f9   : > { %v3702_v27 = vpop.f32.mrb[121].mxu1  ;;  %v2770_v3 = vadd.f32 %v2769_v60, %v2739_v39  ;;  %v3222_v59 = vpack.c.bf16 %v2451_v42, %v2448_v4 }
 0x1fa   : > { %v3703_v9 = vadd.f32 %v3702_v27, %v3701_v2  ;;  %v3704_v34 = vpop.f32.mrb[122].mxu1  ;;  %v3217_v1 = vpack.c.bf16 %v2443_v0, %v2440_v23  ;;  %v2741_v44 = vmul.f32 %v2443_v0, %v2443_v0  ;;  %v2702_v57 = vadd.f32 %v2701_v22, %v2443_v0 }
 0x1fb   : > { %v3705_v36 = vpop.f32.mrb[123].mxu1  ;;  %v2771_v12 = vadd.f32 %v2770_v3, %v2740_v19  ;;  %3278 = vst [vmem:[%s5244_s21 + $0x28] sm:$0xff] %v3222_v59  }
 0x1fc   : > { %v3706_v53 = vadd.f32 %v3705_v36, %v3704_v34  ;;  %v5272_v61 = vadd.f32 %v3703_v9, %v5166_v45  ;;  %3277 = vst [vmem:[%s5244_s21 + $0x20] sm:$0xff] %v3217_v1   ;;  %v3791_v33 = vpop.f32.mrb[124].mxu0  ;;  %v2703_v56 = vadd.f32 %v2702_v57, %v2448_v4 }
 0x1fd   : > { %v2772_v7 = vadd.f32 %v2771_v12, %v2741_v44  ;;  %v2464_v45 = vadd.f32 %v3791_v33, %v5229_v54  ;;  %v2455_v50 = vpop.f32.mrb[125].mxu0 }
 0x1fe   : > { %v5275_v6 = vadd.f32 %v3706_v53, %v5172_v14  ;;  %v2456_v49 = vadd.f32 %v2455_v50, %v5217_v28  ;;  %v3792_v51 = vpop.f32.mrb[126].mxu0  ;;  %v2743_v14 = vmul.f32 %v2451_v42, %v2451_v42  ;;  %v2704_v25 = vadd.f32 %v2703_v56, %v2451_v42 }
 0x1ff   : > { %v2773_v31 = vadd.f32 %v2772_v7, %v2742_v40  ;;  %v2467_v38 = vadd.f32 %v3792_v51, %v5235_v16  ;;  %v2458_v30 = vpop.f32.mrb[127].mxu0  ;;  %v2746_v60 = vmul.f32 %v2464_v45, %v2464_v45 }
 0x200   : > { %v3707_v5 = vpop.f32.mrb[124].mxu1  ;;  %v2744_v48 = vmul.f32 %v2456_v49, %v2456_v49  ;;  %v2459_v54 = vadd.f32 %v2458_v30, %v5223_v21  ;;  %v2705_v4 = vadd.f32 %v2704_v25, %v2456_v49 }
 0x201   : > { %v3708_v58 = vpop.f32.mrb[125].mxu1  ;;  %v2774_v27 = vadd.f32 %v2773_v31, %v2743_v14  ;;  %v3232_v28 = vpack.c.bf16 %v2467_v38, %v2464_v45  ;;  %v2747_v22 = vmul.f32 %v2467_v38, %v2467_v38 }
 0x202   : > { %v3709_v55 = vadd.f32 %v3708_v58, %v3707_v5  ;;  %v3710_v17 = vpop.f32.mrb[126].mxu1  ;;  %v3227_v18 = vpack.c.bf16 %v2459_v54, %v2456_v49  ;;  %v2745_v9 = vmul.f32 %v2459_v54, %v2459_v54  ;;  %v2706_v29 = vadd.f32 %v2705_v4, %v2459_v54 }
 0x203   : > { %v3711_v2 = vpop.f32.mrb[127].mxu1  ;;  %v2775_v34 = vadd.f32 %v2774_v27, %v2744_v48  ;;  %3280 = vst [vmem:[%s5244_s21 + $0x38] sm:$0xff] %v3232_v28  }
 0x204   : > { %v3712_v37 = vadd.f32 %v3711_v2, %v3710_v17  ;;  %v2335_v10 = vadd.f32 %v3709_v55, %v5178_v20  ;;  %3279 = vst [vmem:[%s5244_s21 + $0x30] sm:$0xff] %v3227_v18   ;;  %v3795_v39 = vpop.f32.mrb[128].mxu0  ;;  %v2707_v32 = vadd.f32 %v2706_v29, %v2464_v45 }
 0x205   : > { %v2776_v42 = vadd.f32 %v2775_v34, %v2745_v9  ;;  %v2480_v21 = vadd.f32 %v3795_v39, %v5260_v15  ;;  %v2471_v20 = vpop.f32.mrb[129].mxu0 }
 0x206   : > { %v2338_v23 = vadd.f32 %v3712_v37, %v5184_v63  ;;  %v2472_v19 = vadd.f32 %v2471_v20, %v5248_v62  ;;  %v3796_v0 = vpop.f32.mrb[130].mxu0  ;;  %v2708_v3 = vadd.f32 %v2707_v32, %v2467_v38 }
 0x207   : > { %v2777_v63 = vadd.f32 %v2776_v42, %v2746_v60  ;;  %v2483_v59 = vadd.f32 %v3796_v0, %v5263_v26  ;;  %v2474_v44 = vpop.f32.mrb[131].mxu0  ;;  %v2750_v49 = vmul.f32 %v2480_v21, %v2480_v21 }
 0x208   : > { %v3713_v16 = vpop.f32.mrb[128].mxu1  ;;  %v2748_v12 = vmul.f32 %v2472_v19, %v2472_v19  ;;  %v2475_v15 = vadd.f32 %v2474_v44, %v5251_v52  ;;  %v2709_v33 = vadd.f32 %v2708_v3, %v2472_v19 }
 0x209   : > { %v3714_v36 = vpop.f32.mrb[129].mxu1  ;;  %v2778_v40 = vadd.f32 %v2777_v63, %v2747_v22  ;;  %v3242_v62 = vpack.c.bf16 %v2483_v59, %v2480_v21  ;;  %v2751_v30 = vmul.f32 %v2483_v59, %v2483_v59 }
 0x20a   : > { %v3715_v8 = vadd.f32 %v3714_v36, %v3713_v16  ;;  %v3716_v53 = vpop.f32.mrb[130].mxu1  ;;  %v3237_v56 = vpack.c.bf16 %v2475_v15, %v2472_v19  ;;  %v2749_v7 = vmul.f32 %v2475_v15, %v2475_v15  ;;  %v2710_v50 = vadd.f32 %v2709_v33, %v2475_v15 }
 0x20b   : > { %v3717_v1 = vpop.f32.mrb[131].mxu1  ;;  %v2779_v58 = vadd.f32 %v2778_v40, %v2748_v12  ;;  %3282 = vst [vmem:[%s5244_s21 + $0x48] sm:$0xff] %v3242_v62  }
 0x20c   : > { %v3718_v57 = vadd.f32 %v3717_v1, %v3716_v53  ;;  %v2343_v5 = vadd.f32 %v3715_v8, %v5190_v11  ;;  %3281 = vst [vmem:[%s5244_s21 + $0x40] sm:$0xff] %v3237_v56   ;;  %v3799_v55 = vpop.f32.mrb[132].mxu0  ;;  %v2711_v17 = vadd.f32 %v2710_v50, %v2480_v21 }
 0x20d   : > { %v2780_v51 = vadd.f32 %v2779_v58, %v2749_v7  ;;  %v2496_v14 = vadd.f32 %v3799_v55, %v2335_v10  ;;  %v2487_v31 = vpop.f32.mrb[133].mxu0 }
 0x20e   : > { %v2346_v45 = vadd.f32 %v3718_v57, %v5196_v13  ;;  %v2488_v25 = vadd.f32 %v2487_v31, %v5272_v61  ;;  %v3800_v2 = vpop.f32.mrb[134].mxu0  ;;  %v2712_v13 = vadd.f32 %v2711_v17, %v2483_v59 }
 0x20f   : > { %v2781_v48 = vadd.f32 %v2780_v51, %v2750_v49  ;;  %v2499_v37 = vadd.f32 %v3800_v2, %v2338_v23  ;;  %v2490_v4 = vpop.f32.mrb[135].mxu0  ;;  %v2754_v21 = vmul.f32 %v2496_v14, %v2496_v14 }
 0x210   : > { %v3719_v26 = vpop.f32.mrb[132].mxu1  ;;  %v2752_v27 = vmul.f32 %v2488_v25, %v2488_v25  ;;  %v2491_v18 = vadd.f32 %v2490_v4, %v5275_v6  ;;  %v2713_v9 = vadd.f32 %v2712_v13, %v2488_v25 }
 0x211   : > { %v3720_v52 = vpop.f32.mrb[133].mxu1  ;;  %v2782_v34 = vadd.f32 %v2781_v48, %v2751_v30  ;;  %v3252_v29 = vpack.c.bf16 %v2499_v37, %v2496_v14  ;;  %v2755_v63 = vmul.f32 %v2499_v37, %v2499_v37 }
 0x212   : > { %v3721_v11 = vadd.f32 %v3720_v52, %v3719_v26  ;;  %v3722_v38 = vpop.f32.mrb[134].mxu1  ;;  %v3247_v61 = vpack.c.bf16 %v2491_v18, %v2488_v25  ;;  %v2753_v16 = vmul.f32 %v2491_v18, %v2491_v18  ;;  %v2714_v32 = vadd.f32 %v2713_v9, %v2491_v18 }
 0x213   : > { %v3723_v54 = vpop.f32.mrb[135].mxu1  ;;  %v2783_v60 = vadd.f32 %v2782_v34, %v2752_v27  ;;  %3284 = vst [vmem:[%s5244_s21 + $0x58] sm:$0xff] %v3252_v29  }
 0x214   : > { %v3724_v28 = vadd.f32 %v3723_v54, %v3722_v38  ;;  %v2351_v10 = vadd.f32 %v3721_v11, %v5202_v24  ;;  %3283 = vst [vmem:[%s5244_s21 + $0x50] sm:$0xff] %v3247_v61   ;;  %v3803_v42 = vpop.f32.mrb[136].mxu0  ;;  %v2715_v36 = vadd.f32 %v2714_v32, %v2496_v14 }
 0x215   : > { %v2784_v20 = vadd.f32 %v2783_v60, %v2753_v16  ;;  %v2503_v19 = vpop.f32.mrb[137].mxu0 }
 0x216   : > { %v2354_v39 = vadd.f32 %v3724_v28, %v5208_v35  ;;  %v2512_v8 = vadd.f32 %v3803_v42, %v2351_v10  ;;  %v2504_v53 = vadd.f32 %v2503_v19, %v2343_v5  ;;  %v3804_v22 = vpop.f32.mrb[138].mxu0  ;;  %v2716_v35 = vadd.f32 %v2715_v36, %v2499_v37 }
 0x217   : > { %v2785_v3 = vadd.f32 %v2784_v20, %v2754_v21  ;;  %v2506_v44 = vpop.f32.mrb[139].mxu0 }
 0x218   : > { %v3725_v23 = vpop.f32.mrb[136].mxu1  ;;  %v2515_v59 = vadd.f32 %v3804_v22, %v2354_v39  ;;  %v2756_v12 = vmul.f32 %v2504_v53, %v2504_v53  ;;  %v2507_v15 = vadd.f32 %v2506_v44, %v2346_v45  ;;  %v2717_v40 = vadd.f32 %v2716_v35, %v2504_v53 }
 0x219   : > { %v3726_v6 = vpop.f32.mrb[137].mxu1  ;;  %v2786_v62 = vadd.f32 %v2785_v3, %v2755_v63  ;;  %v2758_v17 = vmul.f32 %v2512_v8, %v2512_v8 }
 0x21a   : > { %v3727_v24 = vadd.f32 %v3726_v6, %v3725_v23  ;;  %v3728_v0 = vpop.f32.mrb[138].mxu1  ;;  %v3262_v56 = vpack.c.bf16 %v2515_v59, %v2512_v8  ;;  %v3257_v7 = vpack.c.bf16 %v2507_v15, %v2504_v53  ;;  %v2757_v5 = vmul.f32 %v2507_v15, %v2507_v15 }
 0x21b   : > { %v3729_v1 = vpop.f32.mrb[139].mxu1  ;;  %v2787_v50 = vadd.f32 %v2786_v62, %v2756_v12  ;;  %v2718_v26 = vadd.f32 %v2717_v40, %v2507_v15  ;;  %v2759_v38 = vmul.f32 %v2515_v59, %v2515_v59 }
 0x21c   : > { %v3730_v57 = vadd.f32 %v3729_v1, %v3728_v0  ;;  %v2359_v33 = vadd.f32 %v3727_v24, %v5214_v47  ;;  %3286 = vst [vmem:[%s5244_s21 + $0x68] sm:$0xff] %v3262_v56   ;;  %3285 = vst [vmem:[%s5244_s21 + $0x60] sm:$0xff] %v3257_v7   ;;  %v3807_v49 = vpop.f32.mrb[140].mxu0 }
 0x21d   : > { %v2719_v51 = vadd.f32 %v2718_v26, %v2512_v8  ;;  %v2788_v14 = vadd.f32 %v2787_v50, %v2757_v5  ;;  %v2519_v45 = vpop.f32.mrb[141].mxu0 }
 0x21e   : > { %v2362_v58 = vadd.f32 %v3730_v57, %v5220_v43  ;;  %v2520_v47 = vadd.f32 %v2519_v45, %v2359_v33  ;;  %v3808_v25 = vpop.f32.mrb[142].mxu0 }
 0x21f   : > { %v2789_v2 = vadd.f32 %v2788_v14, %v2758_v17  ;;  %v2720_v30 = vadd.f32 %v2719_v51, %v2515_v59  ;;  %v2522_v43 = vpop.f32.mrb[143].mxu0 }
 0x220   : > { %v3731_v55 = vpop.f32.mrb[140].mxu1  ;;  %v2760_v37 = vmul.f32 %v2520_v47, %v2520_v47  ;;  %v2523_v4 = vadd.f32 %v2522_v43, %v2362_v58 }
 0x221   : > { %v3732_v52 = vpop.f32.mrb[141].mxu1  ;;  %v2721_v27 = vadd.f32 %v2720_v30, %v2520_v47  ;;  %v2790_v28 = vadd.f32 %v2789_v2, %v2759_v38 }
 0x222   : > { %v3733_v31 = vadd.f32 %v3732_v52, %v3731_v55  ;;  %v3734_v11 = vpop.f32.mrb[142].mxu1  ;;  %v3267_v9 = vpack.c.bf16 %v2523_v4, %v2520_v47  ;;  %v2761_v34 = vmul.f32 %v2523_v4, %v2523_v4 }
 0x223   : > { %v3735_v48 = vpop.f32.mrb[143].mxu1  ;;  %v2791_v29 = vadd.f32 %v2790_v28, %v2760_v37  ;;  %v2722_v61 = vadd.f32 %v2721_v27, %v2523_v4 }
 0x224   : > { %v2367_v13 = vadd.f32 %v3733_v31, %v5226_v46  ;;  %v3736_v54 = vadd.f32 %v3735_v48, %v3734_v11  ;;  %3287 = vst [vmem:[%s5244_s21 + $0x70] sm:$0xff] %v3267_v9  }
 0x225   : > { %v2792_v32 = vadd.f32 %v2791_v29, %v2761_v34 }
 0x226   : > { %v2528_v18 = vadd.f32 %v3807_v49, %v2367_v13  ;;  %v2370_v10 = vadd.f32 %v3736_v54, %v5232_v41 }
 0x228   : > { %v2762_v16 = vmul.f32 %v2528_v18, %v2528_v18  ;;  %v2531_v39 = vadd.f32 %v3808_v25, %v2370_v10  ;;  %v2723_v60 = vadd.f32 %v2722_v61, %v2528_v18 }
 0x22a   : > { %v3272_v46 = vpack.c.bf16 %v2531_v39, %v2528_v18  ;;  %v2763_v23 = vmul.f32 %v2531_v39, %v2531_v39  ;;  %v2724_v42 = vadd.f32 %v2723_v60, %v2531_v39  ;;  %v2793_v21 = vadd.f32 %v2792_v32, %v2762_v16 }
 0x22c   : > { %3288 = vst [vmem:[%s5244_s21 + $0x78] sm:$0xff] %v3272_v46   ;;  %v2725_v36 = vrot.slane %v2724_v42, 4  ;;  %v2794_v20 = vadd.f32 %v2793_v21, %v2763_v23 }
 0x22e   : > { %v2726_v8 = vadd.f32 %v2725_v36, %v2724_v42  ;;  %v2795_v6 = vrot.slane %v2794_v20, 4 }
 0x230   : > { %v2727_v41 = vrot.slane %v2726_v8, 2  ;;  %v2796_v19 = vadd.f32 %v2795_v6, %v2794_v20 }
 0x232   : > { %v2728_v24 = vadd.f32 %v2727_v41, %v2726_v8  ;;  %v2797_v53 = vrot.slane %v2796_v19, 2 }
 0x234   : > { %v2729_v0 = vrot.slane %v2728_v24, 1  ;;  %v2798_v22 = vadd.f32 %v2797_v53, %v2796_v19 }
 0x236   : > { %v2730_v63 = vadd.f32 %v2729_v0, %v2728_v24  ;;  %v2799_v3 = vrot.slane %v2798_v22, 1 }
 0x238   : > { %2731 = vst [vmem:[%s252_s25] sm:$0xff] %v2730_v63  ;;  %v2800_v35 = vadd.f32 %v2799_v3, %v2798_v22 }
 0x23a   : > { %2801 = vst [vmem:[%s259_s28] sm:$0xff] %v2800_v35 }
 0x23b PF: > { %s15_s17 = sadd.s32 1, %s3974_s17   ;;  %s5359_s15 = smov %s3970_s16 }
 0x23c   : > { %p12_p5 = scmp.ge.s32.totalorder %s15_s17, 4   ;;  %s5360_s16 = smov %s5362_s18 }
 0x23e   :  { %14 = sbr.rel (!%p12_p5) target bundleno = 2 (0x2), region = 83 }

</bundles_post_ra>
